<compile_context>
chip_gen: v7x
topology: tpu7x:2x2x1
jax: 0.10.0
libtpu: 0.0.40
codegen_flags: <defaults>
</compile_context>

<pallas_src>
import functools

import jax
import jax.numpy as jnp
from jax.experimental import pallas as pl
from jax.experimental.pallas import tpu as pltpu

IMG_W = 1024.0   # image bounds used for anchor generation and the validity mask
IMG_H = 800.0
LANE = 128


def _round_up(x, m):
    return (x + m - 1) // m * m


# ----------------------------------------------------------------------------
# Fused kernel: 3x3 conv (9 shifted matmuls) + ReLU + fused cls/loc head matmul
#               + box decode + sigmoid + keep-mask, one dense 128-lane store.
#
# Packed output lanes (A anchors/cell, anchor-major groups):
#   [0:A]      raw cls logits
#   [A:5A]     raw loc deltas, per anchor (dx,dy,dw,dh)
#   [5A:6A]    sigmoid(cls)
#   [6A:10A]   decoded boxes, per anchor (x1,y1,x2,y2)
#   [10A:11A]  keep mask (anchor in-bounds & logit > 0)
#   [11A:128]  zeros
# ----------------------------------------------------------------------------
def rpn_fused_kernel(fm_ref, anc_ref, wc_ref, bc_ref, wh_ref, bh_ref, out_ref,
                     *, A, H, Wp):
    L = H * Wp  # conv-output rows in the (row-major, 2 junk columns per image row) layout

    # ---- 3x3 conv as 9 shifted matmuls over the flattened, halo-padded feature map ----
    acc = None
    for di in range(3):
        for dj in range(3):
            tap = di * 3 + dj
            off = di * Wp + dj                              # static row offset of this tap
            win = fm_ref[pl.ds(off, L), :]                  # (L, C) bf16 window
            part = jnp.dot(win, wc_ref[tap],
                           preferred_element_type=jnp.float32)
            acc = part if acc is None else acc + part
    hidden = jnp.maximum(acc + bc_ref[...], 0.0)            # (L, mid_p) f32, ReLU

    # ---- single fused head matmul: 256 lanes = [raw + dup'd center deltas | dup'd size deltas] ----
    out_wide = jnp.dot(hidden.astype(wh_ref.dtype), wh_ref[...],
                       preferred_element_type=jnp.float32) + bh_ref[...]
    outA = out_wide[:, :LANE]          # raw fields + duplicated (dx,dy,dx,dy)/cls at decode lanes
    outB = out_wide[:, LANE:]          # duplicated (dw,dh,dw,dh) at box lanes, 0 elsewhere

    anc = anc_ref[...]
    ancA = anc[:, :LANE]               # (aw,ah,aw,ah) at box lanes, validity at keep lanes
    ancB = anc[:, LANE:2 * LANE]       # (acx,acy,acx,acy) at box lanes
    ancH = anc[:, 2 * LANE:]           # (-aw/2,-ah/2,+aw/2,+ah/2) at box lanes

    # Full-width elementwise decode (VPU/EUP work riding in the MXU kernel's slack):
    #   box = (delta_ctr * a_size + a_ctr) + exp(delta_size) * signed_half_size
    ctr = outA * ancA + ancB
    box = ctr + jnp.exp(outB) * ancH
    prob = jax.nn.sigmoid(outA)
    keep = jnp.where((outA > 0.0) & (ancA > 0.5), 1.0, 0.0)

    lane = jax.lax.broadcasted_iota(jnp.int32, (L, LANE), 1)
    packed = jnp.where(lane < 5 * A, outA, 0.0)                          # raw + explicit zero pad
    packed = jnp.where((lane >= 5 * A) & (lane < 6 * A), prob, packed)   # sigmoid scores
    packed = jnp.where((lane >= 6 * A) & (lane < 10 * A), box, packed)   # decoded boxes
    packed = jnp.where((lane >= 10 * A) & (lane < 11 * A), keep, packed) # keep mask
    out_ref[...] = packed                                                # ONE dense store


def rpn_head_decode(fm_flat, anc_flat, wc, bc, wh, bh, *, A, n, H, Wp):
    S_in, C = fm_flat.shape[1], fm_flat.shape[2]
    mid_p = wc.shape[2]
    L = H * Wp
    kernel = functools.partial(rpn_fused_kernel, A=A, H=H, Wp=Wp)
    const = dict(pipeline_mode=pl.Buffered(1))   # grid-invariant blocks: single-buffer (saves VMEM)
    return pl.pallas_call(
        kernel,
        out_shape=jax.ShapeDtypeStruct((n, L, LANE), jnp.float32),
        grid_spec=pltpu.PrefetchScalarGridSpec(
            num_scalar_prefetch=0,
            grid=(n,),
            in_specs=[
                pl.BlockSpec((None, S_in, C), lambda b: (b, 0, 0)),            # feature map (bf16)
                pl.BlockSpec((L, 3 * LANE), lambda b: (0, 0), **const),        # anchor planes (f32)
                pl.BlockSpec((9, C, mid_p), lambda b: (0, 0, 0), **const),     # per-tap conv w (bf16)
                pl.BlockSpec((1, mid_p), lambda b: (0, 0), **const),           # conv bias (f32)
                pl.BlockSpec((mid_p, 2 * LANE), lambda b: (0, 0), **const),    # fused head w (bf16)
                pl.BlockSpec((1, 2 * LANE), lambda b: (0, 0), **const),        # fused head bias
            ],
            out_specs=pl.BlockSpec((None, L, LANE), lambda b: (b, 0, 0)),
        ),
        compiler_params=pltpu.CompilerParams(
            dimension_semantics=("parallel",),
            vmem_limit_bytes=48 * 1024 * 1024),
    )(fm_flat, anc_flat, wc, bc, wh, bh)


# ----------------------------------------------------------------------------
# Plain-JAX glue (parameter / anchor layout prep, all constant-time XLA work)
# ----------------------------------------------------------------------------
def generate_anchors(H, W, A):
    """Square anchor grid over the feature map, (H, W, A, 4) in (x1,y1,x2,y2)."""
    stride_x = IMG_W / W
    stride_y = IMG_H / H
    sizes = jnp.array([64.0, 128.0, 256.0], dtype=jnp.float32)[:A]
    ys = (jnp.arange(H, dtype=jnp.float32) + 0.5) * stride_y
    xs = (jnp.arange(W, dtype=jnp.float32) + 0.5) * stride_x
    cy, cx = jnp.meshgrid(ys, xs, indexing="ij")
    cx = cx[..., None]
    cy = cy[..., None]
    half = sizes / 2.0
    return jnp.stack([cx - half, cy - half, cx + half, cy + half], axis=-1)


def prepare_anchor_planes(H, W, A):
    """Anchor constants in decode-lane layout: [ancA | ancB | ancH], (H*(W+2), 384)."""
    anc4 = generate_anchors(H, W, A)                              # (H, W, A, 4)
    x1, y1, x2, y2 = anc4[..., 0], anc4[..., 1], anc4[..., 2], anc4[..., 3]
    aw, ah = x2 - x1, y2 - y1
    acx, acy = x1 + 0.5 * aw, y1 + 0.5 * ah
    valid = ((x1 >= 0.0) & (y1 >= 0.0) & (x2 <= IMG_W) & (y2 <= IMG_H)).astype(jnp.float32)

    size_dup = jnp.stack([aw, ah, aw, ah], axis=-1).reshape(H, W, 4 * A)
    ctr_dup = jnp.stack([acx, acy, acx, acy], axis=-1).reshape(H, W, 4 * A)
    half_dup = jnp.stack([-0.5 * aw, -0.5 * ah, 0.5 * aw, 0.5 * ah], axis=-1).reshape(H, W, 4 * A)

    z6 = jnp.zeros((H, W, 6 * A), jnp.float32)
    zA = jnp.zeros((H, W, LANE - 11 * A), jnp.float32)
    zB = jnp.zeros((H, W, LANE - 10 * A), jnp.float32)
    ancA = jnp.concatenate([z6, size_dup, valid, zA], axis=-1)    # (H, W, 128)
    ancB = jnp.concatenate([z6, ctr_dup, zB], axis=-1)            # (H, W, 128)
    ancH = jnp.concatenate([z6, half_dup, zB], axis=-1)           # (H, W, 128)
    anc = jnp.concatenate([ancA, ancB, ancH], axis=-1)            # (H, W, 384)
    anc = jnp.pad(anc, ((0, 0), (0, 2), (0, 0)))                  # 2 zero junk columns per row
    return anc.reshape(H * (W + 2), 3 * LANE), anc4.reshape(-1, 4)


def prepare_params(params, A):
    """Pad conv weights, and build the fused+duplicated 256-lane head weight/bias (bf16 operands)."""
    kkc, mid = params["wc"].shape
    C = kkc // 9
    mid_p = _round_up(mid, LANE)   # NOTE: if mid is naturally 256 this also fills the v6e/v7x MXU
    assert 11 * A <= LANE, "packed lane layout requires 11*A <= 128"

    wc = jnp.pad(params["wc"], ((0, 0), (0, mid_p - mid)))
    wc = wc.reshape(9, C, mid_p).astype(jnp.bfloat16)
    bc = jnp.pad(params["bc"], (0, mid_p - mid)).reshape(1, mid_p).astype(jnp.float32)

    wcls, bcls = params["wcls"], params["bcls"]                   # (mid, A), (A,)
    wloc, bloc = params["wloc"], params["bloc"]                   # (mid, 4A) anchor-major
    wl = wloc.reshape(mid, A, 4)
    bl = bloc.reshape(A, 4)
    ctr_idx = jnp.array([0, 1, 0, 1])                             # dx, dy, dx, dy
    sz_idx = jnp.array([2, 3, 2, 3])                              # dw, dh, dw, dh
    w_ctr = wl[:, :, ctr_idx].reshape(mid, 4 * A)
    w_sz = wl[:, :, sz_idx].reshape(mid, 4 * A)
    b_ctr = bl[:, ctr_idx].reshape(4 * A)
    b_sz = bl[:, sz_idx].reshape(4 * A)

    colsA = jnp.concatenate(
        [wcls, wloc, wcls, w_ctr, wcls, jnp.zeros((mid, LANE - 11 * A), jnp.float32)], axis=1)
    colsB = jnp.concatenate(
        [jnp.zeros((mid, 6 * A), jnp.float32), w_sz,
         jnp.zeros((mid, LANE - 10 * A), jnp.float32)], axis=1)
    wh = jnp.concatenate([colsA, colsB], axis=1)                  # (mid, 256)
    wh = jnp.pad(wh, ((0, mid_p - mid), (0, 0))).astype(jnp.bfloat16)

    bA = jnp.concatenate([bcls, bloc, bcls, b_ctr, bcls,
                          jnp.zeros((LANE - 11 * A,), jnp.float32)])
    bB = jnp.concatenate([jnp.zeros((6 * A,), jnp.float32), b_sz,
                          jnp.zeros((LANE - 10 * A,), jnp.float32)])
    bh = jnp.concatenate([bA, bB]).reshape(1, 2 * LANE).astype(jnp.float32)
    return wc, bc, wh, bh, C, mid_p


def init_params(key, c, mid, a):
    k = jax.random.split(key, 3)
    scale = 0.05
    return dict(
        wc=jax.random.normal(k[0], (9 * c, mid), jnp.float32) * scale,
        bc=jnp.zeros((mid,), jnp.float32),
        wcls=jax.random.normal(k[1], (mid, a), jnp.float32) * scale,
        bcls=jnp.zeros((a,), jnp.float32),
        wloc=jax.random.normal(k[2], (mid, 4 * a), jnp.float32) * scale,
        bloc=jnp.zeros((4 * a,), jnp.float32),
    )


@functools.partial(jax.jit, static_argnames=("A",))
def rpn_forward(feature_map, params, *, A=3):
    """Inference path of RPN.forward (self.training == False)."""
    n, c, h, w = feature_map.shape
    hw, m = h * w, h * w * A
    Wp = w + 2

    wc, bc, wh, bh, C, mid_p = prepare_params(params, A)
    assert C == c

    # Halo-padded NHWC feature map, flattened so each 3x3 tap is a contiguous row window.
    # (1 row top / 2 rows bottom, 1 col each side -> no out-of-range reads for any tap slice.)
    x = jnp.transpose(feature_map, (0, 2, 3, 1))                        # NHWC
    x = jnp.pad(x, ((0, 0), (1, 2), (1, 1), (0, 0)))                    # (n, h+3, w+2, c)
    fm_flat = x.reshape(n, (h + 3) * Wp, c).astype(jnp.bfloat16)

    anc_flat, anchors = prepare_anchor_planes(h, w, A)

    packed = rpn_head_decode(fm_flat, anc_flat, wc, bc, wh, bh, A=A, n=n, H=h, Wp=Wp)

    # Drop the 2 junk columns introduced by the flattened halo layout, then unpack lane groups
    # (anchor-major layout -> plain reshapes, no transposes).
    p = packed.reshape(n, h, Wp, LANE)[:, :, :w, :].reshape(n, hw, LANE)
    pred_cls_scores_all = p[..., 0:A].reshape(n, m)
    pred_anchor_locs_all = p[..., A:5 * A].reshape(n, m, 4)
    scores = p[..., 5 * A:6 * A].reshape(n, m)
    proposals = p[..., 6 * A:10 * A].reshape(n, m, 4)
    keep_mask = p[..., 10 * A:11 * A].reshape(n, m)

    # TODO(synk): NMS + top-256 dynamic gather not expressible statically; downstream consumers
    #             should use keep_mask + scores for selection.
    return {
        "pred_cls_scores_all": pred_cls_scores_all,
        "pred_anchor_locs_all": pred_anchor_locs_all,
        "anchors": anchors,
        "proposals_bbox": proposals * keep_mask[..., None],
        "scores": scores * keep_mask,
        "keep_mask": keep_mask,
    }


if __name__ == "__main__":
    key = jax.random.PRNGKey(0)
    k_x, k_p = jax.random.split(key)

    # Small deterministic shapes: batch=2, channels=4, spatial=16x16, mid=32, A=3 anchors/cell.
    N, C, H, W = 2, 4, 16, 16
    MID, A = 32, 3

    x = jax.random.normal(k_x, (N, C, H, W), jnp.float32)   # NCHW, like PyTorch
    params = init_params(k_p, C, MID, A)

    out = rpn_forward(x, params, A=A)
    jax.block_until_ready(out)

    assert out["pred_cls_scores_all"].shape == (N, H * W * A)
    assert out["pred_anchor_locs_all"].shape == (N, H * W * A, 4)
    assert out["proposals_bbox"].shape == (N, H * W * A, 4)
    assert out["scores"].shape == (N, H * W * A)
    assert out["keep_mask"].shape == (N, H * W * A)
    print("KERNEL_OK")
</pallas_src>

<mosaic_0001>
module attributes {stable_mosaic.version = 11 : i64} {
  func.func @rpn_fused_kernel(%arg0: i32, %arg1: memref<1x342x4xbf16, #tpu.memory_space<vmem>>, %arg2: memref<288x384xf32, #tpu.memory_space<vmem>>, %arg3: memref<9x4x128xbf16, #tpu.memory_space<vmem>>, %arg4: memref<1x128xf32, #tpu.memory_space<vmem>>, %arg5: memref<128x256xbf16, #tpu.memory_space<vmem>>, %arg6: memref<1x256xf32, #tpu.memory_space<vmem>>, %arg7: memref<1x288x128xf32, #tpu.memory_space<vmem>>) attributes {dimension_semantics = [#tpu.dimension_semantics<parallel>], iteration_bounds = array<i64: 2>, scalar_prefetch = 0 : i64, scratch_operands = 0 : i64, tpu.core_type = #tpu.core_type<tc>, window_params = [{transform_indices = @transform_0, window_bounds = array<i64: 1, 342, 4>}, {pipeline_mode = #tpu.pipeline_mode<synchronous>, transform_indices = @transform_1, window_bounds = array<i64: 288, 384>}, {pipeline_mode = #tpu.pipeline_mode<synchronous>, transform_indices = @transform_2, window_bounds = array<i64: 9, 4, 128>}, {pipeline_mode = #tpu.pipeline_mode<synchronous>, transform_indices = @transform_3, window_bounds = array<i64: 1, 128>}, {pipeline_mode = #tpu.pipeline_mode<synchronous>, transform_indices = @transform_4, window_bounds = array<i64: 128, 256>}, {pipeline_mode = #tpu.pipeline_mode<synchronous>, transform_indices = @transform_5, window_bounds = array<i64: 1, 256>}, {transform_indices = @transform_6, window_bounds = array<i64: 1, 288, 128>}]} {
    %c0 = arith.constant 0 : index
    %c0_0 = arith.constant 0 : index
    %c0_1 = arith.constant 0 : index
    %0 = vector.load %arg1[%c0, %c0_0, %c0_1] : memref<1x342x4xbf16, #tpu.memory_space<vmem>>, vector<1x288x4xbf16>
    %1 = vector.shape_cast %0 : vector<1x288x4xbf16> to vector<288x4xbf16>
    %c0_2 = arith.constant 0 : index
    %c0_3 = arith.constant 0 : index
    %c0_4 = arith.constant 0 : index
    %2 = vector.load %arg3[%c0_2, %c0_3, %c0_4] : memref<9x4x128xbf16, #tpu.memory_space<vmem>>, vector<1x4x128xbf16>
    %3 = vector.shape_cast %2 : vector<1x4x128xbf16> to vector<4x128xbf16>
    %cst = arith.constant dense<0.000000e+00> : vector<288x128xf32>
    %4 = tpu.matmul %1, %3, %cst {dimension_numbers = #tpu.dot_dimension_numbers<[1], [0], [0], [1], [0, 0, 1, 1], [], []>} : vector<288x4xbf16>, vector<4x128xbf16>, vector<288x128xf32> -> vector<288x128xf32>
    %c0_5 = arith.constant 0 : index
    %c1 = arith.constant 1 : index
    %c0_6 = arith.constant 0 : index
    %5 = vector.load %arg1[%c0_5, %c1, %c0_6] : memref<1x342x4xbf16, #tpu.memory_space<vmem>>, vector<1x288x4xbf16>
    %6 = vector.shape_cast %5 : vector<1x288x4xbf16> to vector<288x4xbf16>
    %c1_7 = arith.constant 1 : index
    %c0_8 = arith.constant 0 : index
    %c0_9 = arith.constant 0 : index
    %7 = vector.load %arg3[%c1_7, %c0_8, %c0_9] : memref<9x4x128xbf16, #tpu.memory_space<vmem>>, vector<1x4x128xbf16>
    %8 = vector.shape_cast %7 : vector<1x4x128xbf16> to vector<4x128xbf16>
    %cst_10 = arith.constant dense<0.000000e+00> : vector<288x128xf32>
    %9 = tpu.matmul %6, %8, %cst_10 {dimension_numbers = #tpu.dot_dimension_numbers<[1], [0], [0], [1], [0, 0, 1, 1], [], []>} : vector<288x4xbf16>, vector<4x128xbf16>, vector<288x128xf32> -> vector<288x128xf32>
    %10 = arith.addf %4, %9 : vector<288x128xf32>
    %c0_11 = arith.constant 0 : index
    %c2 = arith.constant 2 : index
    %c0_12 = arith.constant 0 : index
    %11 = vector.load %arg1[%c0_11, %c2, %c0_12] : memref<1x342x4xbf16, #tpu.memory_space<vmem>>, vector<1x288x4xbf16>
    %12 = vector.shape_cast %11 : vector<1x288x4xbf16> to vector<288x4xbf16>
    %c2_13 = arith.constant 2 : index
    %c0_14 = arith.constant 0 : index
    %c0_15 = arith.constant 0 : index
    %13 = vector.load %arg3[%c2_13, %c0_14, %c0_15] : memref<9x4x128xbf16, #tpu.memory_space<vmem>>, vector<1x4x128xbf16>
    %14 = vector.shape_cast %13 : vector<1x4x128xbf16> to vector<4x128xbf16>
    %cst_16 = arith.constant dense<0.000000e+00> : vector<288x128xf32>
    %15 = tpu.matmul %12, %14, %cst_16 {dimension_numbers = #tpu.dot_dimension_numbers<[1], [0], [0], [1], [0, 0, 1, 1], [], []>} : vector<288x4xbf16>, vector<4x128xbf16>, vector<288x128xf32> -> vector<288x128xf32>
    %16 = arith.addf %10, %15 : vector<288x128xf32>
    %c0_17 = arith.constant 0 : index
    %c18 = arith.constant 18 : index
    %c0_18 = arith.constant 0 : index
    %17 = vector.load %arg1[%c0_17, %c18, %c0_18] : memref<1x342x4xbf16, #tpu.memory_space<vmem>>, vector<1x288x4xbf16>
    %18 = vector.shape_cast %17 : vector<1x288x4xbf16> to vector<288x4xbf16>
    %c3 = arith.constant 3 : index
    %c0_19 = arith.constant 0 : index
    %c0_20 = arith.constant 0 : index
    %19 = vector.load %arg3[%c3, %c0_19, %c0_20] : memref<9x4x128xbf16, #tpu.memory_space<vmem>>, vector<1x4x128xbf16>
    %20 = vector.shape_cast %19 : vector<1x4x128xbf16> to vector<4x128xbf16>
    %cst_21 = arith.constant dense<0.000000e+00> : vector<288x128xf32>
    %21 = tpu.matmul %18, %20, %cst_21 {dimension_numbers = #tpu.dot_dimension_numbers<[1], [0], [0], [1], [0, 0, 1, 1], [], []>} : vector<288x4xbf16>, vector<4x128xbf16>, vector<288x128xf32> -> vector<288x128xf32>
    %22 = arith.addf %16, %21 : vector<288x128xf32>
    %c0_22 = arith.constant 0 : index
    %c19 = arith.constant 19 : index
    %c0_23 = arith.constant 0 : index
    %23 = vector.load %arg1[%c0_22, %c19, %c0_23] : memref<1x342x4xbf16, #tpu.memory_space<vmem>>, vector<1x288x4xbf16>
    %24 = vector.shape_cast %23 : vector<1x288x4xbf16> to vector<288x4xbf16>
    %c4 = arith.constant 4 : index
    %c0_24 = arith.constant 0 : index
    %c0_25 = arith.constant 0 : index
    %25 = vector.load %arg3[%c4, %c0_24, %c0_25] : memref<9x4x128xbf16, #tpu.memory_space<vmem>>, vector<1x4x128xbf16>
    %26 = vector.shape_cast %25 : vector<1x4x128xbf16> to vector<4x128xbf16>
    %cst_26 = arith.constant dense<0.000000e+00> : vector<288x128xf32>
    %27 = tpu.matmul %24, %26, %cst_26 {dimension_numbers = #tpu.dot_dimension_numbers<[1], [0], [0], [1], [0, 0, 1, 1], [], []>} : vector<288x4xbf16>, vector<4x128xbf16>, vector<288x128xf32> -> vector<288x128xf32>
    %28 = arith.addf %22, %27 : vector<288x128xf32>
    %c0_27 = arith.constant 0 : index
    %c20 = arith.constant 20 : index
    %c0_28 = arith.constant 0 : index
    %29 = vector.load %arg1[%c0_27, %c20, %c0_28] : memref<1x342x4xbf16, #tpu.memory_space<vmem>>, vector<1x288x4xbf16>
    %30 = vector.shape_cast %29 : vector<1x288x4xbf16> to vector<288x4xbf16>
    %c5 = arith.constant 5 : index
    %c0_29 = arith.constant 0 : index
    %c0_30 = arith.constant 0 : index
    %31 = vector.load %arg3[%c5, %c0_29, %c0_30] : memref<9x4x128xbf16, #tpu.memory_space<vmem>>, vector<1x4x128xbf16>
    %32 = vector.shape_cast %31 : vector<1x4x128xbf16> to vector<4x128xbf16>
    %cst_31 = arith.constant dense<0.000000e+00> : vector<288x128xf32>
    %33 = tpu.matmul %30, %32, %cst_31 {dimension_numbers = #tpu.dot_dimension_numbers<[1], [0], [0], [1], [0, 0, 1, 1], [], []>} : vector<288x4xbf16>, vector<4x128xbf16>, vector<288x128xf32> -> vector<288x128xf32>
    %34 = arith.addf %28, %33 : vector<288x128xf32>
    %c0_32 = arith.constant 0 : index
    %c36 = arith.constant 36 : index
    %c0_33 = arith.constant 0 : index
    %35 = vector.load %arg1[%c0_32, %c36, %c0_33] : memref<1x342x4xbf16, #tpu.memory_space<vmem>>, vector<1x288x4xbf16>
    %36 = vector.shape_cast %35 : vector<1x288x4xbf16> to vector<288x4xbf16>
    %c6 = arith.constant 6 : index
    %c0_34 = arith.constant 0 : index
    %c0_35 = arith.constant 0 : index
    %37 = vector.load %arg3[%c6, %c0_34, %c0_35] : memref<9x4x128xbf16, #tpu.memory_space<vmem>>, vector<1x4x128xbf16>
    %38 = vector.shape_cast %37 : vector<1x4x128xbf16> to vector<4x128xbf16>
    %cst_36 = arith.constant dense<0.000000e+00> : vector<288x128xf32>
    %39 = tpu.matmul %36, %38, %cst_36 {dimension_numbers = #tpu.dot_dimension_numbers<[1], [0], [0], [1], [0, 0, 1, 1], [], []>} : vector<288x4xbf16>, vector<4x128xbf16>, vector<288x128xf32> -> vector<288x128xf32>
    %40 = arith.addf %34, %39 : vector<288x128xf32>
    %c0_37 = arith.constant 0 : index
    %c37 = arith.constant 37 : index
    %c0_38 = arith.constant 0 : index
    %41 = vector.load %arg1[%c0_37, %c37, %c0_38] : memref<1x342x4xbf16, #tpu.memory_space<vmem>>, vector<1x288x4xbf16>
    %42 = vector.shape_cast %41 : vector<1x288x4xbf16> to vector<288x4xbf16>
    %c7 = arith.constant 7 : index
    %c0_39 = arith.constant 0 : index
    %c0_40 = arith.constant 0 : index
    %43 = vector.load %arg3[%c7, %c0_39, %c0_40] : memref<9x4x128xbf16, #tpu.memory_space<vmem>>, vector<1x4x128xbf16>
    %44 = vector.shape_cast %43 : vector<1x4x128xbf16> to vector<4x128xbf16>
    %cst_41 = arith.constant dense<0.000000e+00> : vector<288x128xf32>
    %45 = tpu.matmul %42, %44, %cst_41 {dimension_numbers = #tpu.dot_dimension_numbers<[1], [0], [0], [1], [0, 0, 1, 1], [], []>} : vector<288x4xbf16>, vector<4x128xbf16>, vector<288x128xf32> -> vector<288x128xf32>
    %46 = arith.addf %40, %45 : vector<288x128xf32>
    %c0_42 = arith.constant 0 : index
    %c38 = arith.constant 38 : index
    %c0_43 = arith.constant 0 : index
    %47 = vector.load %arg1[%c0_42, %c38, %c0_43] : memref<1x342x4xbf16, #tpu.memory_space<vmem>>, vector<1x288x4xbf16>
    %48 = vector.shape_cast %47 : vector<1x288x4xbf16> to vector<288x4xbf16>
    %c8 = arith.constant 8 : index
    %c0_44 = arith.constant 0 : index
    %c0_45 = arith.constant 0 : index
    %49 = vector.load %arg3[%c8, %c0_44, %c0_45] : memref<9x4x128xbf16, #tpu.memory_space<vmem>>, vector<1x4x128xbf16>
    %50 = vector.shape_cast %49 : vector<1x4x128xbf16> to vector<4x128xbf16>
    %cst_46 = arith.constant dense<0.000000e+00> : vector<288x128xf32>
    %51 = tpu.matmul %48, %50, %cst_46 {dimension_numbers = #tpu.dot_dimension_numbers<[1], [0], [0], [1], [0, 0, 1, 1], [], []>} : vector<288x4xbf16>, vector<4x128xbf16>, vector<288x128xf32> -> vector<288x128xf32>
    %52 = arith.addf %46, %51 : vector<288x128xf32>
    %c0_47 = arith.constant 0 : index
    %c0_48 = arith.constant 0 : index
    %53 = vector.load %arg4[%c0_47, %c0_48] : memref<1x128xf32, #tpu.memory_space<vmem>>, vector<1x128xf32>
    %54 = vector.broadcast %53 : vector<1x128xf32> to vector<288x128xf32>
    %55 = arith.addf %52, %54 : vector<288x128xf32>
    %cst_49 = arith.constant 0.000000e+00 : f32
    %56 = vector.broadcast %cst_49 : f32 to vector<288x128xf32>
    %57 = arith.maximumf %55, %56 : vector<288x128xf32>
    %58 = arith.truncf %57 : vector<288x128xf32> to vector<288x128xbf16>
    %c0_50 = arith.constant 0 : index
    %c0_51 = arith.constant 0 : index
    %59 = vector.load %arg5[%c0_50, %c0_51] : memref<128x256xbf16, #tpu.memory_space<vmem>>, vector<128x256xbf16>
    %cst_52 = arith.constant dense<0.000000e+00> : vector<288x256xf32>
    %60 = tpu.matmul %58, %59, %cst_52 {dimension_numbers = #tpu.dot_dimension_numbers<[1], [0], [0], [1], [0, 0, 1, 1], [], []>} : vector<288x128xbf16>, vector<128x256xbf16>, vector<288x256xf32> -> vector<288x256xf32>
    %c0_53 = arith.constant 0 : index
    %c0_54 = arith.constant 0 : index
    %61 = vector.load %arg6[%c0_53, %c0_54] : memref<1x256xf32, #tpu.memory_space<vmem>>, vector<1x256xf32>
    %62 = vector.broadcast %61 : vector<1x256xf32> to vector<288x256xf32>
    %63 = arith.addf %60, %62 : vector<288x256xf32>
    %64 = vector.extract_strided_slice %63 {offsets = [0, 0], sizes = [288, 128], strides = [1, 1]} : vector<288x256xf32> to vector<288x128xf32>
    %65 = vector.extract_strided_slice %63 {offsets = [0, 128], sizes = [288, 128], strides = [1, 1]} : vector<288x256xf32> to vector<288x128xf32>
    %c0_55 = arith.constant 0 : index
    %c0_56 = arith.constant 0 : index
    %66 = vector.load %arg2[%c0_55, %c0_56] : memref<288x384xf32, #tpu.memory_space<vmem>>, vector<288x384xf32>
    %67 = vector.extract_strided_slice %66 {offsets = [0, 0], sizes = [288, 128], strides = [1, 1]} : vector<288x384xf32> to vector<288x128xf32>
    %68 = vector.extract_strided_slice %66 {offsets = [0, 128], sizes = [288, 128], strides = [1, 1]} : vector<288x384xf32> to vector<288x128xf32>
    %69 = vector.extract_strided_slice %66 {offsets = [0, 256], sizes = [288, 128], strides = [1, 1]} : vector<288x384xf32> to vector<288x128xf32>
    %70 = arith.mulf %64, %67 : vector<288x128xf32>
    %71 = arith.addf %70, %68 : vector<288x128xf32>
    %72 = math.exp %65 : vector<288x128xf32>
    %73 = arith.mulf %72, %69 : vector<288x128xf32>
    %74 = arith.addf %71, %73 : vector<288x128xf32>
    %75 = arith.negf %64 : vector<288x128xf32>
    %76 = math.exp %75 : vector<288x128xf32>
    %cst_57 = arith.constant 1.000000e+00 : f32
    %77 = vector.broadcast %cst_57 : f32 to vector<288x128xf32>
    %78 = arith.addf %77, %76 : vector<288x128xf32>
    %79 = arith.divf %77, %78 : vector<288x128xf32>
    %cst_58 = arith.constant 0.000000e+00 : f32
    %80 = vector.broadcast %cst_58 : f32 to vector<288x128xf32>
    %81 = arith.cmpf ogt, %64, %80 : vector<288x128xf32>
    %cst_59 = arith.constant 5.000000e-01 : f32
    %82 = vector.broadcast %cst_59 : f32 to vector<288x128xf32>
    %83 = arith.cmpf ogt, %67, %82 : vector<288x128xf32>
    %84 = arith.andi %81, %83 : vector<288x128xi1>
    %cst_60 = arith.constant 1.000000e+00 : f32
    %cst_61 = arith.constant 0.000000e+00 : f32
    %85 = vector.broadcast %cst_60 : f32 to vector<288x128xf32>
    %86 = vector.broadcast %cst_61 : f32 to vector<288x128xf32>
    %87 = arith.select %84, %85, %86 : vector<288x128xi1>, vector<288x128xf32>
    %88 = tpu.iota {dimensions = array<i32: 1>} : vector<288x128xi32>
    %c15_i32 = arith.constant 15 : i32
    %89 = vector.broadcast %c15_i32 : i32 to vector<288x128xi32>
    %90 = arith.cmpi slt, %88, %89 : vector<288x128xi32>
    %cst_62 = arith.constant 0.000000e+00 : f32
    %91 = vector.broadcast %cst_62 : f32 to vector<288x128xf32>
    %92 = arith.select %90, %64, %91 : vector<288x128xi1>, vector<288x128xf32>
    %c15_i32_63 = arith.constant 15 : i32
    %93 = vector.broadcast %c15_i32_63 : i32 to vector<288x128xi32>
    %94 = arith.cmpi sge, %88, %93 : vector<288x128xi32>
    %c18_i32 = arith.constant 18 : i32
    %95 = vector.broadcast %c18_i32 : i32 to vector<288x128xi32>
    %96 = arith.cmpi slt, %88, %95 : vector<288x128xi32>
    %97 = arith.andi %94, %96 : vector<288x128xi1>
    %98 = arith.select %97, %79, %92 : vector<288x128xi1>, vector<288x128xf32>
    %c18_i32_64 = arith.constant 18 : i32
    %99 = vector.broadcast %c18_i32_64 : i32 to vector<288x128xi32>
    %100 = arith.cmpi sge, %88, %99 : vector<288x128xi32>
    %c30_i32 = arith.constant 30 : i32
    %101 = vector.broadcast %c30_i32 : i32 to vector<288x128xi32>
    %102 = arith.cmpi slt, %88, %101 : vector<288x128xi32>
    %103 = arith.andi %100, %102 : vector<288x128xi1>
    %104 = arith.select %103, %74, %98 : vector<288x128xi1>, vector<288x128xf32>
    %c30_i32_65 = arith.constant 30 : i32
    %105 = vector.broadcast %c30_i32_65 : i32 to vector<288x128xi32>
    %106 = arith.cmpi sge, %88, %105 : vector<288x128xi32>
    %c33_i32 = arith.constant 33 : i32
    %107 = vector.broadcast %c33_i32 : i32 to vector<288x128xi32>
    %108 = arith.cmpi slt, %88, %107 : vector<288x128xi32>
    %109 = arith.andi %106, %108 : vector<288x128xi1>
    %110 = arith.select %109, %87, %104 : vector<288x128xi1>, vector<288x128xf32>
    %c0_66 = arith.constant 0 : index
    %c0_67 = arith.constant 0 : index
    %c0_68 = arith.constant 0 : index
    %111 = vector.load %arg7[%c0_66, %c0_67, %c0_68] : memref<1x288x128xf32, #tpu.memory_space<vmem>>, vector<1x288x128xf32>
    %112 = vector.shape_cast %111 : vector<1x288x128xf32> to vector<288x128xf32>
    %113 = vector.shape_cast %110 : vector<288x128xf32> to vector<1x288x128xf32>
    tpu.vector_store %arg7[%c0_66, %c0_67, %c0_68], %113 {strides = array<i32>} : memref<1x288x128xf32, #tpu.memory_space<vmem>>, vector<1x288x128xf32>,
    return
  }
  func.func @transform_0(%arg0: i32) -> (i32, i32, i32) {
    %c0_i32 = arith.constant 0 : i32
    %c0_i32_0 = arith.constant 0 : i32
    %c0_i32_1 = arith.constant 0 : i32
    return %arg0, %c0_i32, %c0_i32_0 : i32, i32, i32
  }
  func.func @transform_1(%arg0: i32) -> (i32, i32) {
    %c0_i32 = arith.constant 0 : i32
    %c0_i32_0 = arith.constant 0 : i32
    %c0_i32_1 = arith.constant 0 : i32
    return %c0_i32, %c0_i32_0 : i32, i32
  }
  func.func @transform_2(%arg0: i32) -> (i32, i32, i32) {
    %c0_i32 = arith.constant 0 : i32
    %c0_i32_0 = arith.constant 0 : i32
    %c0_i32_1 = arith.constant 0 : i32
    %c0_i32_2 = arith.constant 0 : i32
    return %c0_i32, %c0_i32_0, %c0_i32_1 : i32, i32, i32
  }
  func.func @transform_3(%arg0: i32) -> (i32, i32) {
    %c0_i32 = arith.constant 0 : i32
    %c0_i32_0 = arith.constant 0 : i32
    %c0_i32_1 = arith.constant 0 : i32
    return %c0_i32, %c0_i32_0 : i32, i32
  }
  func.func @transform_4(%arg0: i32) -> (i32, i32) {
    %c0_i32 = arith.constant 0 : i32
    %c0_i32_0 = arith.constant 0 : i32
    %c0_i32_1 = arith.constant 0 : i32
    return %c0_i32, %c0_i32_0 : i32, i32
  }
  func.func @transform_5(%arg0: i32) -> (i32, i32) {
    %c0_i32 = arith.constant 0 : i32
    %c0_i32_0 = arith.constant 0 : i32
    %c0_i32_1 = arith.constant 0 : i32
    return %c0_i32, %c0_i32_0 : i32, i32
  }
  func.func @transform_6(%arg0: i32) -> (i32, i32, i32) {
    %c0_i32 = arith.constant 0 : i32
    %c0_i32_0 = arith.constant 0 : i32
    %c0_i32_1 = arith.constant 0 : i32
    return %arg0, %c0_i32, %c0_i32_0 : i32, i32, i32
  }
}

</mosaic_0001>

<bundles_post_ra>
// kernel: mul.25
= control target key start
LH: loop header
LB: loop body
LE: loop exit
PB: predicated region body
PF: predicated region fallthrough
CT: control target
= control target key end

     0   :  { %3 = vsyncpa [#allocation1], 0  ;;  %s170_s0 = inlined_call_operand.vmem [shape: f32[2,768], index: 0, kind: input, shape index: {}]   ;;  %s171_s1 = inlined_call_operand.vmem [shape: f32[2,768], index: 1, kind: input, shape index: {}]   ;;  %s172_s2 = inlined_call_operand.hbm [shape: f32[2,768], index: 2, kind: output, shape index: {}]  }
   0x1   :  { %v4_v0 = vld [vmem:[%s170_s0] sm:$0x3]  ;;  %v71_v3 = vld [vmem:[%s170_s0 + $0x2] sm:$0x3]  ;;  %v73_v5 = vld [vmem:[%s170_s0 + $0x4] sm:$0x3] }
   0x2   :  { %v5_v1 = vld [vmem:[%s171_s1] sm:$0x3]  ;;  %v72_v4 = vld [vmem:[%s171_s1 + $0x2] sm:$0x3]  ;;  %v74_v7 = vld [vmem:[%s171_s1 + $0x4] sm:$0x3] }
   0x3   :  { %v8_v2 = vmul.f32 %v5_v1, %v4_v0  ;;  %v17_v6 = vmul.f32 %v72_v4, %v71_v3  ;;  %v75_v8 = vld [vmem:[%s170_s0 + $0x6] sm:$0x3]  ;;  %v27_v10 = vmul.f32 %v74_v7, %v73_v5  ;;  %v77_v12 = vld [vmem:[%s170_s0 + $0x8] sm:$0x3]  ;;  %v79_v14 = vld [vmem:[%s170_s0 + $0xa] sm:$0x3] }
   0x4   :  { %v76_v9 = vld [vmem:[%s171_s1 + $0x6] sm:$0x3]  ;;  %v78_v13 = vld [vmem:[%s171_s1 + $0x8] sm:$0x3]  ;;  %v80_v16 = vld [vmem:[%s171_s1 + $0xa] sm:$0x3] }
   0x5   :  { %10 = vst [vmem:[#allocation0] sm:$0x3] %v8_v2  ;;  %v37_v11 = vmul.f32 %v76_v9, %v75_v8  ;;  %20 = vst [vmem:[#allocation0 + $0x2] sm:$0x3] %v17_v6  ;;  %v47_v15 = vmul.f32 %v78_v13, %v77_v12  ;;  %v57_v17 = vmul.f32 %v80_v16, %v79_v14  ;;  %s106_s1 = smov [#allocation0]  }
   0x6   :  { %30 = vst [vmem:[#allocation0 + $0x4] sm:$0x3] %v27_v10  ;;  %s65_s4 = sshll.u32 %s106_s1, 4  ;;  %s66_s4 = int_to_ptr.vmem [resolvable:$true] %s65_s4 }
   0x7   :  { %40 = vst [vmem:[#allocation0 + $0x6] sm:$0x3] %v37_v11  ;;  %50 = vst [vmem:[#allocation0 + $0x8] sm:$0x3] %v47_v15  ;;  %s82_s5 = scalar_lea.vmem %s66_s4, 192  ;;  %p87_p1 = scmp.lt.s32.totalorder %s66_s4, %s66_s4 }
   0x8   :  { %60 = vst [vmem:[#allocation0 + $0xa] sm:$0x3] %v57_v17  ;;  %p83_p0 = scmp.ne.s32.totalorder %s66_s4, %s82_s5  ;;  %p88_p2 = scmp.lt.s32.totalorder %s82_s5, %s82_s5 }
   0xa   :  { %p89_p3 = por %p88_p2, %p87_p1 }
   0xc   :  { %p90_p4 = pnand %p89_p3, %p83_p0 }
   0xe   :  { %93 = shalt.err (!%p90_p4)
}
   0xf   :  { %s94_s8 = scalar_lea.hbm %s172_s2, 192 }
  0x10   :  { %p95_p5 = scmp.ne.s32.totalorder %s172_s2, %s94_s8  ;;  %p98_p6 = scmp.lt.u32.totalorder %s94_s8, %s172_s2 }
  0x12   :  { %p100_p7 = pnand %p98_p6, %p95_p5 }
  0x14   :  { %103 = shalt.err (!%p100_p7)
}
  0x15   :  { %68 = dma.vmem_to_hbm [thread:$0]  %s66_s4, 192, %s172_s2, [#allocation1]  }
  0x16   :  { %104 = dma.done.wait [#allocation1], 192  }
  0x17   :  { %105 = vsyncadd [#allocation1], 4294967104 }
  0x18   :  { %70 = vsyncpa [#allocation1], 1 }

// kernel: rpn_forward.1
= control target key start
LH: loop header
LB: loop body
LE: loop exit
PB: predicated region body
PF: predicated region fallthrough
CT: control target
= control target key end

     0   :  { %s6519_s21 = smov 0   ;;  %s9248_s0 = inlined_call_operand.vmem [shape: bf16[2,342,4], index: 0, kind: input, shape index: {}]   ;;  %s9249_s1 = inlined_call_operand.vmem [shape: f32[288,384], index: 1, kind: input, shape index: {}]   ;;  %s9250_s2 = inlined_call_operand.vmem [shape: bf16[9,4,128], index: 2, kind: input, shape index: {}]   ;;  %s9251_s3 = inlined_call_operand.vmem [shape: f32[1,128], index: 3, kind: input, shape index: {}]   ;;  %s9252_s4 = inlined_call_operand.vmem [shape: bf16[128,256], index: 4, kind: input, shape index: {}]   ;;  %s9253_s5 = inlined_call_operand.vmem [shape: f32[1,256], index: 5, kind: input, shape index: {}]   ;;  %s9254_s6 = inlined_call_operand.vmem [shape: f32[2,288,128], index: 6, kind: output, shape index: {}]  }
   0x1 LB: > { %s5050_s22 = sadd.s32 4294967295, %s6480_s21   ;;  %p5054_p0 = scmp.ge.s32.totalorder %s6480_s21, 1  ;;  %s6480_s21 = sphi %s6519_s21, %s16_s21  }
   0x2   : > { %p212_p1 = scmp.lt.s32.totalorder %s6480_s21, 3 }
   0x4   : > { %p213_p2 = pnand %p5054_p0, %p212_p1 }
   0x6   : > { %216 = sbr.rel (%p213_p2) target bundleno = 981 (0x3d5), region = 44 }
   0xd   : > { %vm590_vm0 = vcmask 1041408   ;;  %v6530_v0 = vld [vmem:[%s9250_s2 + $0x6] sm:$0x3]  ;;  %p242_p3 = scmp.lt.s32.totalorder %s5050_s22, 1  ;;  %v5171_v2 = vld [vmem:[%s9250_s2 + $0x8] sm:$0x3] }
   0xe   : > { %6150 = vmatprep.subr.msk.bf16.mxu0 %vm590_vm0, %v6530_v0  ;;  %v6536_v1 = vsel %vm590_vm0, %v6530_v0, 0  ;;  %v5057_v3 = vld [vmem:[%s9250_s2 + $0x2] sm:$0x3]  ;;  %v289_v5 = vld [vmem:[%s9250_s2] sm:$0x3]  ;;  %vm535_vm1 = vcmask 31744  }
   0xf   : > { %5630 = vmatpush3.bf16.msra.mxu0 %v6536_v1  ;;  %s9328_s22 = smov (!%p242_p3, %s5050_s22), 1  ;;  %6147 = vmatprep.subr.msk.bf16.mxu1 %vm590_vm0, %v5057_v3  ;;  %v592_v4 = vsel %vm590_vm0, %v5057_v3, 0  ;;  %vm386_vm2 = vsmask.f32 7424  ;;  %vm993_vm3 = vcmask 1046528   ;;  %v1972_v20 = vsel %vm590_vm0, %v5171_v2, 0 }
  0x10   : > { %6152 = vmatprep.subr.msk.bf16.mxu0 %vm590_vm0, %v5171_v2  ;;  %5516 = vmatpush3.bf16.msra.mxu1 %v592_v4  ;;  %s6157_s7 = smul.u32 172, %s9328_s22  ;;  %v6586_v18 = vld [vmem:[%s9250_s2 + $0xa] sm:$0x3]  ;;  %v808_v55 = vsel %vm590_vm0, %v289_v5, 0  ;;  %vm1746_vm4 = vsmask.f32 6400 }
  0x11   : > { %6148 = vmatprep.subr.msk.bf16.mxu1 %vm590_vm0, %v289_v5  ;;  %vm2193_vm5 = vcmask 1045504   ;;  %vm2946_vm6 = vsmask.f32 5376  ;;  %vm3393_vm7 = vcmask 1044480   ;;  %s6158_s11 = smul.u32 288, %s9328_s22 }
  0x12   : > { %s6558_s10 = scalar_lea.vmem %s9248_s0, %s6157_s7 }
  0x13   : > { %v1301_v6 = vld [vmem:[%s6558_s10 + $0x8] sm:$0xe]  ;;  %v6562_v7 = vld [vmem:[%s6558_s10 + $0xc] sm:$0xf]  ;;  %v6568_v9 = vld [vmem:[%s6558_s10 + $0x10] sm:$0xff]   ;;  %s7831_s20 = scalar_lea.vmem %s9254_s6, %s6158_s11 }
  0x14   : > { %v6565_v8 = vcombine.low %v1301_v6, %v6562_v7  ;;  %v6571_v10 = vld [vmem:[%s6558_s10 + $0x18] sm:$0xff]   ;;  %v253_v11 = vld [vmem:[%s6558_s10] sm:$0xf]  ;;  %v1434_v13 = vrot.slane %v6568_v9, 1  ;;  %v254_v14 = vld [vmem:[%s6558_s10 + $0x4] sm:$0xf] }
  0x15   : > { %v1436_v15 = vrot.slane %v6571_v10, 1  ;;  %v6578_v16 = vcombine.low %v253_v11, %v254_v14  ;;  %v6581_v17 = vld [vmem:[%s6558_s10 + $0x8] sm:$0xff]   ;;  %v6591_v21 = vld [vmem:[%s6558_s10 + $0x10] sm:$0xff]   ;;  %v6599_v26 = vld [vmem:[%s6558_s10 + $0x20] sm:$0xff]  }
  0x16   : > { %v1433_v12 = vrot.slane %v6565_v8, 1  ;;  %v395_v25 = vshll.u32 %v6581_v17, 16  ;;  %v399_v27 = vshrl.u32 %v6581_v17, 16  ;;  %v403_v28 = vshll.u32 %v6591_v21, 16  ;;  %v6606_v32 = vld [vmem:[%s6558_s10 + $0x28] sm:$0xff]   ;;  %v6609_v34 = vld [vmem:[%s6558_s10 + $0x18] sm:$0xff]  }
  0x17   : > { %v1437_v22 = vsel %vm993_vm3, %v1434_v13, %v1436_v15  ;;  %v388_v23 = vshrl.u32 %v6578_v16, 16  ;;  %v390_v24 = vshll.u32 %v6578_v16, 16  ;;  %v1438_v31 = vrot.slane %v6599_v26, 1  ;;  %v6613_v36 = vld [vmem:[%s6558_s10 + $0x20] sm:$0xff]   ;;  %v6620_v41 = vld [vmem:[%s6558_s10 + $0x30] sm:$0xff]   ;;  %v6627_v46 = vld [vmem:[%s6558_s10 + $0x38] sm:$0xff]  }
  0x18   : > { %v1435_v19 = vsel %vm993_vm3, %v1433_v12, %v1434_v13  ;;  %v397_v30 = vrot.slane %v395_v25, 1  ;;  %v405_v33 = vrot.slane %v403_v28, 1  ;;  %v407_v35 = vshrl.u32 %v6591_v21, 16  ;;  %v6634_v51 = vld [vmem:[%s6558_s10 + $0x28] sm:$0xff]   ;;  %v6643_v58 = vld [vmem:[%s6558_s10 + $0x30] sm:$0xff]   ;;  %v6651_v2 = vld [vmem:[%s6558_s10 + $0x40] sm:$0xff]  }
  0x19   : > { %5631 = vmatprep.mubr.msk.bf16.mxu0 %vm535_vm1, %v1435_v19  ;;  %v392_v29 = vrot.slane %v390_v24, 1  ;;  %v1439_v39 = vsel %vm993_vm3, %v1436_v15, %v1438_v31  ;;  %v1440_v40 = vrot.slane %v6606_v32, 1  ;;  %v411_v43 = vshll.u32 %v6609_v34, 16  ;;  %v6657_v6 = vld [vmem:[%s6558_s10 + $0x48] sm:$0xff]   ;;  %v6661_v12 = vld [vmem:[%s6558_s10 + $0x38] sm:$0xff]   ;;  %v6667_v19 = vld [vmem:[%s6558_s10 + $0x40] sm:$0xff]  }
  0x1a   : > { %5632 = vmatmul.mubr.msk.bf16.vlgmr.msra.gmra.mrb[0].mxu0 %vm535_vm1, %v1437_v22  ;;  %v401_v38 = vor.u32 %v399_v27, %v397_v30  ;;  %v409_v42 = vor.u32 %v407_v35, %v405_v33  ;;  %v415_v44 = vshrl.u32 %v6609_v34, 16  ;;  %v419_v45 = vshll.u32 %v6613_v36, 16 }
  0x1b   : > { %5668 = vmatpush3.bf16.msra.mxu0 %v1972_v20  ;;  %v393_v37 = vor.u32 %v392_v29, %v388_v23  ;;  %5635 = vmatprep.mubr.msk.bf16.mxu0 %vm535_vm1, %v1439_v39  ;;  %v1441_v49 = vsel %vm993_vm3, %v1438_v31, %v1440_v40  ;;  %v1442_v50 = vrot.slane %v6620_v41, 1  ;;  %v413_v52 = vrot.slane %v411_v43, 1  ;;  %v6672_v23 = vld [vmem:[%s6558_s10 + $0x50] sm:$0xff]   ;;  %v6688_v39 = vld [vmem:[%s6558_s10 + $0x58] sm:$0xff]  }
  0x1c   : > { %6153 = vmatprep.subr.msk.bf16.mxu0 %vm590_vm0, %v6586_v18  ;;  %v406_v48 = vsel %vm386_vm2, %v401_v38, %v405_v33  ;;  %v421_v53 = vrot.slane %v419_v45, 1  ;;  %v423_v54 = vshrl.u32 %v6613_v36, 16  ;;  %v427_v57 = vshll.u32 %v6634_v51, 16  ;;  %v6682_v33 = vld [vmem:[%s6558_s10 + $0x48] sm:$0xff]   ;;  %9258 = vst [vmem:[#allocation2_spill] sm:$0xff] %v6688_v39 }
  0x1d   : > { %v398_v47 = vsel %vm386_vm2, %v393_v37, %v397_v30  ;;  %v1443_v56 = vsel %vm993_vm3, %v1440_v40, %v1442_v50  ;;  %v414_v59 = vsel %vm386_vm2, %v409_v42, %v413_v52  ;;  %v417_v60 = vor.u32 %v415_v44, %v413_v52  ;;  %v6698_v52 = vld [vmem:[%s6558_s10 + $0x50] sm:$0xff]  }
  0x1e   : > { %5517 = vmatprep.mubr.msk.bf16.mxu1 %vm535_vm1, %v398_v47  ;;  %v1444_v61 = vrot.slane %v6627_v46, 1  ;;  %v425_v62 = vor.u32 %v423_v54, %v421_v53  ;;  %v429_v63 = vrot.slane %v427_v57, 1  ;;  %v431_v3 = vshrl.u32 %v6634_v51, 16 }
  0x1f   : > { %5518 = vmatmul.mubr.msk.bf16.vlgmr.msra.gmra.mrb[0].mxu1 %vm535_vm1, %v406_v48  ;;  %v435_v4 = vshll.u32 %v6643_v58, 16  ;;  %v1446_v5 = vrot.slane %v6651_v2, 1  ;;  %v422_v11 = vsel %vm386_vm2, %v417_v60, %v421_v53  ;;  %v439_v15 = vshrl.u32 %v6643_v58, 16 }
  0x20   : > { %5521 = vmatprep.mubr.msk.bf16.mxu1 %vm535_vm1, %v414_v59  ;;  %5554 = vmatpush3.bf16.msra.mxu1 %v808_v55  ;;  %v1445_v13 = vsel %vm993_vm3, %v1442_v50, %v1444_v61  ;;  %v430_v14 = vsel %vm386_vm2, %v425_v62, %v429_v63  ;;  %v443_v22 = vshll.u32 %v6661_v12, 16  ;;  %v433_v24 = vor.u32 %v431_v3, %v429_v63 }
  0x21   : > { %v1447_v20 = vsel %vm993_vm3, %v1444_v61, %v1446_v5  ;;  %v437_v25 = vrot.slane %v435_v4, 1  ;;  %v1748_v27 = vshrl.u32 %v6565_v8, 16  ;;  %v1448_v28 = vrot.slane %v6657_v6, 1 }
  0x22   : > { %5636 = vmatmul.mubr.msk.bf16.gmra.mrb[4].mxu0 %vm535_vm1, %v1441_v49  ;;  %v451_v29 = vshll.u32 %v6667_v19, 16  ;;  %v445_v31 = vrot.slane %v443_v22, 1  ;;  %v1450_v35 = vrot.slane %v6672_v23, 1  ;;  %v447_v38 = vshrl.u32 %v6661_v12, 16 }
  0x23   : > { %5639 = vmatprep.mubr.msk.bf16.mxu0 %vm535_vm1, %v1443_v56  ;;  %v441_v30 = vor.u32 %v439_v15, %v437_v25  ;;  %v438_v37 = vsel %vm386_vm2, %v433_v24, %v437_v25  ;;  %v1750_v40 = vrot.slane %v1748_v27, 1  ;;  %v1751_v42 = vshll.u32 %v6565_v8, 16  ;;  %v6703_v56 = vld [vmem:[%s6558_s10 + $0x58] sm:$0xff]   ;;  %v6719_v24 = vld [vmem:[%s6558_s10 + $0x60] sm:$0xff]  }
  0x24   : > { %v453_v43 = vrot.slane %v451_v29, 1  ;;  %v455_v44 = vshrl.u32 %v6667_v19, 16  ;;  %v1756_v45 = vshrl.u32 %v6568_v9, 16  ;;  %v1759_v47 = vshll.u32 %v6568_v9, 16 }
  0x25   : > { %v1449_v48 = vsel %vm993_vm3, %v1446_v5, %v1448_v28  ;;  %v446_v49 = vsel %vm386_vm2, %v441_v30, %v445_v31  ;;  %v459_v50 = vshll.u32 %v6682_v33, 16  ;;  %v1451_v53 = vsel %vm993_vm3, %v1448_v28, %v1450_v35 }
  0x26   : > { %v1753_v54 = vrot.slane %v1751_v42, 2  ;;  %v1758_v55 = vrot.slane %v1756_v45, 1  ;;  %v1761_v8 = vrot.slane %v1759_v47, 2  ;;  %v449_v57 = vor.u32 %v447_v38, %v445_v31 }
  0x27   : > { %5522 = vmatmul.mubr.msk.bf16.gmra.mrb[4].mxu1 %vm535_vm1, %v422_v11  ;;  %v9255_v59 = vrot.slane %v6688_v39, 1  ;;  %v457_v60 = vor.u32 %v455_v44, %v453_v43  ;;  %v461_v61 = vrot.slane %v459_v50, 1  ;;  %v467_v62 = vshll.u32 %v6698_v52, 16 }
  0x28   : > { %5525 = vmatprep.mubr.msk.bf16.mxu1 %vm535_vm1, %v430_v14  ;;  %v1765_v63 = vshrl.u32 %v6571_v10, 16  ;;  %v1768_v3 = vshll.u32 %v6571_v10, 16  ;;  %v1754_v4 = vor.u32 %v1753_v54, %v1750_v40  ;;  %v1762_v5 = vor.u32 %v1761_v8, %v1758_v55 }
  0x29   : > { %v1774_v11 = vshrl.u32 %v6599_v26, 16  ;;  %v463_v14 = vshrl.u32 %v6682_v33, 16  ;;  %v475_v15 = vshll.u32 %v6703_v56, 16  ;;  %v471_v22 = vshrl.u32 %v6698_v52, 16 }
  0x2a   : > { %5640 = vmatmul.mubr.msk.bf16.gmra.mrb[8].mxu0 %vm535_vm1, %v1445_v13  ;;  %v1777_v13 = vshll.u32 %v6599_v26, 16  ;;  %v1453_v25 = vsel %vm993_vm3, %v1450_v35, %v9255_v59  ;;  %v462_v27 = vsel %vm386_vm2, %v457_v60, %v461_v61  ;;  %v1767_v28 = vrot.slane %v1765_v63, 1 }
  0x2b   : > { %5643 = vmatprep.mubr.msk.bf16.mxu0 %vm535_vm1, %v1447_v20  ;;  %v454_v20 = vsel %vm386_vm2, %v449_v57, %v453_v43  ;;  %v1770_v29 = vrot.slane %v1768_v3, 2  ;;  %v469_v30 = vrot.slane %v467_v62, 1  ;;  %v1763_v31 = vsel %vm1746_vm4, %v1754_v4, %v1762_v5  ;;  %v6728_v43 = vld [vmem:[%s6558_s10 + $0x68] sm:$0xff]   ;;  %v6743_v57 = vld [vmem:[%s6558_s10 + $0x70] sm:$0xff]  }
  0x2c   : > { %v1779_v38 = vrot.slane %v1777_v13, 2  ;;  %v465_v40 = vor.u32 %v463_v14, %v461_v61  ;;  %v477_v42 = vrot.slane %v475_v15, 1  ;;  %v483_v44 = vshll.u32 %v6719_v24, 16 }
  0x2d   : > { %v473_v35 = vor.u32 %v471_v22, %v469_v30  ;;  %v1783_v45 = vshrl.u32 %v6606_v32, 16  ;;  %v1771_v47 = vor.u32 %v1770_v29, %v1767_v28  ;;  %v2286_v55 = vsel %vm590_vm0, %v6586_v18, 0 }
  0x2e   : > { %v470_v54 = vsel %vm386_vm2, %v465_v40, %v469_v30  ;;  %v479_v8 = vshrl.u32 %v6703_v56, 16  ;;  %v485_v61 = vrot.slane %v483_v44, 1  ;;  %v487_v62 = vshrl.u32 %v6719_v24, 16  ;;  %v6763_v30 = vld [vmem:[%s6558_s10 + $0x78] sm:$0xff]   ;;  %v6776_v44 = vld [vmem:[%s9250_s2 + $0x4] sm:$0x3] }
  0x2f   : > { %5526 = vmatmul.mubr.msk.bf16.gmra.mrb[8].mxu1 %vm535_vm1, %v438_v37  ;;  %v1776_v37 = vrot.slane %v1774_v11, 1  ;;  %v478_v60 = vsel %vm386_vm2, %v473_v35, %v477_v42  ;;  %v491_v63 = vshll.u32 %v6728_v43, 16  ;;  %v1772_v3 = vsel %vm1746_vm4, %v1762_v5, %v1771_v47  ;;  %6149 = vmatprep.subr.msk.bf16.mxu1 %vm590_vm0, %v6776_v44 }
  0x30   : > { %5529 = vmatprep.mubr.msk.bf16.mxu1 %vm535_vm1, %v446_v49  ;;  %v1792_v49 = vshrl.u32 %v6620_v41, 16  ;;  %v1785_v4 = vrot.slane %v1783_v45, 1  ;;  %v499_v15 = vshll.u32 %v6743_v57, 16  ;;  %v481_v5 = vor.u32 %v479_v8, %v477_v42 }
  0x31   : > { %v1780_v50 = vor.u32 %v1779_v38, %v1776_v37  ;;  %v489_v22 = vor.u32 %v487_v62, %v485_v61  ;;  %v1804_v29 = vshll.u32 %v6627_v46, 16  ;;  %v495_v37 = vshrl.u32 %v6728_v43, 16 }
  0x32   : > { %5644 = vmatmul.mubr.msk.bf16.gmra.mrb[12].mxu0 %vm535_vm1, %v1449_v48  ;;  %v1786_v48 = vshll.u32 %v6606_v32, 16  ;;  %v1794_v13 = vrot.slane %v1792_v49, 1  ;;  %v1810_v40 = vshrl.u32 %v6651_v2, 16  ;;  %v1813_v42 = vshll.u32 %v6651_v2, 16 }
  0x33   : > { %5647 = vmatprep.mubr.msk.bf16.mxu0 %vm535_vm1, %v1451_v53  ;;  %v1795_v53 = vshll.u32 %v6620_v41, 16  ;;  %v1781_v14 = vsel %vm1746_vm4, %v1771_v47, %v1780_v50  ;;  %v501_v35 = vrot.slane %v499_v15, 1  ;;  %v486_v45 = vsel %vm386_vm2, %v481_v5, %v485_v61 }
  0x34   : > { %v1788_v11 = vrot.slane %v1786_v48, 2  ;;  %v503_v49 = vshrl.u32 %v6743_v57, 16  ;;  %v1812_v61 = vrot.slane %v1810_v40, 1 }
  0x35   : > { %v1797_v18 = vrot.slane %v1795_v53, 2 }
  0x36   : > { %v1789_v28 = vor.u32 %v1788_v11, %v1785_v4  ;;  %v1819_v4 = vshrl.u32 %v6657_v6, 16  ;;  %v1822_v11 = vshll.u32 %v6657_v6, 16  ;;  %v505_v15 = vor.u32 %v503_v49, %v501_v35 }
  0x37   : > { %5530 = vmatmul.mubr.msk.bf16.gmra.mrb[12].mxu1 %vm535_vm1, %v454_v20  ;;  %v6755_v20 = vld [vmem:[%s9250_s2 + $0xc] sm:$0x3]  ;;  %v1798_v38 = vor.u32 %v1797_v18, %v1794_v13  ;;  %v1828_v13 = vshrl.u32 %v6672_v23, 16 }
  0x38   : > { %5533 = vmatprep.mubr.msk.bf16.mxu1 %vm535_vm1, %v462_v27  ;;  %v1801_v27 = vshrl.u32 %v6627_v46, 16  ;;  %v1790_v53 = vsel %vm1746_vm4, %v1780_v50, %v1789_v28  ;;  %v6794_v50 = vld [vmem:[%s6558_s10 + $0x88] sm:$0xff]   ;;  %v1824_v40 = vrot.slane %v1822_v11, 2 }
  0x39   : > { %v1799_v62 = vsel %vm1746_vm4, %v1789_v28, %v1798_v38 }
  0x3a   : > { %5648 = vmatmul.mubr.msk.bf16.gmra.mrb[16].mxu0 %vm535_vm1, %v1453_v25  ;;  %v493_v25 = vrot.slane %v491_v63, 1  ;;  %v1803_v48 = vrot.slane %v1801_v27, 1  ;;  %v1815_v63 = vrot.slane %v1813_v42, 2 }
  0x3b   : > { %5669 = vmatprep.mubr.msk.bf16.mxu0 %vm535_vm1, %v1763_v31  ;;  %v6766_v31 = vld [vmem:[%s6558_s10 + $0x80] sm:$0xff]  }
  0x3c   : > { %v494_v47 = vsel %vm386_vm2, %v489_v22, %v493_v25  ;;  %v515_v8 = vshll.u32 %v6766_v31, 16  ;;  %v511_v22 = vshrl.u32 %v6763_v30, 16  ;;  %v1816_v28 = vor.u32 %v1815_v63, %v1812_v61 }
  0x3d   : > { %v519_v42 = vshrl.u32 %v6766_v31, 16 }
  0x3e   : > { %v517_v27 = vrot.slane %v515_v8, 1  ;;  %v1840_v8 = vshll.u32 %v6688_v39, 16 }
  0x3f   : > { %5534 = vmatmul.mubr.msk.bf16.gmra.mrb[16].mxu1 %vm535_vm1, %v470_v54  ;;  %v1806_v54 = vrot.slane %v1804_v29, 2  ;;  %v6804_v29 = vld [vmem:[%s6558_s10 + $0x60] sm:$0xff]  }
  0x40   : > { %5537 = vmatprep.mubr.msk.bf16.mxu1 %vm535_vm1, %v478_v60  ;;  %v497_v60 = vor.u32 %v495_v37, %v493_v25  ;;  %v1821_v37 = vrot.slane %v1819_v4, 1  ;;  %v1846_v61 = vshrl.u32 %v6804_v29, 16  ;;  %v521_v4 = vor.u32 %v519_v42, %v517_v27 }
  0x41   : > { %v1807_v18 = vor.u32 %v1806_v54, %v1803_v48  ;;  %v1830_v48 = vrot.slane %v1828_v13, 1  ;;  %v527_v13 = vshrl.u32 %v6794_v50, 16 }
  0x42   : > { %5670 = vmatmul.mubr.msk.bf16.vlgmr.msra.gmra.mrb[0].mxu0 %vm535_vm1, %v1772_v3  ;;  %v6788_v3 = vld [vmem:[%s6558_s10 + $0x90] ss:$0 sps:$4 sm:$0x11]   ;;  %v502_v25 = vsel %vm386_vm2, %v497_v60, %v501_v35  ;;  %v2187_v60 = vld [vmem:[%s6558_s10 + $0x8] sm:$0xc]  ;;  %v1825_v63 = vor.u32 %v1824_v40, %v1821_v37  ;;  %v1848_v37 = vrot.slane %v1846_v61, 1 }
  0x43   : > { %5706 = vmatpush3.bf16.msra.mxu0 %v2286_v55  ;;  %5673 = vmatprep.mubr.msk.bf16.mxu0 %vm535_vm1, %v1781_v14  ;;  %v507_v55 = vshll.u32 %v6763_v30, 16  ;;  %9259 = vst [vmem:[#allocation3_spill] sm:$0xff] %v6788_v3  ;;  %v1831_v14 = vshll.u32 %v6672_v23, 16  ;;  %v1808_v54 = vsel %vm1746_vm4, %v1798_v38, %v1807_v18  ;;  %v6825_v40 = vld [vmem:[%s6558_s10 + $0x68] sm:$0xff]   ;;  %v2211_v61 = vrot.slane %v6672_v23, 2 }
  0x44   : > { %6154 = vmatprep.subr.msk.bf16.mxu0 %vm590_vm0, %v6755_v20 }
  0x45   : > { %v509_v5 = vrot.slane %v507_v55, 1  ;;  %v1833_v49 = vrot.slane %v1831_v14, 2 }
  0x47   : > { %5538 = vmatmul.mubr.msk.bf16.gmra.mrb[20].mxu1 %vm535_vm1, %v486_v45  ;;  %v523_v45 = vshll.u32 %v6794_v50, 16  ;;  %v510_v35 = vsel %vm386_vm2, %v505_v15, %v509_v5  ;;  %v513_v55 = vor.u32 %v511_v22, %v509_v5  ;;  %v1834_v14 = vor.u32 %v1833_v49, %v1830_v48 }
  0x48   : > { %5541 = vmatprep.mubr.msk.bf16.mxu1 %vm535_vm1, %v494_v47  ;;  %v531_v47 = vshll.u32 %v6788_v3, 16  ;;  %v1842_v22 = vrot.slane %v1840_v8, 2  ;;  %v1826_v48 = vsel %vm1746_vm4, %v1816_v28, %v1825_v63 }
  0x49   : > { %v525_v11 = vrot.slane %v523_v45, 1  ;;  %v518_v5 = vsel %vm386_vm2, %v513_v55, %v517_v27  ;;  %v2195_v45 = vrot.slane %v6568_v9, 2  ;;  %v2201_v27 = vrot.slane %v6606_v32, 2 }
  0x4a   : > { %5674 = vmatmul.mubr.msk.bf16.gmra.mrb[4].mxu0 %vm535_vm1, %v1790_v53  ;;  %v1837_v53 = vshrl.u32 %v6688_v39, 16  ;;  %v533_v38 = vrot.slane %v531_v47, 1  ;;  %v2197_v47 = vrot.slane %v6571_v10, 2  ;;  %v2203_v9 = vrot.slane %v6620_v41, 2 }
  0x4b   : > { %5677 = vmatprep.mubr.msk.bf16.mxu0 %vm535_vm1, %v1799_v62  ;;  %v1817_v62 = vsel %vm1746_vm4, %v1807_v18, %v1816_v28  ;;  %v5192_v18 = vcombine.low %v2187_v60, %v6562_v7  ;;  %v526_v49 = vsel %vm386_vm2, %v521_v4, %v525_v11  ;;  %v2199_v7 = vrot.slane %v6599_v26, 2 }
  0x4c   : > { %v1839_v15 = vrot.slane %v1837_v53, 1  ;;  %v1835_v53 = vsel %vm1746_vm4, %v1825_v63, %v1834_v14  ;;  %v6841_v55 = vsel %vm2193_vm5, %v2195_v45, %v2197_v47  ;;  %v2205_v32 = vrot.slane %v6627_v46, 2 }
  0x4d   : > { %v2194_v42 = vrot.slane %v5192_v18, 2  ;;  %v6845_v28 = vsel %vm2193_vm5, %v2197_v47, %v2199_v7  ;;  %v6848_v26 = vsel %vm2193_vm5, %v2199_v7, %v2201_v27  ;;  %v6852_v8 = vsel %vm2193_vm5, %v2201_v27, %v2203_v9  ;;  %v6878_v18 = vld [vmem:[%s6558_s10 + $0x78] sm:$0xff]   ;;  %v6892_v7 = vld [vmem:[%s6558_s10 + $0x88] sm:$0xff]  }
  0x4e   : > { %v2207_v60 = vrot.slane %v6651_v2, 2  ;;  %v529_v41 = vor.u32 %v527_v13, %v525_v11  ;;  %v1843_v63 = vor.u32 %v1842_v22, %v1839_v15  ;;  %v6859_v4 = vsel %vm2193_vm5, %v2203_v9, %v2205_v32  ;;  %v6895_v27 = vld [vmem:[%s6558_s10 + $0x98] ss:$0 sps:$4 sm:$0x33]  }
  0x4f   : > { %5542 = vmatmul.mubr.msk.bf16.gmra.mrb[24].mxu1 %vm535_vm1, %v502_v25  ;;  %v1849_v25 = vshll.u32 %v6804_v29, 16  ;;  %v2213_v46 = vrot.slane %v6688_v39, 2  ;;  %v1855_v2 = vshrl.u32 %v6825_v40, 16  ;;  %v1858_v13 = vshll.u32 %v6825_v40, 16 }
  0x50   : > { %5545 = vmatprep.mubr.msk.bf16.mxu1 %vm535_vm1, %v510_v35  ;;  %v6838_v35 = vsel %vm2193_vm5, %v2194_v42, %v2195_v45  ;;  %v2215_v22 = vrot.slane %v6804_v29, 2  ;;  %v6886_v45 = vld [vmem:[%s6558_s10 + $0x80] sm:$0xff]   ;;  %v2217_v47 = vrot.slane %v6825_v40, 2  ;;  %v2221_v9 = vrot.slane %v6878_v18, 2 }
  0x51   : > { %v1851_v10 = vrot.slane %v1849_v25, 2 }
  0x52   : > { %5678 = vmatmul.mubr.msk.bf16.gmra.mrb[8].mxu0 %vm535_vm1, %v1808_v54  ;;  %v6835_v54 = vld [vmem:[%s6558_s10 + $0x70] sm:$0xff]  }
  0x53   : > { %5681 = vmatprep.mubr.msk.bf16.mxu0 %vm535_vm1, %v1817_v62  ;;  %v2209_v62 = vrot.slane %v6657_v6, 2  ;;  %v6866_v6 = vsel %vm2193_vm5, %v2205_v32, %v2207_v60  ;;  %v1864_v15 = vshrl.u32 %v6835_v54, 16  ;;  %v1852_v25 = vor.u32 %v1851_v10, %v1848_v37  ;;  %v6903_v32 = vld [vmem:[%s6558_s10 + $0x90] sm:$0xff]  }
  0x54   : > { %v1867_v42 = vshll.u32 %v6835_v54, 16  ;;  %v1844_v37 = vsel %vm1746_vm4, %v1834_v14, %v1843_v63  ;;  %v1857_v10 = vrot.slane %v1855_v2, 1  ;;  %v2225_v14 = vrot.slane %v6892_v7, 2 }
  0x55   : > { %v6869_v23 = vsel %vm2193_vm5, %v2207_v60, %v2209_v62  ;;  %v6872_v11 = vsel %vm2193_vm5, %v2209_v62, %v2211_v61  ;;  %v6906_v60 = vsel %vm2193_vm5, %v2215_v22, %v2217_v47  ;;  %v1853_v59 = vsel %vm1746_vm4, %v1843_v63, %v1852_v25 }
  0x56   : > { %v1869_v39 = vrot.slane %v1867_v42, 2  ;;  %v2227_v2 = vrot.slane %v6903_v32, 2 }
  0x57   : > { %5546 = vmatmul.mubr.msk.bf16.gmra.mrb[28].mxu1 %vm535_vm1, %v518_v5  ;;  %v6881_v5 = vsel %vm2193_vm5, %v2211_v61, %v2213_v46  ;;  %v1866_v61 = vrot.slane %v1864_v15, 1  ;;  %v1873_v15 = vshrl.u32 %v6878_v18, 16 }
  0x58   : > { %5549 = vmatprep.mubr.msk.bf16.mxu1 %vm535_vm1, %v526_v49  ;;  %v534_v49 = vsel %vm386_vm2, %v529_v41, %v533_v38  ;;  %v1860_v38 = vrot.slane %v1858_v13, 2  ;;  %v2229_v13 = vrot.slane %v6895_v27, 2 }
  0x5a   : > { %5682 = vmatmul.mubr.msk.bf16.gmra.mrb[12].mxu0 %vm535_vm1, %v1826_v48  ;;  %v2219_v48 = vrot.slane %v6835_v54, 2  ;;  %v1861_v42 = vor.u32 %v1860_v38, %v1857_v10 }
  0x5b   : > { %5685 = vmatprep.mubr.msk.bf16.mxu0 %vm535_vm1, %v1835_v53  ;;  %v6898_v53 = vsel %vm2193_vm5, %v2213_v46, %v2215_v22  ;;  %v2223_v46 = vrot.slane %v6886_v45, 2 }
  0x5c   : > { %v6909_v62 = vsel %vm2193_vm5, %v2217_v47, %v2219_v48  ;;  %v6912_v41 = vsel %vm2193_vm5, %v2219_v48, %v2221_v9  ;;  %v1876_v47 = vshll.u32 %v6878_v18, 16  ;;  %v6933_v48 = vsel %vm2193_vm5, %v2225_v14, %v2227_v2 }
  0x5d   : > { %v6920_v22 = vsel %vm2193_vm5, %v2221_v9, %v2223_v46  ;;  %v6928_v63 = vsel %vm2193_vm5, %v2223_v46, %v2225_v14  ;;  %v1870_v9 = vor.u32 %v1869_v39, %v1866_v61  ;;  %v1862_v3 = vsel %vm1746_vm4, %v1852_v25, %v1861_v42 }
  0x5e   : > { %9260 = vst [vmem:[#allocation4_spill] sm:$0xff] %v6928_v63  ;;  %v1875_v46 = vrot.slane %v1873_v15, 1  ;;  %v1878_v63 = vrot.slane %v1876_v47, 2  ;;  %v1086_v14 = vsel %vm590_vm0, %v6776_v44, 0  ;;  %v1891_v25 = vshrl.u32 %v6892_v7, 16 }
  0x5f   : > { %5550 = vmatmul.mubr.msk.bf16.gmra.mrb[32].mxu1 %vm535_vm1, %v534_v49  ;;  %v6936_v49 = vsel %vm2193_vm5, %v2227_v2, %v2229_v13  ;;  %v1894_v61 = vshll.u32 %v6892_v7, 16  ;;  %v1900_v13 = vshrl.u32 %v6903_v32, 16  ;;  %v1903_v44 = vshll.u32 %v6903_v32, 16 }
  0x60   : > { %5555 = vmatprep.mubr.msk.bf16.mxu1 %vm535_vm1, %v6578_v16  ;;  %v1885_v16 = vshll.u32 %v6886_v45, 16  ;;  %v1879_v39 = vor.u32 %v1878_v63, %v1875_v46  ;;  %v1454_v47 = vrot.slane %v6804_v29, 1 }
  0x61   : > { %v1902_v63 = vrot.slane %v1900_v13, 1 }
  0x62   : > { %5686 = vmatmul.mubr.msk.bf16.gmra.mrb[16].mxu0 %vm535_vm1, %v1844_v37  ;;  %v1882_v37 = vshrl.u32 %v6886_v45, 16  ;;  %v1887_v38 = vrot.slane %v1885_v16, 2  ;;  %v1912_v16 = vshll.u32 %v6895_v27, 16 }
  0x63   : > { %5689 = vmatprep.mubr.msk.bf16.mxu0 %vm535_vm1, %v1853_v59  ;;  %v1871_v59 = vsel %vm1746_vm4, %v1861_v42, %v1870_v9  ;;  %v1905_v42 = vrot.slane %v1903_v44, 2 }
  0x64   : > { %v1884_v10 = vrot.slane %v1882_v37, 1  ;;  %v1909_v37 = vshrl.u32 %v6895_v27, 16  ;;  %v1460_v27 = vrot.slane %v6878_v18, 1  ;;  %v1464_v18 = vrot.slane %v6892_v7, 1 }
  0x65   : > { %v1906_v46 = vor.u32 %v1905_v42, %v1902_v63 }
  0x66   : > { %v1888_v2 = vor.u32 %v1887_v38, %v1884_v10  ;;  %v1911_v38 = vrot.slane %v1909_v37, 1 }
  0x67   : > { %5556 = vmatmul.mubr.msk.bf16.vlgmr.msra.gmra.mrb[0].mxu1 %vm535_vm1, %v6581_v17  ;;  %v1880_v17 = vsel %vm1746_vm4, %v1870_v9, %v1879_v39 }
  0x68   : > { %5559 = vmatprep.mubr.msk.bf16.mxu1 %vm535_vm1, %v6591_v21  ;;  %5592 = vmatpush3.bf16.msra.mxu1 %v1086_v14  ;;  %v1896_v21 = vrot.slane %v1894_v61, 2  ;;  %v1889_v15 = vsel %vm1746_vm4, %v1879_v39, %v1888_v2  ;;  %v1914_v14 = vrot.slane %v1912_v16, 2 }
  0x69   : > { %6151 = vmatprep.subr.msk.bf16.mxu1 %vm590_vm0, %v6530_v0  ;;  %v1456_v0 = vrot.slane %v6825_v40, 1  ;;  %v1458_v40 = vrot.slane %v6835_v54, 1  ;;  %v1462_v54 = vrot.slane %v6886_v45, 1  ;;  %v7012_v45 = vld [vmem:[%s9250_s2 + $0xe] sm:$0x3] }
  0x6a   : > { %5690 = vmatmul.mubr.msk.bf16.gmra.mrb[20].mxu0 %vm535_vm1, %v1862_v3  ;;  %v1893_v3 = vrot.slane %v1891_v25, 1  ;;  %v1915_v25 = vor.u32 %v1914_v14, %v1911_v38  ;;  %v7111_v38 = vld [vmem:[%s6558_s10 + $0x20] sm:$0xff]  }
  0x6b   : > { %5693 = vmatprep.mubr.msk.bf16.mxu0 %vm535_vm1, %v1871_v59  ;;  %v6971_v59 = vsel %vm993_vm3, %v1454_v47, %v1456_v0  ;;  %v6984_v61 = vsel %vm993_vm3, %v1456_v0, %v1458_v40  ;;  %v7000_v44 = vsel %vm993_vm3, %v1460_v27, %v1462_v54 }
  0x6c   : > { %v1897_v9 = vor.u32 %v1896_v21, %v1893_v3  ;;  %v1916_v13 = vsel %vm1746_vm4, %v1906_v46, %v1915_v25  ;;  %v2725_v3 = vsel %vm590_vm0, %v6755_v20, 0 }
  0x6e   : > { %v1898_v10 = vsel %vm1746_vm4, %v1888_v2, %v1897_v9  ;;  %v1907_v39 = vsel %vm1746_vm4, %v1897_v9, %v1906_v46  ;;  %v6987_v2 = vsel %vm993_vm3, %v1458_v40, %v1460_v27  ;;  %v7096_v9 = vld [vmem:[%s6558_s10 + $0x18] sm:$0xff]  }
  0x6f   : > { %5560 = vmatmul.mubr.msk.bf16.gmra.mrb[4].mxu1 %vm535_vm1, %v6609_v34  ;;  %v2634_v16 = vrot.slane %v7096_v9, 2 }
  0x70   : > { %5563 = vmatprep.mubr.msk.bf16.mxu1 %vm535_vm1, %v6613_v36 }
  0x72   : > { %5694 = vmatmul.mubr.msk.bf16.gmra.mrb[24].mxu0 %vm535_vm1, %v1880_v17  ;;  %v7003_v17 = vsel %vm993_vm3, %v1462_v54, %v1464_v18  ;;  %v7130_v54 = vld [vmem:[%s6558_s10 + $0x30] sm:$0xff]  }
  0x73   : > { %5697 = vmatprep.mubr.msk.bf16.mxu0 %vm535_vm1, %v1889_v15 }
  0x77   : > { %5564 = vmatmul.mubr.msk.bf16.gmra.mrb[8].mxu1 %vm535_vm1, %v6634_v51 }
  0x78   : > { %5567 = vmatprep.mubr.msk.bf16.mxu1 %vm535_vm1, %v6643_v58 }
  0x7a   : > { %5698 = vmatmul.mubr.msk.bf16.gmra.mrb[28].mxu0 %vm535_vm1, %v1898_v10 }
  0x7b   : > { %5701 = vmatprep.mubr.msk.bf16.mxu0 %vm535_vm1, %v1907_v39  ;;  %v1015_v39 = vrot.slane %v6703_v56, 1 }
  0x7f   : > { %5568 = vmatmul.mubr.msk.bf16.gmra.mrb[12].mxu1 %vm535_vm1, %v6661_v12 }
  0x80   : > { %5571 = vmatprep.mubr.msk.bf16.mxu1 %vm535_vm1, %v6667_v19 }
  0x82   : > { %5702 = vmatmul.mubr.msk.bf16.gmra.mrb[32].mxu0 %vm535_vm1, %v1916_v13 }
  0x83   : > { %5707 = vmatprep.mubr.msk.bf16.mxu0 %vm535_vm1, %v6838_v35  ;;  %v1466_v35 = vrot.slane %v6903_v32, 1  ;;  %v2986_v32 = vshll.u32 %v7130_v54, 16 }
  0x85   : > { %v7026_v20 = vsel %vm993_vm3, %v1464_v18, %v1466_v35  ;;  %v7136_v18 = vld [vmem:[%s6558_s10 + $0x38] sm:$0xff]  }
  0x87   : > { %5572 = vmatmul.mubr.msk.bf16.gmra.mrb[16].mxu1 %vm535_vm1, %v6682_v33 }
  0x88   : > { %5575 = vmatprep.mubr.msk.bf16.mxu1 %vm535_vm1, %v6698_v52 }
  0x8a   : > { %5708 = vmatmul.mubr.msk.bf16.vlgmr.msra.gmra.mrb[0].mxu0 %vm535_vm1, %v6841_v55  ;;  %v987_v55 = vld [vmem:[%s6558_s10] sm:$0xe] }
  0x8b   : > { %5744 = vmatpush3.bf16.msra.mxu0 %v2725_v3  ;;  %5711 = vmatprep.mubr.msk.bf16.mxu0 %vm535_vm1, %v6845_v28  ;;  %v6471_v28 = vld [vmem:[%s6558_s10 + $0x4] sm:$0xf]  ;;  %v1017_v3 = vrot.slane %v6719_v24, 1 }
  0x8c   : > { %6155 = vmatprep.subr.msk.bf16.mxu0 %vm590_vm0, %v7012_v45 }
  0x8f   : > { %5576 = vmatmul.mubr.msk.bf16.gmra.mrb[20].mxu1 %vm535_vm1, %v6703_v56  ;;  %v7142_v56 = vld [vmem:[%s9250_s2 + $0x10] sm:$0x3] }
  0x90   : > { %5579 = vmatprep.mubr.msk.bf16.mxu1 %vm535_vm1, %v6719_v24  ;;  %v7157_v24 = vld [vmem:[%s6558_s10 + $0x40] sm:$0xff]  }
  0x92   : > { %5712 = vmatmul.mubr.msk.bf16.gmra.mrb[4].mxu0 %vm535_vm1, %v6848_v26  ;;  %v5114_v26 = vcombine.low %v987_v55, %v6471_v28  ;;  %v1019_v55 = vrot.slane %v6728_v43, 1  ;;  %v2642_v28 = vrot.slane %v7136_v18, 2 }
  0x93   : > { %5715 = vmatprep.mubr.msk.bf16.mxu0 %vm535_vm1, %v6852_v8 }
  0x94   : > { %v994_v8 = vrot.slane %v5114_v26, 1  ;;  %v1018_v26 = vsel %vm993_vm3, %v1015_v39, %v1017_v3 }
  0x97   : > { %5580 = vmatmul.mubr.msk.bf16.gmra.mrb[24].mxu1 %vm535_vm1, %v6728_v43  ;;  %v1021_v43 = vrot.slane %v6743_v57, 1 }
  0x98   : > { %5583 = vmatprep.mubr.msk.bf16.mxu1 %vm535_vm1, %v6743_v57 }
  0x9a   : > { %5716 = vmatmul.mubr.msk.bf16.gmra.mrb[8].mxu0 %vm535_vm1, %v6859_v4  ;;  %v6472_v4 = vld [vmem:[%s6558_s10 + $0x8] sm:$0xff]  }
  0x9b   : > { %5719 = vmatprep.mubr.msk.bf16.mxu0 %vm535_vm1, %v6866_v6  ;;  %v995_v7 = vrot.slane %v6472_v4, 1  ;;  %v1020_v4 = vsel %vm993_vm3, %v1017_v3, %v1019_v55 }
  0x9d   : > { %v996_v6 = vsel %vm993_vm3, %v994_v8, %v995_v7 }
  0x9f   : > { %5584 = vmatmul.mubr.msk.bf16.gmra.mrb[28].mxu1 %vm535_vm1, %v6763_v30 }
  0xa0   : > { %5587 = vmatprep.mubr.msk.bf16.mxu1 %vm535_vm1, %v6766_v31 }
  0xa2   : > { %5720 = vmatmul.mubr.msk.bf16.gmra.mrb[12].mxu0 %vm535_vm1, %v6869_v23  ;;  %v6473_v23 = vld [vmem:[%s6558_s10 + $0x10] sm:$0xff]  }
  0xa3   : > { %5723 = vmatprep.mubr.msk.bf16.mxu0 %vm535_vm1, %v6872_v11  ;;  %v997_v21 = vrot.slane %v6473_v23, 1  ;;  %v999_v11 = vrot.slane %v6609_v34, 1  ;;  %v1003_v34 = vrot.slane %v6634_v51, 1  ;;  %v1007_v51 = vrot.slane %v6661_v12, 1 }
  0xa4   : > { %v1009_v12 = vrot.slane %v6667_v19, 1  ;;  %v7115_v19 = vld [vmem:[%s6558_s10 + $0x28] sm:$0xff]   ;;  %v2644_v23 = vrot.slane %v7157_v24, 2 }
  0xa5   : > { %v998_v15 = vsel %vm993_vm3, %v995_v7, %v997_v21  ;;  %v1000_v63 = vsel %vm993_vm3, %v997_v21, %v999_v11  ;;  %v2638_v40 = vrot.slane %v7115_v19, 2  ;;  %v1023_v21 = vrot.slane %v6763_v30, 1 }
  0xa6   : > { %v1010_v46 = vsel %vm993_vm3, %v1007_v51, %v1009_v12  ;;  %v1025_v30 = vrot.slane %v6766_v31, 1 }
  0xa7   : > { %5588 = vmatmul.mubr.msk.bf16.gmra.mrb[32].mxu1 %vm535_vm1, %v6794_v50 }
  0xa8   : > { %5593 = vmatprep.mubr.msk.bf16.mxu1 %vm535_vm1, %v996_v6  ;;  %v7161_v6 = vld [vmem:[%s6558_s10 + $0x48] sm:$0xff]  }
  0xaa   : > { %5724 = vmatmul.mubr.msk.bf16.gmra.mrb[16].mxu0 %vm535_vm1, %v6881_v5  ;;  %v1001_v5 = vrot.slane %v6613_v36, 1  ;;  %v1005_v36 = vrot.slane %v6643_v58, 1  ;;  %v9261_v58 = vld [vmem:[#allocation4_spill] sm:$0xff] }
  0xab   : > { %5727 = vmatprep.mubr.msk.bf16.mxu0 %vm535_vm1, %v6898_v53 }
  0xac   : > { %v1002_v53 = vsel %vm993_vm3, %v999_v11, %v1001_v5  ;;  %v1004_v42 = vsel %vm993_vm3, %v1001_v5, %v1003_v34  ;;  %v1008_v0 = vsel %vm993_vm3, %v1005_v36, %v1007_v51  ;;  %v2646_v11 = vrot.slane %v7161_v6, 2 }
  0xad   : > { %v1024_v5 = vsel %vm993_vm3, %v1021_v43, %v1023_v21 }
  0xae   : > { %v2647_v57 = vsel %vm2193_vm5, %v2644_v23, %v2646_v11 }
  0xaf   : > { %5594 = vmatmul.mubr.msk.bf16.vlgmr.msra.gmra.mrb[0].mxu1 %vm535_vm1, %v998_v15  ;;  %v1022_v15 = vsel %vm993_vm3, %v1019_v55, %v1021_v43  ;;  %v2956_v43 = vshrl.u32 %v7096_v9, 16 }
  0xb0   : > { %5597 = vmatprep.mubr.msk.bf16.mxu1 %vm535_vm1, %v1000_v63  ;;  %5858 = vmatpush3.bf16.msra.mxu1 %v6536_v1  ;;  %v7088_v1 = vld [vmem:[%s6558_s10 + $0x14] sm:$0xf]  ;;  %v2645_v63 = vsel %vm2193_vm5, %v2642_v28, %v2644_v23  ;;  %v2959_v23 = vshll.u32 %v7096_v9, 16 }
  0xb2   : > { %5728 = vmatmul.mubr.msk.bf16.gmra.mrb[20].mxu0 %vm535_vm1, %v6906_v60  ;;  %v2501_v60 = vld [vmem:[%s6558_s10 + $0x10] sm:$0xc] }
  0xb3   : > { %5731 = vmatprep.mubr.msk.bf16.mxu0 %vm535_vm1, %v6909_v62  ;;  %v1006_v62 = vsel %vm993_vm3, %v1003_v34, %v1005_v36  ;;  %v7175_v34 = vld [vmem:[%s6558_s10 + $0x50] sm:$0xff]   ;;  %v1027_v36 = vrot.slane %v6794_v50, 1  ;;  %v9262_v50 = vld [vmem:[#allocation3_spill] sm:$0xff] }
  0xb7   : > { %5598 = vmatmul.mubr.msk.bf16.gmra.mrb[4].mxu1 %vm535_vm1, %v1002_v53  ;;  %v7179_v53 = vld [vmem:[%s6558_s10 + $0x58] sm:$0xff]  }
  0xb8   : > { %5601 = vmatprep.mubr.msk.bf16.mxu1 %vm535_vm1, %v1004_v42  ;;  %v2648_v42 = vrot.slane %v7175_v34, 2  ;;  %v2650_v51 = vrot.slane %v7179_v53, 2 }
  0xba   : > { %5732 = vmatmul.mubr.msk.bf16.gmra.mrb[24].mxu0 %vm535_vm1, %v6912_v41  ;;  %v7093_v41 = vcombine.low %v2501_v60, %v7088_v1  ;;  %v1026_v60 = vsel %vm993_vm3, %v1023_v21, %v1025_v30  ;;  %v2651_v31 = vsel %vm2193_vm5, %v2648_v42, %v2650_v51 }
  0xbb   : > { %5735 = vmatprep.mubr.msk.bf16.mxu0 %vm535_vm1, %v6920_v22  ;;  %v1011_v22 = vrot.slane %v6682_v33, 1  ;;  %v1013_v33 = vrot.slane %v6698_v52, 1 }
  0xbc   : > { %v2633_v37 = vrot.slane %v7093_v41, 2 }
  0xbd   : > { %v1012_v10 = vsel %vm993_vm3, %v1009_v12, %v1011_v22  ;;  %v1014_v27 = vsel %vm993_vm3, %v1011_v22, %v1013_v33  ;;  %v1016_v13 = vsel %vm993_vm3, %v1013_v33, %v1015_v39  ;;  %v7197_v12 = vld [vmem:[%s6558_s10 + $0x68] sm:$0xff]   ;;  %v1029_v22 = vrot.slane %v9262_v50, 1  ;;  %v7214_v39 = vld [vmem:[%s6558_s10 + $0x70] sm:$0xff]  }
  0xbe   : > { %v2635_v14 = vsel %vm2193_vm5, %v2633_v37, %v2634_v16  ;;  %v2656_v29 = vrot.slane %v7214_v39, 2 }
  0xbf   : > { %5602 = vmatmul.mubr.msk.bf16.gmra.mrb[8].mxu1 %vm535_vm1, %v1006_v62  ;;  %v2649_v62 = vsel %vm2193_vm5, %v2646_v11, %v2648_v42  ;;  %v2965_v42 = vshrl.u32 %v7111_v38, 16 }
  0xc0   : > { %5605 = vmatprep.mubr.msk.bf16.mxu1 %vm535_vm1, %v1008_v0  ;;  %v1028_v0 = vsel %vm993_vm3, %v1025_v30, %v1027_v36 }
  0xc2   : > { %5736 = vmatmul.mubr.msk.bf16.gmra.mrb[28].mxu0 %vm535_vm1, %v9261_v58  ;;  %v7193_v58 = vld [vmem:[%s6558_s10 + $0x60] sm:$0xff]  }
  0xc3   : > { %5739 = vmatprep.mubr.msk.bf16.mxu0 %vm535_vm1, %v6933_v48  ;;  %v2636_v48 = vrot.slane %v7111_v38, 2  ;;  %v2652_v37 = vrot.slane %v7193_v58, 2 }
  0xc5   : > { %v2637_v25 = vsel %vm2193_vm5, %v2634_v16, %v2636_v48  ;;  %v2639_v52 = vsel %vm2193_vm5, %v2636_v48, %v2638_v40  ;;  %v2654_v16 = vrot.slane %v7197_v12, 2 }
  0xc7   : > { %5606 = vmatmul.mubr.msk.bf16.gmra.mrb[12].mxu1 %vm535_vm1, %v1010_v46  ;;  %v1030_v46 = vsel %vm993_vm3, %v1027_v36, %v1029_v22  ;;  %v2968_v36 = vshll.u32 %v7111_v38, 16 }
  0xc8   : > { %5609 = vmatprep.mubr.msk.bf16.mxu1 %vm535_vm1, %v1012_v10  ;;  %v2653_v10 = vsel %vm2193_vm5, %v2650_v51, %v2652_v37 }
  0xc9   : > { %v2970_v50 = vrot.slane %v2968_v36, 3 }
  0xca   : > { %5740 = vmatmul.mubr.msk.bf16.gmra.mrb[32].mxu0 %vm535_vm1, %v6936_v49  ;;  %v3172_v49 = vsel %vm590_vm0, %v7012_v45, 0  ;;  %v2640_v45 = vrot.slane %v7130_v54, 2 }
  0xcb   : > { %5745 = vmatprep.mubr.msk.bf16.mxu0 %vm535_vm1, %v2635_v14  ;;  %v9263_v14 = vld [vmem:[#allocation2_spill] sm:$0xff] }
  0xcc   : > { %v2641_v8 = vsel %vm2193_vm5, %v2638_v40, %v2640_v45  ;;  %v2643_v7 = vsel %vm2193_vm5, %v2640_v45, %v2642_v28  ;;  %v9264_v33 = vrot.slane %v9263_v14, 1  ;;  %v2655_v40 = vsel %vm2193_vm5, %v2652_v37, %v2654_v16  ;;  %v7244_v28 = vld [vmem:[%s6558_s10 + $0x90] sm:$0xff]  }
  0xcd   : > { %v2992_v14 = vshrl.u32 %v7136_v18, 16 }
  0xce   : > { %v1455_v48 = vsel %vm993_vm3, %v9264_v33, %v1454_v47  ;;  %v2995_v33 = vshll.u32 %v7136_v18, 16 }
  0xcf   : > { %5610 = vmatmul.mubr.msk.bf16.gmra.mrb[16].mxu1 %vm535_vm1, %v1014_v27  ;;  %v7218_v27 = vld [vmem:[%s6558_s10 + $0x78] sm:$0xff]  }
  0xd0   : > { %5613 = vmatprep.mubr.msk.bf16.mxu1 %vm535_vm1, %v1016_v13  ;;  %v2658_v47 = vrot.slane %v7218_v27, 2  ;;  %v7228_v13 = vld [vmem:[%s6558_s10 + $0x80] sm:$0xff]  }
  0xd1   : > { %v2660_v3 = vrot.slane %v7228_v13, 2 }
  0xd2   : > { %5746 = vmatmul.mubr.msk.bf16.vlgmr.msra.gmra.mrb[0].mxu0 %vm535_vm1, %v2637_v25  ;;  %v2657_v25 = vsel %vm2193_vm5, %v2654_v16, %v2656_v29 }
  0xd3   : > { %5782 = vmatpush3.bf16.msra.mxu0 %v3172_v49  ;;  %5749 = vmatprep.mubr.msk.bf16.mxu0 %vm535_vm1, %v2639_v52  ;;  %v2659_v49 = vsel %vm2193_vm5, %v2656_v29, %v2658_v47  ;;  %v7232_v52 = vld [vmem:[%s6558_s10 + $0x88] sm:$0xff]   ;;  %v2661_v55 = vsel %vm2193_vm5, %v2658_v47, %v2660_v3  ;;  %v2988_v29 = vrot.slane %v2986_v32, 3  ;;  %v3486_v47 = vsel %vm590_vm0, %v7142_v56, 0 }
  0xd4   : > { %6156 = vmatprep.subr.msk.bf16.mxu0 %vm590_vm0, %v7142_v56  ;;  %v2662_v45 = vrot.slane %v7232_v52, 2 }
  0xd7   : > { %5614 = vmatmul.mubr.msk.bf16.gmra.mrb[20].mxu1 %vm535_vm1, %v1018_v26  ;;  %v7247_v26 = vld [vmem:[%s6558_s10 + $0x98] sm:$0xff]  }
  0xd8   : > { %5617 = vmatprep.mubr.msk.bf16.mxu1 %vm535_vm1, %v1020_v4  ;;  %v2948_v4 = vshrl.u32 %v7093_v41, 16 }
  0xda   : > { %5750 = vmatmul.mubr.msk.bf16.gmra.mrb[4].mxu0 %vm535_vm1, %v2641_v8  ;;  %v2666_v8 = vrot.slane %v7247_v26, 2 }
  0xdb   : > { %5753 = vmatprep.mubr.msk.bf16.mxu0 %vm535_vm1, %v2643_v7  ;;  %v2951_v7 = vshll.u32 %v7093_v41, 16 }
  0xdf   : > { %5618 = vmatmul.mubr.msk.bf16.gmra.mrb[24].mxu1 %vm535_vm1, %v1022_v15  ;;  %v2950_v15 = vrot.slane %v2948_v4, 2  ;;  %v3013_v4 = vshll.u32 %v7161_v6, 16 }
  0xe0   : > { %5621 = vmatprep.mubr.msk.bf16.mxu1 %vm535_vm1, %v1024_v5  ;;  %v2958_v5 = vrot.slane %v2956_v43, 2 }
  0xe2   : > { %5754 = vmatmul.mubr.msk.bf16.gmra.mrb[8].mxu0 %vm535_vm1, %v2645_v63  ;;  %v2953_v63 = vrot.slane %v2951_v7, 3 }
  0xe3   : > { %5757 = vmatprep.mubr.msk.bf16.mxu0 %vm535_vm1, %v2647_v57  ;;  %v2961_v57 = vrot.slane %v2959_v23, 3 }
  0xe4   : > { %v2954_v51 = vor.u32 %v2953_v63, %v2950_v15  ;;  %v3022_v15 = vshll.u32 %v7175_v34, 16 }
  0xe7   : > { %5622 = vmatmul.mubr.msk.bf16.gmra.mrb[28].mxu1 %vm535_vm1, %v1026_v60  ;;  %v2962_v60 = vor.u32 %v2961_v57, %v2958_v5  ;;  %v3028_v5 = vshrl.u32 %v7179_v53, 16  ;;  %v3031_v57 = vshll.u32 %v7179_v53, 16 }
  0xe8   : > { %5625 = vmatprep.mubr.msk.bf16.mxu1 %vm535_vm1, %v1028_v0  ;;  %v2977_v0 = vshll.u32 %v7115_v19, 16 }
  0xe9   : > { %v2963_v22 = vsel %vm2946_vm6, %v2954_v51, %v2962_v60  ;;  %v3030_v51 = vrot.slane %v3028_v5, 2  ;;  %v3094_v5 = vshll.u32 %v7244_v28, 16 }
  0xea   : > { %5758 = vmatmul.mubr.msk.bf16.gmra.mrb[12].mxu0 %vm535_vm1, %v2649_v62  ;;  %v2974_v62 = vshrl.u32 %v7115_v19, 16  ;;  %v2979_v16 = vrot.slane %v2977_v0, 3  ;;  %v3037_v0 = vshrl.u32 %v7193_v58, 16 }
  0xeb   : > { %5761 = vmatprep.mubr.msk.bf16.mxu0 %vm535_vm1, %v2651_v31  ;;  %v2967_v31 = vrot.slane %v2965_v42, 2  ;;  %v3024_v42 = vrot.slane %v3022_v15, 3 }
  0xec   : > { %v2976_v37 = vrot.slane %v2974_v62, 2 }
  0xef   : > { %5626 = vmatmul.mubr.msk.bf16.gmra.mrb[32].mxu1 %vm535_vm1, %v1030_v46  ;;  %v2971_v46 = vor.u32 %v2970_v50, %v2967_v31  ;;  %v3046_v31 = vshrl.u32 %v7197_v12, 16  ;;  %v3049_v50 = vshll.u32 %v7197_v12, 16 }
  0xf0   : > { %5651 = vmatprep.mubr.msk.bf16.mxu1 %vm535_vm1, %v1455_v48 }
  0xf1   : > { %v2972_v48 = vsel %vm2946_vm6, %v2962_v60, %v2971_v46  ;;  %v3033_v60 = vrot.slane %v3031_v57, 3  ;;  %v3051_v32 = vrot.slane %v3049_v50, 3 }
  0xf2   : > { %5762 = vmatmul.mubr.msk.bf16.gmra.mrb[16].mxu0 %vm535_vm1, %v2653_v10  ;;  %v2983_v10 = vshrl.u32 %v7130_v54, 16 }
  0xf3   : > { %5765 = vmatprep.mubr.msk.bf16.mxu0 %vm535_vm1, %v2655_v40 }
  0xf4   : > { %v2985_v40 = vrot.slane %v2983_v10, 2  ;;  %v3048_v10 = vrot.slane %v3046_v31, 2 }
  0xf7   : > { %5652 = vmatmul.mubr.msk.bf16.vlgmr.msra.gmra.mrb[20].mxu1 %vm535_vm1, %v6971_v59  ;;  %v2663_v59 = vsel %vm2193_vm5, %v2660_v3, %v2662_v45  ;;  %v2997_v3 = vrot.slane %v2995_v33, 3  ;;  %v3058_v33 = vshll.u32 %v7214_v39, 16 }
  0xf8   : > { %5655 = vmatprep.mubr.msk.bf16.mxu1 %vm535_vm1, %v6984_v61  ;;  %v2664_v61 = vrot.slane %v7244_v28, 2 }
  0xfa   : > { %5766 = vmatmul.mubr.msk.bf16.gmra.mrb[20].mxu0 %vm535_vm1, %v2657_v25  ;;  %v2665_v21 = vsel %vm2193_vm5, %v2662_v45, %v2664_v61  ;;  %v2667_v11 = vsel %vm2193_vm5, %v2664_v61, %v2666_v8  ;;  %v2989_v45 = vor.u32 %v2988_v29, %v2985_v40  ;;  %v3064_v40 = vshrl.u32 %v7218_v27, 16 }
  0xfb   : > { %5769 = vmatprep.mubr.msk.bf16.mxu0 %vm535_vm1, %v2659_v49  ;;  %v2994_v49 = vrot.slane %v2992_v14, 2  ;;  %v3055_v14 = vshrl.u32 %v7214_v39, 16  ;;  %v3067_v29 = vshll.u32 %v7218_v27, 16 }
  0xfd   : > { %v2998_v61 = vor.u32 %v2997_v3, %v2994_v49  ;;  %v3060_v49 = vrot.slane %v3058_v33, 3 }
  0xff   : > { %5656 = vmatmul.mubr.msk.bf16.gmra.mrb[24].mxu1 %vm535_vm1, %v6987_v2  ;;  %v6226_v2 = vld [vmem:[%s6558_s10 + $0x98] ss:$0 sps:$4 sm:$0x11]   ;;  %v2999_v23 = vsel %vm2946_vm6, %v2989_v45, %v2998_v61 }
 0x100   : > { %5659 = vmatprep.mubr.msk.bf16.mxu1 %vm535_vm1, %v7000_v44  ;;  %v6228_v44 = vld [vmem:[%s6558_s10 + $0xa0] ss:$0 sps:$4 sm:$0x33]   ;;  %v1468_v41 = vrot.slane %v6226_v2, 1 }
 0x101   : > { %v2668_v30 = vrot.slane %v6228_v44, 2  ;;  %v3019_v44 = vshrl.u32 %v7175_v34, 16 }
 0x102   : > { %5770 = vmatmul.mubr.msk.bf16.gmra.mrb[24].mxu0 %vm535_vm1, %v2661_v55  ;;  %v3001_v55 = vshrl.u32 %v7157_v24, 16 }
 0x103   : > { %5773 = vmatprep.mubr.msk.bf16.mxu0 %vm535_vm1, %v2663_v59  ;;  %v3004_v59 = vshll.u32 %v7157_v24, 16 }
 0x104   : > { %v3003_v7 = vrot.slane %v3001_v55, 2  ;;  %v3069_v55 = vrot.slane %v3067_v29, 3 }
 0x105   : > { %v3006_v43 = vrot.slane %v3004_v59, 3 }
 0x107   : > { %5660 = vmatmul.mubr.msk.bf16.gmra.mrb[28].mxu1 %vm535_vm1, %v7003_v17  ;;  %v1469_v17 = vsel %vm993_vm3, %v1466_v35, %v1468_v41  ;;  %v2980_v35 = vor.u32 %v2979_v16, %v2976_v37  ;;  %v3039_v37 = vrot.slane %v3037_v0, 2 }
 0x108   : > { %5663 = vmatprep.mubr.msk.bf16.mxu1 %vm535_vm1, %v7026_v20  ;;  %v2669_v20 = vsel %vm2193_vm5, %v2666_v8, %v2668_v30  ;;  %v3010_v8 = vshrl.u32 %v7161_v6, 16  ;;  %v3021_v30 = vrot.slane %v3019_v44, 2 }
 0x109   : > { %v2981_v25 = vsel %vm2946_vm6, %v2971_v46, %v2980_v35  ;;  %v2990_v56 = vsel %vm2946_vm6, %v2980_v35, %v2989_v45  ;;  %v3066_v45 = vrot.slane %v3064_v40, 2 }
 0x10a   : > { %5774 = vmatmul.mubr.msk.bf16.gmra.mrb[28].mxu0 %vm535_vm1, %v2665_v21  ;;  %v3012_v2 = vrot.slane %v3010_v8, 2  ;;  %v3015_v21 = vrot.slane %v3013_v4, 3  ;;  %v3025_v62 = vor.u32 %v3024_v42, %v3021_v30  ;;  %v3076_v8 = vshll.u32 %v7228_v13, 16 }
 0x10b   : > { %5777 = vmatprep.mubr.msk.bf16.mxu0 %vm535_vm1, %v2667_v11  ;;  %v3007_v11 = vor.u32 %v3006_v43, %v3003_v7  ;;  %v3070_v4 = vor.u32 %v3069_v55, %v3066_v45  ;;  %v3085_v7 = vshll.u32 %v7232_v52, 16  ;;  %v3103_v30 = vshll.u32 %v7247_v26, 16 }
 0x10c   : > { %v3016_v63 = vor.u32 %v3015_v21, %v3012_v2  ;;  %v3078_v2 = vrot.slane %v3076_v8, 3  ;;  %v3407_v8 = vrot.slane %v7161_v6, 3  ;;  %v6240_v6 = vld [vmem:[%s9252_s4 + $0x30] ss:$8 sps:$4 sm:$0xff]  }
 0x10d   : > { %v3008_v41 = vsel %vm2946_vm6, %v2998_v61, %v3007_v11  ;;  %v3073_v61 = vshrl.u32 %v7228_v13, 16  ;;  %v3087_v44 = vrot.slane %v3085_v7, 3  ;;  %v6242_v7 = vld [vmem:[%s9252_s4 + $0x34] ss:$8 sps:$4 sm:$0xff]  }
 0x10e   : > { %v3017_v36 = vsel %vm2946_vm6, %v3007_v11, %v3016_v63 }
 0x10f   : > { %5664 = vmatmul.mubr.msk.bf16.gmra.mrb[32].mxu1 %vm535_vm1, %v1469_v17  ;;  %v3040_v17 = vshll.u32 %v7193_v58, 16 }
 0x111   : > { %v3042_v16 = vrot.slane %v3040_v17, 3  ;;  %v3105_v17 = vrot.slane %v3103_v30, 3  ;;  %v3419_v30 = vrot.slane %v7218_v27, 3  ;;  %v3423_v27 = vrot.slane %v7232_v52, 3 }
 0x112   : > { %5778 = vmatmul.mubr.msk.bf16.gmra.mrb[32].mxu0 %vm535_vm1, %v2669_v20  ;;  %v3034_v20 = vor.u32 %v3033_v60, %v3030_v51  ;;  %v3096_v51 = vrot.slane %v3094_v5, 3  ;;  %v7340_v60 = vld [vmem:[%s6558_s10 + $0xa0] ss:$0 sps:$4 sm:$0x77]  }
 0x113   : > { %5783 = vmatprep.mubr.msk.bf16.mxu0 %vm535_vm1, %v2963_v22  ;;  %v3026_v22 = vsel %vm2946_vm6, %v3016_v63, %v3025_v62  ;;  %v3043_v35 = vor.u32 %v3042_v16, %v3039_v37  ;;  %v3091_v63 = vshrl.u32 %v7244_v28, 16  ;;  %v3109_v31 = vshrl.u32 %v7340_v60, 16  ;;  %v3387_v37 = vld [vmem:[%s6558_s10 + $0x10] sm:$0x8] }
 0x114   : > { %v3035_v46 = vsel %vm2946_vm6, %v3025_v62, %v3034_v20  ;;  %v3112_v50 = vshll.u32 %v7340_v60, 16 }
 0x11a   : > { %5784 = vmatmul.mubr.msk.bf16.vlgmr.msra.gmra.mrb[0].mxu0 %vm535_vm1, %v2972_v48  ;;  %v3052_v48 = vor.u32 %v3051_v32, %v3048_v10  ;;  %v3114_v10 = vrot.slane %v3112_v50, 3 }
 0x11b   : > { %5820 = vmatpush3.bf16.msra.mxu0 %v3486_v47  ;;  %5787 = vmatprep.mubr.msk.bf16.mxu0 %vm535_vm1, %v2981_v25  ;;  %v3044_v47 = vsel %vm2946_vm6, %v3034_v20, %v3043_v35  ;;  %v3057_v25 = vrot.slane %v3055_v14, 2 }
 0x11c   : > { %v3053_v3 = vsel %vm2946_vm6, %v3043_v35, %v3052_v48  ;;  %v5270_v35 = vcombine.low %v3387_v37, %v7088_v1  ;;  %v3399_v1 = vrot.slane %v7115_v19, 3  ;;  %v6233_v19 = vld [vmem:[%s9252_s4 + $0x4] ss:$8 sps:$4 sm:$0xff]  }
 0x11d   : > { %v3061_v59 = vor.u32 %v3060_v49, %v3057_v25  ;;  %3906 = vmatprep.subr.bf16.mxu1 %v6233_v19 }
 0x11e   : > { %v3394_v33 = vrot.slane %v5270_v35, 3 }
 0x11f   : > { %v3062_v43 = vsel %vm2946_vm6, %v3052_v48, %v3061_v59  ;;  %v3071_v21 = vsel %vm2946_vm6, %v3061_v59, %v3070_v4  ;;  %v3395_v48 = vrot.slane %v7096_v9, 3  ;;  %v3401_v9 = vrot.slane %v7130_v54, 3  ;;  %v6236_v59 = vld [vmem:[%s9252_s4 + $0x14] ss:$8 sps:$4 sm:$0xff]   ;;  %v6234_v54 = vld [vmem:[%s9252_s4 + $0x10] ss:$8 sps:$4 sm:$0xff]  }
 0x121   : > { %v3396_v29 = vsel %vm3393_vm7, %v3394_v33, %v3395_v48  ;;  %v3402_v45 = vsel %vm3393_vm7, %v3399_v1, %v3401_v9 }
 0x122   : > { %5788 = vmatmul.mubr.msk.bf16.gmra.mrb[4].mxu0 %vm535_vm1, %v2990_v56  ;;  %v3082_v56 = vshrl.u32 %v7232_v52, 16  ;;  %v3427_v52 = vrot.slane %v7247_v26, 3 }
 0x123   : > { %5791 = vmatprep.mubr.msk.bf16.mxu0 %vm535_vm1, %v2999_v23  ;;  %v3075_v23 = vrot.slane %v3073_v61, 2  ;;  %v6239_v61 = vld [vmem:[%s9252_s4 + $0x24] ss:$8 sps:$4 sm:$0xff]  }
 0x124   : > { %v3084_v11 = vrot.slane %v3082_v56, 2 }
 0x125   : > { %v3079_v15 = vor.u32 %v3078_v2, %v3075_v23  ;;  %v6245_v23 = vld [vmem:[%s9252_s4 + $0x44] ss:$8 sps:$4 sm:$0xff]   ;;  %v3411_v2 = vrot.slane %v7179_v53, 3  ;;  %v6246_v53 = vld [vmem:[%s9252_s4 + $0x50] ss:$8 sps:$4 sm:$0xff]  }
 0x126   : > { %v3088_v57 = vor.u32 %v3087_v44, %v3084_v11  ;;  %v6248_v44 = vld [vmem:[%s9252_s4 + $0x54] ss:$8 sps:$4 sm:$0xff]  }
 0x127   : > { %v3080_v42 = vsel %vm2946_vm6, %v3070_v4, %v3079_v15  ;;  %v6237_v4 = vld [vmem:[%s9252_s4 + $0x20] ss:$8 sps:$4 sm:$0xff]  }
 0x128   : > { %v3089_v62 = vsel %vm2946_vm6, %v3079_v15, %v3088_v57  ;;  %v3413_v15 = vrot.slane %v7193_v58, 3 }
 0x12a   : > { %5792 = vmatmul.mubr.msk.bf16.gmra.mrb[8].mxu0 %vm535_vm1, %v3008_v41  ;;  %v3100_v41 = vshrl.u32 %v7247_v26, 16  ;;  %v3414_v5 = vsel %vm3393_vm7, %v3411_v2, %v3413_v15 }
 0x12b   : > { %5795 = vmatprep.mubr.msk.bf16.mxu0 %vm535_vm1, %v3017_v36  ;;  %v3093_v36 = vrot.slane %v3091_v63, 2  ;;  %v3415_v63 = vrot.slane %v7197_v12, 3 }
 0x12c   : > { %v3102_v0 = vrot.slane %v3100_v41, 2  ;;  %v3417_v41 = vrot.slane %v7214_v39, 3  ;;  %v3421_v39 = vrot.slane %v7228_v13, 3  ;;  %v3425_v13 = vrot.slane %v7244_v28, 3 }
 0x12d   : > { %v3097_v20 = vor.u32 %v3096_v51, %v3093_v36  ;;  %v3429_v28 = vrot.slane %v7340_v60, 3  ;;  %v6251_v60 = vld [vmem:[%s9252_s4 + $0x64] ss:$8 sps:$4 sm:$0xff]  }
 0x12e   : > { %v3418_v12 = vsel %vm3393_vm7, %v3415_v63, %v3417_v41  ;;  %v3428_v35 = vsel %vm3393_vm7, %v3425_v13, %v3427_v52 }
 0x12f   : > { %v3098_v16 = vsel %vm2946_vm6, %v3088_v57, %v3097_v20  ;;  %v3416_v57 = vsel %vm3393_vm7, %v3413_v15, %v3415_v63 }
 0x132   : > { %5796 = vmatmul.mubr.msk.bf16.gmra.mrb[12].mxu0 %vm535_vm1, %v3026_v22  ;;  %v3106_v22 = vor.u32 %v3105_v17, %v3102_v0 }
 0x133   : > { %5799 = vmatprep.mubr.msk.bf16.mxu0 %vm535_vm1, %v3035_v46  ;;  %v3111_v46 = vrot.slane %v3109_v31, 2  ;;  %v3422_v31 = vsel %vm3393_vm7, %v3419_v30, %v3421_v39 }
 0x134   : > { %v3107_v32 = vsel %vm2946_vm6, %v3097_v20, %v3106_v22 }
 0x135   : > { %v3115_v14 = vor.u32 %v3114_v10, %v3111_v46  ;;  %v3426_v10 = vsel %vm3393_vm7, %v3423_v27, %v3425_v13 }
 0x137   : > { %v3116_v40 = vsel %vm2946_vm6, %v3106_v22, %v3115_v14  ;;  %v3424_v22 = vsel %vm3393_vm7, %v3421_v39, %v3423_v27 }
 0x13a   : > { %5800 = vmatmul.mubr.msk.bf16.gmra.mrb[16].mxu0 %vm535_vm1, %v3044_v47  ;;  %v3397_v47 = vrot.slane %v7111_v38, 3  ;;  %v6231_v38 = vld [vmem:[%s9252_s4] ss:$8 sps:$4 sm:$0xff]  }
 0x13b   : > { %5803 = vmatprep.mubr.msk.bf16.mxu0 %vm535_vm1, %v3053_v3  ;;  %v3403_v3 = vrot.slane %v7136_v18, 3  ;;  %3907 = vmatpush1.bf16.msra.mxu1 %v6231_v38  ;;  %v3405_v18 = vrot.slane %v7157_v24, 3 }
 0x13c   : > { %v3398_v25 = vsel %vm3393_vm7, %v3395_v48, %v3397_v47  ;;  %v3400_v49 = vsel %vm3393_vm7, %v3397_v47, %v3399_v1  ;;  %3908 = vmatprep.subr.bf16.mxu1 %v6236_v59  ;;  %v3430_v48 = vsel %vm3393_vm7, %v3427_v52, %v3429_v28 }
 0x13d   : > { %v3404_v55 = vsel %vm3393_vm7, %v3401_v9, %v3403_v3  ;;  %v3406_v56 = vsel %vm3393_vm7, %v3403_v3, %v3405_v18  ;;  %v3408_v24 = vsel %vm3393_vm7, %v3405_v18, %v3407_v8  ;;  %v6254_v9 = vld [vmem:[%s9252_s4 + $0x74] ss:$8 sps:$4 sm:$0xff]   ;;  %v6252_v3 = vld [vmem:[%s9252_s4 + $0x70] ss:$8 sps:$4 sm:$0xff]  }
 0x13f   : > { %3909 = vmatpush1.bf16.msra.mxu1 %v6234_v54 }
 0x140   : > { %3910 = vmatprep.subr.bf16.mxu1 %v6239_v61 }
 0x142   : > { %5804 = vmatmul.mubr.msk.bf16.gmra.mrb[20].mxu0 %vm535_vm1, %v3062_v43  ;;  %v3409_v43 = vrot.slane %v7175_v34, 3 }
 0x143   : > { %5807 = vmatprep.mubr.msk.bf16.mxu0 %vm535_vm1, %v3071_v21  ;;  %3911 = vmatpush1.bf16.msra.mxu1 %v6237_v4  ;;  %v6243_v21 = vld [vmem:[%s9252_s4 + $0x40] ss:$8 sps:$4 sm:$0xff]  }
 0x144   : > { %3912 = vmatprep.subr.bf16.mxu1 %v6242_v7  ;;  %v3410_v11 = vsel %vm3393_vm7, %v3407_v8, %v3409_v43  ;;  %v3412_v34 = vsel %vm3393_vm7, %v3409_v43, %v3411_v2 }
 0x147   : > { %3913 = vmatpush1.bf16.msra.mxu1 %v6240_v6 }
 0x148   : > { %3914 = vmatprep.subr.bf16.mxu1 %v6245_v23 }
 0x14a   : > { %5808 = vmatmul.mubr.msk.bf16.gmra.mrb[24].mxu0 %vm535_vm1, %v3080_v42 }
 0x14b   : > { %5811 = vmatprep.mubr.msk.bf16.mxu0 %vm535_vm1, %v3089_v62  ;;  %3915 = vmatpush1.bf16.msra.mxu1 %v6243_v21  ;;  %v3420_v62 = vsel %vm3393_vm7, %v3417_v41, %v3419_v30 }
 0x14c   : > { %3916 = vmatprep.subr.bf16.mxu1 %v6248_v44 }
 0x14f   : > { %3917 = vmatpush1.bf16.msra.mxu1 %v6246_v53 }
 0x150   : > { %3918 = vmatprep.subr.bf16.mxu1 %v6251_v60 }
 0x152   : > { %5812 = vmatmul.mubr.msk.bf16.gmra.mrb[28].mxu0 %vm535_vm1, %v3098_v16 }
 0x153   : > { %5815 = vmatprep.mubr.msk.bf16.mxu0 %vm535_vm1, %v3107_v32 }
 0x15a   : > { %5816 = vmatmul.mubr.msk.bf16.gmra.mrb[32].mxu0 %vm535_vm1, %v3116_v40 }
 0x15b   : > { %5821 = vmatprep.mubr.msk.bf16.mxu0 %vm535_vm1, %v3396_v29 }
 0x162   : > { %5822 = vmatmul.mubr.msk.bf16.vlgmr.msra.gmra.mrb[0].mxu0 %vm535_vm1, %v3398_v25 }
 0x163   : > { %5825 = vmatprep.mubr.msk.bf16.mxu0 %vm535_vm1, %v3400_v49  ;;  %v6249_v49 = vld [vmem:[%s9252_s4 + $0x60] ss:$8 sps:$4 sm:$0xff]  }
 0x164   : > { %3919 = vmatpush1.bf16.msra.mxu1 %v6249_v49 }
 0x165   : > { %3920 = vmatprep.subr.bf16.mxu1 %v6254_v9 }
 0x168   : > { %3921 = vmatpush1.bf16.msra.mxu1 %v6252_v3 }
 0x16a   : > { %5826 = vmatmul.mubr.msk.bf16.gmra.mrb[4].mxu0 %vm535_vm1, %v3402_v45  ;;  %v6482_v45 = vmov 0  }
 0x16b   : > { %5829 = vmatprep.mubr.msk.bf16.mxu0 %vm535_vm1, %v3404_v55  ;;  %3938 = vmatprep.mubr.bf16.mxu1 %v6482_v45 }
 0x172   : > { %5830 = vmatmul.mubr.msk.bf16.gmra.mrb[8].mxu0 %vm535_vm1, %v3406_v56 }
 0x173   : > { %5833 = vmatprep.mubr.msk.bf16.mxu0 %vm535_vm1, %v3408_v24 }
 0x17a   : > { %5834 = vmatmul.mubr.msk.bf16.gmra.mrb[12].mxu0 %vm535_vm1, %v3410_v11  ;;  %v7533_v11 = vld [vmem:[%s9251_s3] ss:$0 sm:$0xff] }
 0x17b   : > { %5837 = vmatprep.mubr.msk.bf16.mxu0 %vm535_vm1, %v3412_v34 }
 0x182   : > { %5838 = vmatmul.mubr.msk.bf16.gmra.mrb[16].mxu0 %vm535_vm1, %v3414_v5  ;;  %v7426_v42 = vpop.f32.mrb[0].mxu1 }
 0x183   : > { %5841 = vmatprep.mubr.msk.bf16.mxu0 %vm535_vm1, %v3416_v57  ;;  %v7428_v36 = vpop.f32.mrb[1].mxu1 }
 0x184   : > { %v7430_v58 = vpop.f32.mrb[2].mxu1 }
 0x185   : > { %v7433_v51 = vpop.f32.mrb[3].mxu1 }
 0x18a   : > { %5842 = vmatmul.mubr.msk.bf16.gmra.mrb[20].mxu0 %vm535_vm1, %v3418_v12  ;;  %v7440_v0 = vpop.f32.mrb[4].mxu1 }
 0x18b   : > { %5845 = vmatprep.mubr.msk.bf16.mxu0 %vm535_vm1, %v3420_v62  ;;  %v7442_v17 = vpop.f32.mrb[5].mxu1 }
 0x18c   : > { %v7444_v20 = vpop.f32.mrb[6].mxu1 }
 0x18d   : > { %v7447_v50 = vpop.f32.mrb[7].mxu1 }
 0x192   : > { %5846 = vmatmul.mubr.msk.bf16.gmra.mrb[24].mxu0 %vm535_vm1, %v3422_v31  ;;  %v7454_v37 = vpop.f32.mrb[8].mxu1 }
 0x193   : > { %5849 = vmatprep.mubr.msk.bf16.mxu0 %vm535_vm1, %v3424_v22  ;;  %v7456_v16 = vpop.f32.mrb[9].mxu1 }
 0x194   : > { %v7458_v46 = vpop.f32.mrb[10].mxu1 }
 0x195   : > { %v7461_v32 = vpop.f32.mrb[11].mxu1 }
 0x19a   : > { %5850 = vmatmul.mubr.msk.bf16.gmra.mrb[28].mxu0 %vm535_vm1, %v3426_v10  ;;  %v7467_v14 = vpop.f32.mrb[12].mxu1 }
 0x19b   : > { %5853 = vmatprep.mubr.msk.bf16.mxu0 %vm535_vm1, %v3428_v35  ;;  %v7469_v26 = vpop.f32.mrb[13].mxu1 }
 0x19c   : > { %v7471_v33 = vpop.f32.mrb[14].mxu1 }
 0x19d   : > { %v7474_v40 = vpop.f32.mrb[15].mxu1 }
 0x1a2   : > { %5854 = vmatmul.mubr.msk.bf16.gmra.mrb[32].mxu0 %vm535_vm1, %v3430_v48  ;;  %v7477_v29 = vpop.f32.mrb[16].mxu1 }
 0x1a3   : > { %v7479_v47 = vpop.f32.mrb[17].mxu1 }
 0x1a4   : > { %v7481_v1 = vpop.f32.mrb[18].mxu1 }
 0x1a5   : > { %v7483_v25 = vpop.f32.mrb[19].mxu1 }
 0x1ca   : > { %v7498_v38 = vpop.f32.mrb[20].mxu1 }
 0x1cb   : > { %v7500_v19 = vpop.f32.mrb[21].mxu1 }
 0x1cc   : > { %v7502_v55 = vpop.f32.mrb[22].mxu1 }
 0x1cd   : > { %v7504_v59 = vpop.f32.mrb[23].mxu1 }
 0x1d2   : > { %v7506_v54 = vpop.f32.mrb[24].mxu1 }
 0x1d3   : > { %v7508_v18 = vpop.f32.mrb[25].mxu1 }
 0x1d4   : > { %v7510_v61 = vpop.f32.mrb[26].mxu1 }
 0x1d5   : > { %v7512_v8 = vpop.f32.mrb[27].mxu1 }
 0x1da   : > { %v7514_v4 = vpop.f32.mrb[28].mxu1 }
 0x1db   : > { %v7516_v56 = vpop.f32.mrb[29].mxu1 }
 0x1dc   : > { %v7518_v7 = vpop.f32.mrb[30].mxu1 }
 0x1dd   : > { %v7520_v24 = vpop.f32.mrb[31].mxu1 }
 0x1e2   : > { %v7522_v6 = vpop.f32.mrb[32].mxu1 }
 0x1e3   : > { %v7524_v43 = vpop.f32.mrb[33].mxu1 }
 0x1e4   : > { %v7526_v23 = vpop.f32.mrb[34].mxu1 }
 0x1e5   : > { %v7528_v2 = vpop.f32.mrb[35].mxu1 }
 0x235   : > { %v5823_v21 = vpop.f32.mrb[0].mxu0 }
 0x236   : > { %v5859_v44 = vadd.f32 %v5823_v21, %v7426_v42  ;;  %v3522_v34 = vpop.f32.mrb[1].mxu0 }
 0x237   : > { %v5860_v53 = vadd.f32 %v3522_v34, %v7428_v36  ;;  %v5824_v15 = vpop.f32.mrb[2].mxu0 }
 0x238   : > { %v3710_v63 = vadd.f32 %v5859_v44, %v7533_v11  ;;  %v5861_v5 = vadd.f32 %v5824_v15, %v7430_v58  ;;  %v3525_v57 = vpop.f32.mrb[3].mxu0 }
 0x239   : > { %v3708_v41 = vadd.f32 %v5860_v53, %v7533_v11  ;;  %v5862_v30 = vadd.f32 %v3525_v57, %v7433_v51 }
 0x23a   : > { %v3711_v12 = vadd.f32 %v5861_v5, %v7533_v11  ;;  %v3746_v39 = vmax.f32 %v3710_v63, 0.0 }
 0x23b   : > { %v3709_v62 = vadd.f32 %v5862_v30, %v7533_v11  ;;  %v3744_v42 = vmax.f32 %v3708_v41, 0.0 }
 0x23c   : > { %v3747_v27 = vmax.f32 %v3711_v12, 0.0 }
 0x23d   : > { %v3745_v31 = vmax.f32 %v3709_v62, 0.0  ;;  %v5827_v22 = vpop.f32.mrb[4].mxu0 }
 0x23e   : > { %v5863_v36 = vadd.f32 %v5827_v22, %v7440_v0  ;;  %v3538_v13 = vpop.f32.mrb[5].mxu0  ;;  %v3781_v52 = vpack.c.bf16 %v3747_v27, %v3746_v39 }
 0x23f   : > { %v3780_v10 = vpack.c.bf16 %v3745_v31, %v3744_v42  ;;  %v5864_v58 = vadd.f32 %v3538_v13, %v7442_v17  ;;  %v5828_v35 = vpop.f32.mrb[6].mxu0 }
 0x240   : > { %v3714_v28 = vadd.f32 %v5863_v36, %v7533_v11  ;;  %v5865_v51 = vadd.f32 %v5828_v35, %v7444_v20  ;;  %v3541_v48 = vpop.f32.mrb[7].mxu0 }
 0x241   : > { %v3712_v60 = vadd.f32 %v5864_v58, %v7533_v11  ;;  %v5866_v49 = vadd.f32 %v3541_v48, %v7447_v50  ;;  %3939 = vmatmul.mubr.bf16.vlgmr.msra.gmra.mrb[36].mxu1 %v3780_v10 }
 0x242   : > { %v3715_v9 = vadd.f32 %v5865_v51, %v7533_v11  ;;  %3948 = vmatprep.mubr.bf16.mxu1 %v6482_v45  ;;  %v3750_v3 = vmax.f32 %v3714_v28, 0.0 }
 0x243   : > { %v3713_v0 = vadd.f32 %v5866_v49, %v7533_v11  ;;  %v3748_v17 = vmax.f32 %v3712_v60, 0.0 }
 0x244   : > { %v3751_v21 = vmax.f32 %v3715_v9, 0.0 }
 0x245   : > { %v3749_v44 = vmax.f32 %v3713_v0, 0.0  ;;  %v5831_v34 = vpop.f32.mrb[8].mxu0 }
 0x246   : > { %v5867_v53 = vadd.f32 %v5831_v34, %v7454_v37  ;;  %v3554_v20 = vpop.f32.mrb[9].mxu0  ;;  %v3783_v15 = vpack.c.bf16 %v3751_v21, %v3750_v3 }
 0x247   : > { %v5868_v63 = vadd.f32 %v3554_v20, %v7456_v16  ;;  %v5832_v5 = vpop.f32.mrb[10].mxu0  ;;  %v3782_v50 = vpack.c.bf16 %v3749_v44, %v3748_v17 }
 0x248   : > { %v3718_v57 = vadd.f32 %v5867_v53, %v7533_v11  ;;  %v5869_v41 = vadd.f32 %v5832_v5, %v7458_v46  ;;  %v3557_v30 = vpop.f32.mrb[11].mxu0 }
 0x249   : > { %v3716_v12 = vadd.f32 %v5868_v63, %v7533_v11  ;;  %v5870_v62 = vadd.f32 %v3557_v30, %v7461_v32  ;;  %3949 = vmatmul.mubr.bf16.gmra.mrb[40].mxu1 %v3781_v52 }
 0x24a   : > { %v3719_v39 = vadd.f32 %v5869_v41, %v7533_v11  ;;  %3958 = vmatprep.mubr.bf16.mxu1 %v6482_v45  ;;  %v3754_v27 = vmax.f32 %v3718_v57, 0.0 }
 0x24b   : > { %v3717_v37 = vadd.f32 %v5870_v62, %v7533_v11  ;;  %v3752_v42 = vmax.f32 %v3716_v12, 0.0 }
 0x24c   : > { %v3755_v16 = vmax.f32 %v3719_v39, 0.0 }
 0x24d   : > { %v3753_v31 = vmax.f32 %v3717_v37, 0.0  ;;  %v5835_v22 = vpop.f32.mrb[12].mxu0 }
 0x24e   : > { %v5871_v36 = vadd.f32 %v5835_v22, %v7467_v14  ;;  %v3570_v46 = vpop.f32.mrb[13].mxu0  ;;  %v7562_v13 = vpack.c.bf16 %v3755_v16, %v3754_v27 }
 0x24f   : > { %v5872_v10 = vadd.f32 %v3570_v46, %v7469_v26  ;;  %v5836_v32 = vpop.f32.mrb[14].mxu0  ;;  %v3784_v52 = vpack.c.bf16 %v3753_v31, %v3752_v42 }
 0x250   : > { %v3722_v58 = vadd.f32 %v5871_v36, %v7533_v11  ;;  %v5873_v35 = vadd.f32 %v5836_v32, %v7471_v33  ;;  %v3573_v28 = vpop.f32.mrb[15].mxu0 }
 0x251   : > { %v3720_v51 = vadd.f32 %v5872_v10, %v7533_v11  ;;  %v5874_v48 = vadd.f32 %v3573_v28, %v7474_v40  ;;  %3959 = vmatmul.mubr.bf16.gmra.mrb[44].mxu1 %v3782_v50 }
 0x252   : > { %v3723_v60 = vadd.f32 %v5873_v35, %v7533_v11  ;;  %3968 = vmatprep.mubr.bf16.mxu1 %v6482_v45  ;;  %v3758_v49 = vmax.f32 %v3722_v58, 0.0 }
 0x253   : > { %v3721_v14 = vadd.f32 %v5874_v48, %v7533_v11  ;;  %v3756_v9 = vmax.f32 %v3720_v51, 0.0 }
 0x254   : > { %v3759_v26 = vmax.f32 %v3723_v60, 0.0 }
 0x255   : > { %v3757_v0 = vmax.f32 %v3721_v14, 0.0  ;;  %v5839_v3 = vpop.f32.mrb[16].mxu0 }
 0x256   : > { %v5875_v21 = vadd.f32 %v5839_v3, %v7477_v29  ;;  %v3586_v33 = vpop.f32.mrb[17].mxu0  ;;  %v7573_v17 = vpack.c.bf16 %v3759_v26, %v3758_v49 }
 0x257   : > { %v5876_v44 = vadd.f32 %v3586_v33, %v7479_v47  ;;  %v5840_v40 = vpop.f32.mrb[18].mxu0  ;;  %v7576_v34 = vpack.c.bf16 %v3757_v0, %v3756_v9 }
 0x258   : > { %v3726_v53 = vadd.f32 %v5875_v21, %v7533_v11  ;;  %v5877_v20 = vadd.f32 %v5840_v40, %v7481_v1  ;;  %v3589_v63 = vpop.f32.mrb[19].mxu0 }
 0x259   : > { %v3724_v5 = vadd.f32 %v5876_v44, %v7533_v11  ;;  %v5878_v50 = vadd.f32 %v3589_v63, %v7483_v25  ;;  %3969 = vmatmul.mubr.bf16.gmra.mrb[48].mxu1 %v3783_v15 }
 0x25a   : > { %v3727_v29 = vadd.f32 %v5877_v20, %v7533_v11  ;;  %3978 = vmatprep.mubr.bf16.mxu1 %v6482_v45  ;;  %v3762_v47 = vmax.f32 %v3726_v53, 0.0 }
 0x25b   : > { %v3725_v57 = vadd.f32 %v5878_v50, %v7533_v11  ;;  %v3760_v30 = vmax.f32 %v3724_v5, 0.0 }
 0x25c   : > { %v3763_v41 = vmax.f32 %v3727_v29, 0.0 }
 0x25d   : > { %v3761_v12 = vmax.f32 %v3725_v57, 0.0  ;;  %v5843_v62 = vpop.f32.mrb[20].mxu0 }
 0x25e   : > { %v5879_v39 = vadd.f32 %v5843_v62, %v7498_v38  ;;  %v3602_v1 = vpop.f32.mrb[21].mxu0  ;;  %v7586_v37 = vpack.c.bf16 %v3763_v41, %v3762_v47 }
 0x25f   : > { %v5880_v27 = vadd.f32 %v3602_v1, %v7500_v19  ;;  %v5844_v25 = vpop.f32.mrb[22].mxu0  ;;  %v7589_v15 = vpack.c.bf16 %v3761_v12, %v3760_v30 }
 0x260   : > { %v3730_v16 = vadd.f32 %v5879_v39, %v7533_v11  ;;  %v5881_v42 = vadd.f32 %v5844_v25, %v7502_v55  ;;  %v3605_v31 = vpop.f32.mrb[23].mxu0 }
 0x261   : > { %v3728_v22 = vadd.f32 %v5880_v27, %v7533_v11  ;;  %v5882_v36 = vadd.f32 %v3605_v31, %v7504_v59  ;;  %3979 = vmatmul.mubr.bf16.gmra.mrb[52].mxu1 %v3784_v52 }
 0x262   : > { %v3731_v38 = vadd.f32 %v5881_v42, %v7533_v11  ;;  %3988 = vmatprep.mubr.bf16.mxu1 %v6482_v45  ;;  %v3766_v19 = vmax.f32 %v3730_v16, 0.0 }
 0x263   : > { %v3729_v46 = vadd.f32 %v5882_v36, %v7533_v11  ;;  %v3764_v32 = vmax.f32 %v3728_v22, 0.0 }
 0x264   : > { %v3767_v10 = vmax.f32 %v3731_v38, 0.0 }
 0x265   : > { %v3765_v58 = vmax.f32 %v3729_v46, 0.0  ;;  %v5847_v35 = vpop.f32.mrb[24].mxu0 }
 0x266   : > { %v5883_v28 = vadd.f32 %v5847_v35, %v7506_v54  ;;  %v3618_v55 = vpop.f32.mrb[25].mxu0  ;;  %v7599_v51 = vpack.c.bf16 %v3767_v10, %v3766_v19 }
 0x267   : > { %v5884_v48 = vadd.f32 %v3618_v55, %v7508_v18  ;;  %v5848_v59 = vpop.f32.mrb[26].mxu0  ;;  %v3790_v52 = vpack.c.bf16 %v3765_v58, %v3764_v32 }
 0x268   : > { %v3734_v60 = vadd.f32 %v5883_v28, %v7533_v11  ;;  %v5885_v14 = vadd.f32 %v5848_v59, %v7510_v61  ;;  %v3621_v49 = vpop.f32.mrb[27].mxu0 }
 0x269   : > { %v3732_v26 = vadd.f32 %v5884_v48, %v7533_v11  ;;  %v5886_v9 = vadd.f32 %v3621_v49, %v7512_v8  ;;  %3989 = vmatmul.mubr.bf16.gmra.mrb[56].mxu1 %v7562_v13 }
 0x26a   : > { %v3735_v54 = vadd.f32 %v5885_v14, %v7533_v11  ;;  %3998 = vmatprep.mubr.bf16.mxu1 %v6482_v45  ;;  %v3770_v18 = vmax.f32 %v3734_v60, 0.0 }
 0x26b   : > { %v3733_v0 = vadd.f32 %v5886_v9, %v7533_v11  ;;  %v3768_v21 = vmax.f32 %v3732_v26, 0.0 }
 0x26c   : > { %v3771_v3 = vmax.f32 %v3735_v54, 0.0 }
 0x26d   : > { %v3769_v33 = vmax.f32 %v3733_v0, 0.0  ;;  %v5851_v44 = vpop.f32.mrb[28].mxu0 }
 0x26e   : > { %v5887_v61 = vadd.f32 %v5851_v44, %v7514_v4  ;;  %v3634_v40 = vpop.f32.mrb[29].mxu0  ;;  %v3793_v53 = vpack.c.bf16 %v3771_v3, %v3770_v18  ;;  %v7665_v18 = vld [vmem:[%s9249_s1] sm:$0xff] }
 0x26f   : > { %v5888_v20 = vadd.f32 %v3634_v40, %v7516_v56  ;;  %v5852_v8 = vpop.f32.mrb[30].mxu0  ;;  %v3792_v63 = vpack.c.bf16 %v3769_v33, %v3768_v21  ;;  %vm4695_vm8 = vcmp.gt.f32.partialorder %v7665_v18, 0.5 }
 0x270   : > { %v3738_v13 = vadd.f32 %v5887_v61, %v7533_v11  ;;  %v5889_v5 = vadd.f32 %v5852_v8, %v7518_v7  ;;  %v3637_v50 = vpop.f32.mrb[31].mxu0 }
 0x271   : > { %v3736_v29 = vadd.f32 %v5888_v20, %v7533_v11  ;;  %v5890_v57 = vadd.f32 %v3637_v50, %v7520_v24  ;;  %3999 = vmatmul.mubr.bf16.gmra.mrb[60].mxu1 %v7576_v34  ;;  %v7691_v50 = vld [vmem:[%s9249_s1 + $0x30] sm:$0xff] }
 0x272   : > { %v3739_v47 = vadd.f32 %v5889_v5, %v7533_v11  ;;  %4008 = vmatprep.mubr.bf16.mxu1 %v6482_v45  ;;  %v3774_v56 = vmax.f32 %v3738_v13, 0.0  ;;  %v4120_v13 = vld [vmem:[%s9249_s1 + $0x8] sm:$0xff]  ;;  %v4121_v5 = vld [vmem:[%s9249_s1 + $0x10] sm:$0xff]  ;;  %vm4697_vm11 = vcmp.gt.f32.partialorder %v7691_v50, 0.5 }
 0x273   : > { %v3737_v4 = vadd.f32 %v5890_v57, %v7533_v11  ;;  %v3772_v30 = vmax.f32 %v3736_v29, 0.0 }
 0x274   : > { %v3775_v41 = vmax.f32 %v3739_v47, 0.0 }
 0x275   : > { %v3773_v12 = vmax.f32 %v3737_v4, 0.0  ;;  %v5855_v62 = vpop.f32.mrb[32].mxu0 }
 0x276   : > { %v5891_v7 = vadd.f32 %v5855_v62, %v7522_v6  ;;  %v3650_v39 = vpop.f32.mrb[33].mxu0  ;;  %v3795_v1 = vpack.c.bf16 %v3775_v41, %v3774_v56 }
 0x277   : > { %v5892_v27 = vadd.f32 %v3650_v39, %v7524_v43  ;;  %v5856_v24 = vpop.f32.mrb[34].mxu0  ;;  %v3794_v25 = vpack.c.bf16 %v3773_v12, %v3772_v30  ;;  %v4124_v39 = vld [vmem:[%s9249_s1 + $0x28] sm:$0xff] }
 0x278   : > { %v3742_v34 = vadd.f32 %v5891_v7, %v7533_v11  ;;  %v5893_v16 = vadd.f32 %v5856_v24, %v7526_v23  ;;  %v3653_v42 = vpop.f32.mrb[35].mxu0  ;;  %v3816_v23 = vlaneseq  ;;  %v4123_v7 = vld [vmem:[%s9249_s1 + $0x20] sm:$0xff] }
 0x279   : > { %v3740_v31 = vadd.f32 %v5892_v27, %v7533_v11  ;;  %v5894_v22 = vadd.f32 %v3653_v42, %v7528_v2  ;;  %4009 = vmatmul.mubr.bf16.gmra.mrb[64].mxu1 %v7573_v17  ;;  %v3814_v17 = vld [vmem:[%s9253_s5] sm:$0x3] }
 0x27a   : > { %v3743_v36 = vadd.f32 %v5893_v16, %v7533_v11  ;;  %4018 = vmatprep.mubr.bf16.mxu1 %v6482_v45  ;;  %v3778_v43 = vmax.f32 %v3742_v34, 0.0  ;;  %v3817_v2 = vshrl.u32 %v3816_v23, 7  ;;  %v7668_v33 = vand.u32 127, %v3816_v23 }
 0x27b   : > { %v3741_v6 = vadd.f32 %v5894_v22, %v7533_v11  ;;  %v3776_v46 = vmax.f32 %v3740_v31, 0.0 }
 0x27c   : > { %v3779_v38 = vmax.f32 %v3743_v36, 0.0  ;;  %v3818_v11 = vsub.s32 0, %v3817_v2  ;;  %vm4805_vm9 = vcmp.lt.s32.totalorder %v7668_v33, 15  ;;  %vm4842_vm12 = vcmp.ge.s32.totalorder %v7668_v33, 15 }
 0x27d   : > { %v3777_v19 = vmax.f32 %v3741_v6, 0.0  ;;  %vm4843_vm13 = vcmp.lt.s32.totalorder %v7668_v33, 18  ;;  %vm4881_vm14 = vcmp.ge.s32.totalorder %v7668_v33, 18  ;;  %vm4882_vm0 = vcmp.lt.s32.totalorder %v7668_v33, 30 }
 0x27e   : > { %v3797_v10 = vpack.c.bf16 %v3779_v38, %v3778_v43  ;;  %vm4920_vm1 = vcmp.ge.s32.totalorder %v7668_v33, 30  ;;  %vm4921_vm3 = vcmp.lt.s32.totalorder %v7668_v33, 33  ;;  %vm7756_vm5 = vmand %vm4842_vm12, %vm4843_vm13 }
 0x27f   : > { %v3796_v32 = vpack.c.bf16 %v3777_v19, %v3776_v46  ;;  %v7722_v19 = vld [vmem:[%s9249_s1 + $0x48] sm:$0xff]  ;;  %vm7767_vm6 = vmand %vm4881_vm14, %vm4882_vm0 }
 0x281   : > { %4019 = vmatmul.mubr.bf16.gmra.mrb[68].mxu1 %v7589_v15  ;;  %v7645_v15 = vrot.slane %v3814_v17, %v3818_v11  ;;  %v4127_v11 = vld [vmem:[%s9249_s1 + $0x40] sm:$0xff] }
 0x282   : > { %4028 = vmatprep.mubr.bf16.mxu1 %v6482_v45 }
 0x289   : > { %4029 = vmatmul.mubr.bf16.gmra.mrb[72].mxu1 %v7586_v37  ;;  %v3822_v37 = vsub.s32 1, %v3817_v2  ;;  %v4126_v2 = vld [vmem:[%s9249_s1 + $0x38] sm:$0xff] }
 0x28a   : > { %4038 = vmatprep.mubr.bf16.mxu1 %v6482_v45 }
 0x28b   : > { %v7647_v58 = vrot.slane %v3814_v17, %v3822_v37 }
 0x291   : > { %4039 = vmatmul.mubr.bf16.gmra.mrb[76].mxu1 %v3790_v52 }
 0x292   : > { %4048 = vmatprep.mubr.bf16.mxu1 %v6482_v45 }
 0x299   : > { %4049 = vmatmul.mubr.bf16.gmra.mrb[80].mxu1 %v7599_v51 }
 0x29a   : > { %4058 = vmatprep.mubr.bf16.mxu1 %v6482_v45 }
 0x2a1   : > { %4059 = vmatmul.mubr.bf16.gmra.mrb[84].mxu1 %v3792_v63  ;;  %v7680_v63 = vld [vmem:[%s9249_s1 + $0x18] sm:$0xff] }
 0x2a2   : > { %4068 = vmatprep.mubr.bf16.mxu1 %v6482_v45  ;;  %vm4696_vm10 = vcmp.gt.f32.partialorder %v7680_v63, 0.5 }
 0x2a9   : > { %4069 = vmatmul.mubr.bf16.gmra.mrb[88].mxu1 %v3793_v53 }
 0x2aa   : > { %4078 = vmatprep.mubr.bf16.mxu1 %v6482_v45 }
 0x2b1   : > { %4079 = vmatmul.mubr.bf16.gmra.mrb[92].mxu1 %v3794_v25 }
 0x2b2   : > { %4088 = vmatprep.mubr.bf16.mxu1 %v6482_v45 }
 0x2b9   : > { %4089 = vmatmul.mubr.bf16.gmra.mrb[96].mxu1 %v3795_v1 }
 0x2ba   : > { %4098 = vmatprep.mubr.bf16.mxu1 %v6482_v45 }
 0x2c1   : > { %4099 = vmatmul.mubr.bf16.gmra.mrb[100].mxu1 %v3796_v32 }
 0x2c2   : > { %4108 = vmatprep.mubr.bf16.mxu1 %v6482_v45 }
 0x2c9   : > { %4109 = vmatmul.mubr.bf16.gmra.mrb[104].mxu1 %v3797_v10 }
 0x314   : > { %v3940_v35 = vpop.f32.mrb[36].mxu1 }
 0x315   : > { %v7650_v28 = vadd.f32 %v3940_v35, %v7645_v15  ;;  %v3942_v55 = vpop.f32.mrb[37].mxu1 }
 0x316   : > { %v3943_v45 = vadd.f32 %v3942_v55, %v7647_v58  ;;  %v3944_v51 = vpop.f32.mrb[38].mxu1 }
 0x317   : > { %v5306_v48 = vmul.f32 -1.442695, %v7650_v28  ;;  %v3946_v59 = vpop.f32.mrb[39].mxu1  ;;  %v7655_v60 = vadd.f32 %v3944_v51, %v7645_v15  ;;  %v4227_v8 = vmul.f32 %v7665_v18, %v7650_v28  ;;  %vm4659_vm15 = vcmp.gt.f32.partialorder %v7650_v28, 0.0 }
 0x318   : > { %v4299_v52 = vmul.f32 1.442695, %v3943_v45  ;;  %v3947_v14 = vadd.f32 %v3946_v59, %v7647_v58  ;;  %vm7742_vm2 = vmand %vm4659_vm15, %vm4695_vm8  ;;  %v4806_v45 = vsel %vm4805_vm9, %v7650_v28, 0.0  ;;  %vm4698_vm8 = vcmp.gt.f32.partialorder %v7722_v19, 0.5 }
 0x319   : > { %6255 = vpow2.f32 %v5306_v48  ;;  %v5307_v49 = vmul.f32 -1.442695, %v7655_v60  ;;  %v4228_v41 = vmul.f32 %v7680_v63, %v7655_v60  ;;  %v4263_v12 = vadd.f32 %v4227_v8, %v4120_v13 }
 0x31a   : > { %6257 = vpow2.f32 %v4299_v52  ;;  %v4301_v26 = vmul.f32 1.442695, %v3947_v14  ;;  %vm4660_vm4 = vcmp.gt.f32.partialorder %v7655_v60, 0.0 }
 0x31b   : > { %6259 = vpow2.f32 %v5307_v49  ;;  %v4264_v6 = vadd.f32 %v4228_v41, %v4123_v7  ;;  %vm7786_vm12 = vmand %vm4660_vm4, %vm4696_vm10 }
 0x31c   : > { %v3950_v9 = vpop.f32.mrb[40].mxu1  ;;  %6261 = vpow2.f32 %v4301_v26  ;;  %vm7803_vm10 = vmand %vm4920_vm1, %vm4921_vm3 }
 0x31d   : > { %v7660_v54 = vadd.f32 %v3950_v9, %v7645_v15  ;;  %v3952_v0 = vpop.f32.mrb[41].mxu1  ;;  %v4129_v9 = vld [vmem:[%s9249_s1 + $0x50] sm:$0xff] }
 0x31e   : > { %v3953_v3 = vadd.f32 %v3952_v0, %v7647_v58  ;;  %v3954_v21 = vpop.f32.mrb[42].mxu1  ;;  %v4130_v0 = vld [vmem:[%s9249_s1 + $0x58] sm:$0xff] }
 0x31f   : > { %v5308_v44 = vmul.f32 -1.442695, %v7660_v54  ;;  %v3956_v61 = vpop.f32.mrb[43].mxu1  ;;  %v7672_v53 = vadd.f32 %v3954_v21, %v7645_v15  ;;  %v4229_v46 = vmul.f32 %v7691_v50, %v7660_v54  ;;  %vm4661_vm7 = vcmp.gt.f32.partialorder %v7660_v54, 0.0 }
 0x320   : > { %v4303_v40 = vmul.f32 1.442695, %v3953_v3  ;;  %v3957_v20 = vadd.f32 %v3956_v61, %v7647_v58  ;;  %v6483_v21 = vmov 0.0   ;;  %vm7816_vm13 = vmand %vm4661_vm7, %vm4697_vm11 }
 0x321   : > { %6263 = vpow2.f32 %v5308_v44  ;;  %v5309_v29 = vmul.f32 -1.442695, %v7672_v53  ;;  %v4230_v59 = vmul.f32 %v7722_v19, %v7672_v53  ;;  %v4265_v49 = vadd.f32 %v4229_v46, %v4126_v2 }
 0x322   : > { %6265 = vpow2.f32 %v4303_v40  ;;  %v4305_v47 = vmul.f32 1.442695, %v3957_v20  ;;  %v4767_v44 = vsel %vm7742_vm2, 1.0, %v6483_v21  ;;  %v7793_v40 = vld [vmem:[%s9249_s1 + $0x60] sm:$0xff]  ;;  %v4768_v50 = vsel %vm7786_vm12, 1.0, %v6483_v21 }
 0x323   : > { %v6256_v57 = vpop.eup %6255  ;;  %6267 = vpow2.f32 %v5309_v29  ;;  %v4807_v29 = vsel %vm4805_vm9, %v7655_v60, 0.0  ;;  %vm4699_vm11 = vcmp.gt.f32.partialorder %v7793_v40, 0.5  ;;  %vm4662_vm14 = vcmp.gt.f32.partialorder %v7672_v53, 0.0 }
 0x324   : > { %v6258_v4 = vpop.eup %6257  ;;  %v4551_v56 = vadd.f32 1.0, %v6256_v57  ;;  %v3960_v30 = vpop.f32.mrb[44].mxu1  ;;  %6269 = vpow2.f32 %v4305_v47  ;;  %vm7900_vm1 = vmand %vm4662_vm14, %vm4698_vm8 }
 0x325   : > { %v4371_v62 = vmul.f32 %v6258_v4, %v4121_v5  ;;  %v7707_v1 = vadd.f32 %v3960_v30, %v7645_v15  ;;  %v3962_v27 = vpop.f32.mrb[45].mxu1  ;;  %v6260_v24 = vpop.eup %6259  ;;  %v4266_v30 = vadd.f32 %v4230_v59, %v4129_v9 }
 0x326   : > { %6271 = vrcp.f32 %v4551_v56  ;;  %v3963_v25 = vadd.f32 %v3962_v27, %v7647_v58  ;;  %v3964_v34 = vpop.f32.mrb[46].mxu1  ;;  %v6262_v16 = vpop.eup %6261  ;;  %v4552_v31 = vadd.f32 1.0, %v6260_v24 }
 0x327   : > { %v7712_v42 = vadd.f32 %v4371_v62, %v4263_v12  ;;  %v5310_v22 = vmul.f32 -1.442695, %v7707_v1  ;;  %v3966_v36 = vpop.f32.mrb[47].mxu1  ;;  %v4372_v43 = vmul.f32 %v6262_v16, %v4124_v39  ;;  %v7725_v10 = vadd.f32 %v3964_v34, %v7645_v15  ;;  %v7840_v39 = vld [vmem:[%s9249_s1 + $0x78] sm:$0xff] }
 0x328   : > { %v4307_v38 = vmul.f32 1.442695, %v3963_v25  ;;  %6273 = vrcp.f32 %v4552_v31  ;;  %v3967_v32 = vadd.f32 %v3966_v36, %v7647_v58  ;;  %v4231_v34 = vmul.f32 %v7793_v40, %v7707_v1 }
 0x329   : > { %v7730_v23 = vadd.f32 %v4372_v43, %v4264_v6  ;;  %6275 = vpow2.f32 %v5310_v22  ;;  %v5311_v35 = vmul.f32 -1.442695, %v7725_v10  ;;  %v4769_v22 = vsel %vm7816_vm13, 1.0, %v6483_v21  ;;  %v4133_v6 = vld [vmem:[%s9249_s1 + $0x70] sm:$0xff] }
 0x32a   : > { %6277 = vpow2.f32 %v4307_v38  ;;  %v4309_v52 = vmul.f32 1.442695, %v3967_v32  ;;  %v4808_v36 = vsel %vm4805_vm9, %v7660_v54, 0.0  ;;  %v4232_v46 = vmul.f32 %v7840_v39, %v7725_v10 }
 0x32b   : > { %v6264_v17 = vpop.eup %6263  ;;  %6279 = vpow2.f32 %v5311_v35  ;;  %vm4700_vm15 = vcmp.gt.f32.partialorder %v7840_v39, 0.5  ;;  %v4135_v35 = vld [vmem:[%s9249_s1 + $0x80] sm:$0xff]  ;;  %vm4663_vm0 = vcmp.gt.f32.partialorder %v7707_v1, 0.0  ;;  %vm4664_vm4 = vcmp.gt.f32.partialorder %v7725_v10, 0.0 }
 0x32c   : > { %v6266_v55 = vpop.eup %6265  ;;  %v4553_v48 = vadd.f32 1.0, %v6264_v17  ;;  %v3970_v14 = vpop.f32.mrb[48].mxu1  ;;  %v4809_v17 = vsel %vm4805_vm9, %v7672_v53, 0.0  ;;  %vm7938_vm3 = vmand %vm4663_vm0, %vm4699_vm11 }
 0x32d   : > { %v4373_v26 = vmul.f32 %v6266_v55, %v4127_v11  ;;  %v3972_v18 = vpop.f32.mrb[49].mxu1  ;;  %v6268_v3 = vpop.eup %6267  ;;  %v7796_v20 = vadd.f32 %v3970_v14, %v7645_v15  ;;  %vm7965_vm7 = vmand %vm4664_vm4, %vm4700_vm15 }
 0x32e   : > { %6281 = vrcp.f32 %v4553_v48  ;;  %v3973_v8 = vadd.f32 %v3972_v18, %v7647_v58  ;;  %v3974_v13 = vpop.f32.mrb[50].mxu1  ;;  %v6270_v63 = vpop.eup %6269  ;;  %v4554_v47 = vadd.f32 1.0, %v6268_v3 }
 0x32f   : > { %v7810_v57 = vadd.f32 %v4373_v26, %v4265_v49  ;;  %6283 = vpow2.f32 %v4309_v52  ;;  %v3976_v4 = vpop.f32.mrb[51].mxu1  ;;  %v4374_v12 = vmul.f32 %v6270_v63, %v4130_v0  ;;  %v5312_v62 = vmul.f32 -1.442695, %v7796_v20  ;;  %v4136_v26 = vld [vmem:[%s9249_s1 + $0x88] sm:$0xff] }
 0x330   : > { %v6272_v56 = vpop.eup %6271  ;;  %v7822_v60 = vadd.f32 %v3974_v13, %v7645_v15  ;;  %6285 = vrcp.f32 %v4554_v47  ;;  %v4311_v27 = vmul.f32 1.442695, %v3973_v8  ;;  %v3977_v55 = vadd.f32 %v3976_v4, %v7647_v58 }
 0x331   : > { %v4845_v7 = vsel %vm7756_vm5, %v6272_v56, %v4806_v45  ;;  %v7845_v25 = vadd.f32 %v4374_v12, %v4266_v30  ;;  %6287 = vpow2.f32 %v5312_v62  ;;  %v4268_v8 = vadd.f32 %v4232_v46, %v4135_v35 }
 0x332   : > { %v4884_v24 = vsel %vm7767_vm6, %v7712_v42, %v4845_v7  ;;  %v6274_v16 = vpop.eup %6273  ;;  %v4132_v42 = vld [vmem:[%s9249_s1 + $0x68] sm:$0xff]  ;;  %6289 = vpow2.f32 %v4311_v27  ;;  %v5313_v54 = vmul.f32 -1.442695, %v7822_v60  ;;  %v4313_v9 = vmul.f32 1.442695, %v3977_v55  ;;  %v4138_v7 = vld [vmem:[%s9249_s1 + $0x98] sm:$0xff] }
 0x333   : > { %v4923_v31 = vsel %vm7803_vm10, %v4767_v44, %v4884_v24  ;;  %v6276_v43 = vpop.eup %6275  ;;  %v4846_v38 = vsel %vm7756_vm5, %v6274_v16, %v4807_v29  ;;  %v4267_v59 = vadd.f32 %v4231_v34, %v4132_v42  ;;  %v4770_v62 = vsel %vm7900_vm1, 1.0, %v6483_v21  ;;  %v4145_v34 = vld [vmem:[%s9249_s1 + $0xd0] sm:$0xff] }
 0x334   : > { %4959 = vst [vmem:[%s7831_s20] sm:$0xff] %v4923_v31  ;;  %v3980_v32 = vpop.f32.mrb[52].mxu1  ;;  %v6278_v2 = vpop.eup %6277  ;;  %v4885_v11 = vsel %vm7767_vm6, %v7730_v23, %v4846_v38  ;;  %v4555_v37 = vadd.f32 1.0, %v6276_v43  ;;  %v7886_v23 = vld [vmem:[%s9249_s1 + $0x90] sm:$0xff]  ;;  %6291 = vpow2.f32 %v5313_v54  ;;  %v7946_v31 = vld [vmem:[%s9249_s1 + $0xa8] sm:$0xff]  ;;  %vm4665_vm12 = vcmp.gt.f32.partialorder %v7796_v20, 0.0 }
 0x335   : > { %v3982_v45 = vpop.f32.mrb[53].mxu1  ;;  %v4924_v48 = vsel %vm7803_vm10, %v4768_v50, %v4885_v11  ;;  %v4375_v52 = vmul.f32 %v6278_v2, %v4133_v6  ;;  %v6280_v49 = vpop.eup %6279  ;;  %v7894_v0 = vadd.f32 %v3980_v32, %v7645_v15  ;;  %vm4701_vm2 = vcmp.gt.f32.partialorder %v7886_v23, 0.5 }
 0x336   : > { %v3984_v14 = vpop.f32.mrb[54].mxu1  ;;  %4960 = vst [vmem:[%s7831_s20 + $0x8] sm:$0xff] %v4924_v48  ;;  %6293 = vrcp.f32 %v4555_v37  ;;  %v4556_v13 = vadd.f32 1.0, %v6280_v49  ;;  %v3983_v63 = vadd.f32 %v3982_v45, %v7647_v58  ;;  %v4233_v41 = vmul.f32 %v7886_v23, %v7796_v20  ;;  %v7976_v37 = vld [vmem:[%s9249_s1 + $0xc0] sm:$0xff]  ;;  %v4142_v49 = vld [vmem:[%s9249_s1 + $0xb8] sm:$0xff]  ;;  %vm8020_vm11 = vmand %vm4665_vm12, %vm4701_vm2 }
 0x337   : > { %v3986_v18 = vpop.f32.mrb[55].mxu1  ;;  %v7904_v61 = vadd.f32 %v4375_v52, %v4267_v59  ;;  %6295 = vpow2.f32 %v4313_v9  ;;  %v5314_v53 = vmul.f32 -1.442695, %v7894_v0  ;;  %v7912_v19 = vadd.f32 %v3984_v14, %v7645_v15  ;;  %v4141_v52 = vld [vmem:[%s9249_s1 + $0xb0] sm:$0xff] }
 0x338   : > { %v6282_v3 = vpop.eup %6281  ;;  %6297 = vrcp.f32 %v4556_v13  ;;  %v3987_v50 = vadd.f32 %v3986_v18, %v7647_v58  ;;  %v4810_v6 = vsel %vm4805_vm9, %v7707_v1, 0.0  ;;  %v4269_v32 = vadd.f32 %v4233_v41, %v4138_v7  ;;  %v4148_v1 = vld [vmem:[%s9249_s1 + $0xe8] sm:$0xff] }
 0x339   : > { %v6284_v29 = vpop.eup %6283  ;;  %v4847_v47 = vsel %vm7756_vm5, %v6282_v3, %v4808_v36  ;;  %6299 = vpow2.f32 %v5314_v53  ;;  %v5315_v38 = vmul.f32 -1.442695, %v7912_v19  ;;  %vm4702_vm8 = vcmp.gt.f32.partialorder %v7946_v31, 0.5  ;;  %v8002_v3 = vld [vmem:[%s9249_s1 + $0xd8] sm:$0xff] }
 0x33a   : > { %v4886_v4 = vsel %vm7767_vm6, %v7810_v57, %v4847_v47  ;;  %v4376_v56 = vmul.f32 %v6284_v29, %v4136_v26  ;;  %v6286_v30 = vpop.eup %6285  ;;  %v4139_v57 = vld [vmem:[%s9249_s1 + $0xa0] sm:$0xff]  ;;  %v4317_v35 = vmul.f32 1.442695, %v3987_v50  ;;  %v4234_v48 = vmul.f32 %v7946_v31, %v7822_v60 }
 0x33b   : > { %v4925_v12 = vsel %vm7803_vm10, %v4769_v22, %v4886_v4  ;;  %v6288_v27 = vpop.eup %6287  ;;  %v4848_v24 = vsel %vm7756_vm5, %v6286_v30, %v4809_v17  ;;  %v4315_v22 = vmul.f32 1.442695, %v3983_v63  ;;  %v4811_v17 = vsel %vm4805_vm9, %v7725_v10, 0.0 }
 0x33c   : > { %4961 = vst [vmem:[%s7831_s20 + $0x10] sm:$0xff] %v4925_v12  ;;  %v4412_v16 = vadd.f32 %v4376_v56, %v4268_v8  ;;  %v3990_v36 = vpop.f32.mrb[56].mxu1  ;;  %v6290_v42 = vpop.eup %6289  ;;  %v4887_v40 = vsel %vm7767_vm6, %v7845_v25, %v4848_v24  ;;  %v4557_v43 = vadd.f32 1.0, %v6288_v27  ;;  %v4771_v25 = vsel %vm7938_vm3, 1.0, %v6483_v21  ;;  %v4144_v27 = vld [vmem:[%s9249_s1 + $0xc8] sm:$0xff] }
 0x33d   : > { %v3992_v46 = vpop.f32.mrb[57].mxu1  ;;  %v4926_v54 = vsel %vm7803_vm10, %v4770_v62, %v4887_v40  ;;  %v4377_v2 = vmul.f32 %v6290_v42, %v4139_v57  ;;  %6301 = vpow2.f32 %v4315_v22  ;;  %v7983_v59 = vadd.f32 %v3990_v36, %v7645_v15 }
 0x33e   : > { %v3994_v11 = vpop.f32.mrb[58].mxu1  ;;  %4962 = vst [vmem:[%s7831_s20 + $0x18] sm:$0xff] %v4926_v54  ;;  %6303 = vrcp.f32 %v4557_v43  ;;  %v6292_v55 = vpop.eup %6291  ;;  %v3993_v26 = vadd.f32 %v3992_v46, %v7647_v58  ;;  %v4772_v18 = vsel %vm7965_vm7, 1.0, %v6483_v21  ;;  %vm4703_vm13 = vcmp.gt.f32.partialorder %v7976_v37, 0.5  ;;  %v8062_v46 = vld [vmem:[%s9249_s1 + $0xf0] sm:$0xff] }
 0x33f   : > { %v3996_v39 = vpop.f32.mrb[59].mxu1  ;;  %v7978_v45 = vadd.f32 %v4377_v2, %v4269_v32  ;;  %6305 = vpow2.f32 %v5315_v38  ;;  %v4558_v14 = vadd.f32 1.0, %v6292_v55  ;;  %v5316_v44 = vmul.f32 -1.442695, %v7983_v59 }
 0x340   : > { %v6294_v10 = vpop.eup %6293  ;;  %6307 = vpow2.f32 %v4317_v35  ;;  %v8006_v8 = vadd.f32 %v3994_v11, %v7645_v15  ;;  %v4812_v29 = vsel %vm4805_vm9, %v7796_v20, 0.0  ;;  %v4319_v47 = vmul.f32 1.442695, %v3993_v26 }
 0x341   : > { %v4849_v9 = vsel %vm7756_vm5, %v6294_v10, %v4810_v6  ;;  %v6296_v13 = vpop.eup %6295  ;;  %6309 = vrcp.f32 %v4558_v14  ;;  %v4270_v41 = vadd.f32 %v4234_v48, %v4141_v52  ;;  %v4235_v7 = vmul.f32 %v7976_v37, %v7894_v0  ;;  %v4147_v6 = vld [vmem:[%s9249_s1 + $0xe0] sm:$0xff] }
 0x342   : > { %v4888_v63 = vsel %vm7767_vm6, %v7904_v61, %v4849_v9  ;;  %v6298_v53 = vpop.eup %6297  ;;  %v4378_v61 = vmul.f32 %v6296_v13, %v4142_v49  ;;  %6311 = vpow2.f32 %v5316_v44  ;;  %v4236_v23 = vmul.f32 %v8002_v3, %v7912_v19  ;;  %v4150_v44 = vld [vmem:[%s9249_s1 + $0xf8] sm:$0xff] }
 0x343   : > { %v4927_v4 = vsel %vm7803_vm10, %v4771_v25, %v4888_v63  ;;  %v6300_v12 = vpop.eup %6299  ;;  %v4850_v62 = vsel %vm7756_vm5, %v6298_v53, %v4811_v17  ;;  %6313 = vpow2.f32 %v4319_v47  ;;  %vm4704_vm14 = vcmp.gt.f32.partialorder %v8002_v3, 0.5  ;;  %v8105_v63 = vld [vmem:[%s9249_s1 + $0x120] sm:$0xff] }
 0x344   : > { %v4000_v30 = vpop.f32.mrb[60].mxu1  ;;  %4963 = vst [vmem:[%s7831_s20 + $0x20] sm:$0xff] %v4927_v4  ;;  %v4889_v57 = vsel %vm7767_vm6, %v4412_v16, %v4850_v62  ;;  %v8033_v50 = vadd.f32 %v4378_v61, %v4270_v41  ;;  %v4559_v24 = vadd.f32 1.0, %v6300_v12  ;;  %v5317_v22 = vmul.f32 -1.442695, %v8006_v8  ;;  %v4151_v41 = vld [vmem:[%s9249_s1 + $0x100] sm:$0xff] }
 0x345   : > { %v4002_v20 = vpop.f32.mrb[61].mxu1  ;;  %v4928_v42 = vsel %vm7803_vm10, %v4772_v18, %v4889_v57  ;;  %v4773_v16 = vsel %vm8020_vm11, 1.0, %v6483_v21  ;;  %vm4666_vm15 = vcmp.gt.f32.partialorder %v7822_v60, 0.0  ;;  %v4813_v40 = vsel %vm4805_vm9, %v7822_v60, 0.0 }
 0x346   : > { %v4004_v36 = vpop.f32.mrb[62].mxu1  ;;  %4964 = vst [vmem:[%s7831_s20 + $0x28] sm:$0xff] %v4928_v42  ;;  %6315 = vrcp.f32 %v4559_v24  ;;  %vm4667_vm0 = vcmp.gt.f32.partialorder %v7894_v0, 0.0  ;;  %v3997_v54 = vadd.f32 %v3996_v39, %v7647_v58  ;;  %v8066_v32 = vadd.f32 %v4000_v30, %v7645_v15  ;;  %vm8078_vm1 = vmand %vm4666_vm15, %vm4702_vm8  ;;  %v4154_v39 = vld [vmem:[%s9249_s1 + $0x118] sm:$0xff] }
 0x347   : > { %v8055_v43 = vpop.f32.mrb[63].mxu1  ;;  %v6302_v38 = vpop.eup %6301  ;;  %v4271_v11 = vadd.f32 %v4235_v7, %v4144_v27  ;;  %6317 = vpow2.f32 %v5317_v22  ;;  %v4003_v17 = vadd.f32 %v4002_v20, %v7647_v58  ;;  %v4272_v48 = vadd.f32 %v4236_v23, %v4147_v6  ;;  %vm8115_vm3 = vmand %vm4667_vm0, %vm4703_vm13 }
 0x348   : > { %v6304_v2 = vpop.eup %6303  ;;  %v4379_v25 = vmul.f32 %v6302_v38, %v4145_v34  ;;  %v4321_v10 = vmul.f32 1.442695, %v3997_v54  ;;  %v5318_v52 = vmul.f32 -1.442695, %v8066_v32  ;;  %vm4705_vm2 = vcmp.gt.f32.partialorder %v8062_v46, 0.5  ;;  %v4153_v54 = vld [vmem:[%s9249_s1 + $0x110] sm:$0xff] }
 0x349   : > { %v6306_v35 = vpop.eup %6305  ;;  %v4851_v55 = vsel %vm7756_vm5, %v6304_v2, %v4812_v29  ;;  %v8088_v60 = vadd.f32 %v4004_v36, %v7645_v15  ;;  %v4237_v13 = vmul.f32 %v8062_v46, %v7983_v59  ;;  %v4774_v53 = vsel %vm8078_vm1, 1.0, %v6483_v21  ;;  %v4157_v46 = vld [vmem:[%s9249_s1 + $0x130] sm:$0xff] }
 0x34a   : > { %v6308_v14 = vpop.eup %6307  ;;  %v4890_v49 = vsel %vm7767_vm6, %v7978_v45, %v4851_v55  ;;  %v4415_v26 = vadd.f32 %v4379_v25, %v4271_v11  ;;  %v4560_v9 = vadd.f32 1.0, %v6306_v35  ;;  %v8100_v45 = vld [vmem:[%s9249_s1 + $0x108] sm:$0xff]  ;;  %6319 = vpow2.f32 %v4321_v10 }
 0x34b   : > { %v4929_v31 = vsel %vm7803_vm10, %v4773_v16, %v4890_v49  ;;  %v4380_v18 = vmul.f32 %v6308_v14, %v4148_v1  ;;  %v6310_v47 = vpop.eup %6309  ;;  %v4814_v56 = vsel %vm4805_vm9, %v7894_v0, 0.0  ;;  %v4323_v61 = vmul.f32 1.442695, %v4003_v17  ;;  %v8186_v14 = vld [vmem:[%s9249_s1 + $0x138] sm:$0xff] }
 0x34c   : > { %v4010_v29 = vpop.f32.mrb[64].mxu1  ;;  %4965 = vst [vmem:[%s7831_s20 + $0x30] sm:$0xff] %v4929_v31  ;;  %6321 = vrcp.f32 %v4560_v9  ;;  %v6312_v12 = vpop.eup %6311  ;;  %v4852_v37 = vsel %vm7756_vm5, %v6310_v47, %v4813_v40  ;;  %vm4668_vm4 = vcmp.gt.f32.partialorder %v7912_v19, 0.0  ;;  %vm4706_vm7 = vcmp.gt.f32.partialorder %v8100_v45, 0.5 }
 0x34d   : > { %v4012_v30 = vpop.f32.mrb[65].mxu1  ;;  %v8128_v62 = vadd.f32 %v4380_v18, %v4272_v48  ;;  %6323 = vpow2.f32 %v5318_v52  ;;  %v6314_v23 = vpop.eup %6313  ;;  %v4891_v0 = vsel %vm7767_vm6, %v8033_v50, %v4852_v37  ;;  %v4561_v20 = vadd.f32 1.0, %v6312_v12  ;;  %vm8146_vm12 = vmand %vm4668_vm4, %vm4704_vm14 }
 0x34e   : > { %v4014_v7 = vpop.f32.mrb[66].mxu1  ;;  %6325 = vpow2.f32 %v4323_v61  ;;  %v5319_v57 = vmul.f32 -1.442695, %v8088_v60  ;;  %v4930_v24 = vsel %vm7803_vm10, %v4774_v53, %v4891_v0  ;;  %v4775_v34 = vsel %vm8115_vm3, 1.0, %v6483_v21 }
 0x34f   : > { %v4016_v27 = vpop.f32.mrb[67].mxu1  ;;  %v4273_v22 = vadd.f32 %v4237_v13, %v4150_v44  ;;  %v4381_v36 = vmul.f32 %v6314_v23, %v4151_v41  ;;  %vm4707_vm8 = vcmp.gt.f32.partialorder %v8105_v63, 0.5  ;;  %4966 = vst [vmem:[%s7831_s20 + $0x38] sm:$0xff] %v4930_v24  ;;  %6327 = vrcp.f32 %v4561_v20  ;;  %v8227_v20 = vld [vmem:[%s9249_s1 + $0x150] sm:$0xff] }
 0x350   : > { %v4238_v42 = vmul.f32 %v8100_v45, %v8006_v8  ;;  %v4007_v16 = vadd.f32 %v8055_v43, %v7647_v58  ;;  %v8155_v40 = vadd.f32 %v4010_v29, %v7645_v15  ;;  %v6316_v6 = vpop.eup %6315  ;;  %v4815_v3 = vsel %vm4805_vm9, %v7912_v19, 0.0 }
 0x351   : > { %v8160_v38 = vadd.f32 %v4381_v36, %v4273_v22  ;;  %6329 = vpow2.f32 %v5319_v57  ;;  %v4013_v2 = vadd.f32 %v4012_v30, %v7647_v58  ;;  %v6318_v11 = vpop.eup %6317  ;;  %v4853_v43 = vsel %vm7756_vm5, %v6316_v6, %v4814_v56 }
 0x352   : > { %vm4669_vm13 = vcmp.gt.f32.partialorder %v7983_v59, 0.0  ;;  %v4325_v25 = vmul.f32 1.442695, %v4007_v16  ;;  %v5320_v1 = vmul.f32 -1.442695, %v8155_v40  ;;  %v4892_v19 = vsel %vm7767_vm6, %v4415_v26, %v4853_v43 }
 0x353   : > { %v4776_v17 = vsel %vm8146_vm12, 1.0, %v6483_v21  ;;  %v4816_v35 = vsel %vm4805_vm9, %v7983_v59, 0.0  ;;  %v4562_v55 = vadd.f32 1.0, %v6318_v11  ;;  %v4931_v10 = vsel %vm7803_vm10, %v4775_v34, %v4892_v19  ;;  %vm8193_vm11 = vmand %vm4669_vm13, %vm4705_vm2  ;;  %v4156_v59 = vld [vmem:[%s9249_s1 + $0x128] sm:$0xff] }
 0x354   : > { %v4020_v48 = vpop.f32.mrb[68].mxu1  ;;  %v4274_v52 = vadd.f32 %v4238_v42, %v4153_v54  ;;  %6331 = vpow2.f32 %v4325_v25  ;;  %v4327_v49 = vmul.f32 1.442695, %v4013_v2  ;;  %v6320_v9 = vpop.eup %6319  ;;  %4967 = vst [vmem:[%s7831_s20 + $0x40] sm:$0xff] %v4931_v10  ;;  %vm4670_vm14 = vcmp.gt.f32.partialorder %v8006_v8, 0.0  ;;  %v8263_v54 = vld [vmem:[%s9249_s1 + $0x168] sm:$0xff] }
 0x355   : > { %v4022_v26 = vpop.f32.mrb[69].mxu1  ;;  %6333 = vrcp.f32 %v4562_v55  ;;  %v4239_v18 = vmul.f32 %v8105_v63, %v8066_v32  ;;  %v8201_v44 = vadd.f32 %v4014_v7, %v7645_v15  ;;  %v4382_v47 = vmul.f32 %v6320_v9, %v4154_v39  ;;  %vm8235_vm1 = vmand %vm4670_vm14, %vm4706_vm7  ;;  %v4159_v63 = vld [vmem:[%s9249_s1 + $0x140] sm:$0xff]  ;;  %v4160_v19 = vld [vmem:[%s9249_s1 + $0x148] sm:$0xff] }
 0x356   : > { %v4024_v13 = vpop.f32.mrb[70].mxu1  ;;  %v6322_v29 = vpop.eup %6321  ;;  %vm4671_vm15 = vcmp.gt.f32.partialorder %v8066_v32, 0.0  ;;  %6335 = vpow2.f32 %v5320_v1  ;;  %v4017_v53 = vadd.f32 %v4016_v27, %v7647_v58  ;;  %vm4708_vm0 = vcmp.gt.f32.partialorder %v8186_v14, 0.5 }
 0x357   : > { %v4026_v4 = vpop.f32.mrb[71].mxu1  ;;  %v6324_v56 = vpop.eup %6323  ;;  %v4854_v41 = vsel %vm7756_vm5, %v6322_v29, %v4815_v3  ;;  %6337 = vpow2.f32 %v4327_v49  ;;  %v5321_v61 = vmul.f32 -1.442695, %v8201_v44  ;;  %v8216_v30 = vadd.f32 %v4020_v48, %v7645_v15  ;;  %vm8244_vm2 = vmand %vm4671_vm15, %vm4707_vm8  ;;  %v4163_v29 = vld [vmem:[%s9249_s1 + $0x160] sm:$0xff] }
 0x358   : > { %v6326_v12 = vpop.eup %6325  ;;  %v4893_v37 = vsel %vm7767_vm6, %v8128_v62, %v4854_v41  ;;  %v4777_v7 = vsel %vm8193_vm11, 1.0, %v6483_v21  ;;  %v4418_v23 = vadd.f32 %v4382_v47, %v4274_v52  ;;  %v4563_v0 = vadd.f32 1.0, %v6324_v56 }
 0x359   : > { %v4932_v57 = vsel %vm7803_vm10, %v4776_v17, %v4893_v37  ;;  %v4275_v27 = vadd.f32 %v4239_v18, %v4156_v59  ;;  %v4383_v24 = vmul.f32 %v6326_v12, %v4157_v46  ;;  %6339 = vpow2.f32 %v5321_v61  ;;  %v6328_v34 = vpop.eup %6327  ;;  %v4162_v17 = vld [vmem:[%s9249_s1 + $0x158] sm:$0xff] }
 0x35a   : > { %4968 = vst [vmem:[%s7831_s20 + $0x48] sm:$0xff] %v4932_v57  ;;  %6341 = vrcp.f32 %v4563_v0  ;;  %v4240_v45 = vmul.f32 %v8186_v14, %v8088_v60  ;;  %v4329_v36 = vmul.f32 1.442695, %v4017_v53  ;;  %v4023_v50 = vadd.f32 %v4022_v26, %v7647_v58 }
 0x35b   : > { %v6330_v42 = vpop.eup %6329  ;;  %v4855_v16 = vsel %vm7756_vm5, %v6328_v34, %v4816_v35  ;;  %v8253_v6 = vadd.f32 %v4383_v24, %v4275_v27  ;;  %v4241_v3 = vmul.f32 %v8227_v20, %v8155_v40  ;;  %v5322_v2 = vmul.f32 -1.442695, %v8216_v30  ;;  %v8337_v24 = vld [vmem:[%s9249_s1 + $0x180] sm:$0xff] }
 0x35c   : > { %v4030_v11 = vpop.f32.mrb[72].mxu1  ;;  %v4894_v43 = vsel %vm7767_vm6, %v8160_v38, %v4855_v16  ;;  %v4817_v25 = vsel %vm4805_vm9, %v8006_v8, 0.0  ;;  %v4564_v1 = vadd.f32 1.0, %v6330_v42  ;;  %vm4709_vm3 = vcmp.gt.f32.partialorder %v8227_v20, 0.5  ;;  %v4169_v20 = vld [vmem:[%s9249_s1 + $0x190] sm:$0xff] }
 0x35d   : > { %6343 = vpow2.f32 %v4329_v36  ;;  %v4032_v35 = vpop.f32.mrb[73].mxu1  ;;  %v4933_v38 = vsel %vm7803_vm10, %v4777_v7, %v4894_v43  ;;  %v4778_v8 = vsel %vm8235_vm1, 1.0, %v6483_v21  ;;  %v8287_v55 = vsel %vm8244_vm2, 1.0, %v6483_v21  ;;  %v4171_v7 = vld [vmem:[%s9249_s1 + $0x1a0] sm:$0xff] }
 0x35e   : > { %6345 = vpow2.f32 %v5322_v2  ;;  %v8289_v39 = vpop.f32.mrb[74].mxu1  ;;  %v6332_v48 = vpop.eup %6331  ;;  %4969 = vst [vmem:[%s7831_s20 + $0x50] sm:$0xff] %v4933_v38  ;;  %v4276_v10 = vadd.f32 %v4240_v45, %v4159_v63  ;;  %vm4710_vm4 = vcmp.gt.f32.partialorder %v8263_v54, 0.5  ;;  %v4331_v52 = vmul.f32 1.442695, %v4023_v50 }
 0x35f   : > { %6347 = vrcp.f32 %v4564_v1  ;;  %v8294_v49 = vadd.f32 %v4024_v13, %v7645_v15  ;;  %v8296_v26 = vpop.f32.mrb[75].mxu1  ;;  %v6334_v9 = vpop.eup %6333  ;;  %vm4672_vm7 = vcmp.gt.f32.partialorder %v8088_v60, 0.0  ;;  %v4384_v31 = vmul.f32 %v6332_v48, %v4160_v19 }
 0x360   : > { %v4277_v18 = vadd.f32 %v4241_v3, %v4162_v17  ;;  %v4027_v47 = vadd.f32 %v4026_v4, %v7647_v58  ;;  %v6336_v59 = vpop.eup %6335  ;;  %v4856_v46 = vsel %vm7756_vm5, %v6334_v9, %v4817_v25  ;;  %6349 = vpow2.f32 %v4331_v52  ;;  %vm8319_vm8 = vmand %vm4672_vm7, %vm4708_vm0  ;;  %v8355_v3 = vld [vmem:[%s9249_s1 + $0x198] sm:$0xff] }
 0x361   : > { %v5323_v13 = vmul.f32 -1.442695, %v8294_v49  ;;  %v8307_v53 = vadd.f32 %v4030_v11, %v7645_v15  ;;  %v6338_v56 = vpop.eup %6337  ;;  %v4895_v41 = vsel %vm7767_vm6, %v4418_v23, %v4856_v46  ;;  %v4420_v61 = vadd.f32 %v4384_v31, %v4276_v10  ;;  %v4165_v23 = vld [vmem:[%s9249_s1 + $0x170] sm:$0xff]  ;;  %v4168_v10 = vld [vmem:[%s9249_s1 + $0x188] sm:$0xff] }
 0x362   : > { %v4565_v12 = vadd.f32 1.0, %v6336_v59  ;;  %v4242_v4 = vmul.f32 %v8263_v54, %v8201_v44  ;;  %v4934_v37 = vsel %vm7803_vm10, %v4778_v8, %v4895_v41  ;;  %v4385_v0 = vmul.f32 %v6338_v56, %v4163_v29  ;;  %v8419_v41 = vld [vmem:[%s9249_s1 + $0x1b0] sm:$0xff] }
 0x363   : > { %6351 = vpow2.f32 %v5323_v13  ;;  %v4033_v57 = vadd.f32 %v4032_v35, %v7647_v58  ;;  %v6340_v62 = vpop.eup %6339  ;;  %4970 = vst [vmem:[%s7831_s20 + $0x58] sm:$0xff] %v4934_v37  ;;  %v4818_v14 = vsel %vm4805_vm9, %v8066_v32, 0.0  ;;  %v4819_v27 = vsel %vm4805_vm9, %v8088_v60, 0.0  ;;  %v4166_v32 = vld [vmem:[%s9249_s1 + $0x178] sm:$0xff] }
 0x364   : > { %6353 = vrcp.f32 %v4565_v12  ;;  %v4333_v34 = vmul.f32 1.442695, %v4027_v47  ;;  %v4040_v22 = vpop.f32.mrb[76].mxu1  ;;  %v6342_v45 = vpop.eup %6341  ;;  %vm4673_vm12 = vcmp.gt.f32.partialorder %v8155_v40, 0.0  ;;  %v8340_v36 = vadd.f32 %v4385_v0, %v4277_v18 }
 0x365   : > { %v4566_v50 = vadd.f32 1.0, %v6340_v62  ;;  %v5324_v60 = vmul.f32 -1.442695, %v8307_v53  ;;  %v4042_v42 = vpop.f32.mrb[77].mxu1  ;;  %v4857_v16 = vsel %vm7756_vm5, %v6342_v45, %v4818_v14  ;;  %v4780_v63 = vsel %vm8319_vm8, 1.0, %v6483_v21  ;;  %vm8372_vm14 = vmand %vm4673_vm12, %vm4709_vm3 }
 0x366   : > { %vm4674_vm13 = vcmp.gt.f32.partialorder %v8201_v44, 0.0  ;;  %6355 = vpow2.f32 %v4333_v34  ;;  %v8357_v2 = vpop.f32.mrb[78].mxu1  ;;  %v4896_v43 = vsel %vm7767_vm6, %v8253_v6, %v4857_v16  ;;  %v4278_v25 = vadd.f32 %v4242_v4, %v4165_v23 }
 0x367   : > { %v6344_v11 = vpop.eup %6343  ;;  %6357 = vrcp.f32 %v4566_v50  ;;  %vm4711_vm11 = vcmp.gt.f32.partialorder %v8337_v24, 0.5  ;;  %v4335_v1 = vmul.f32 1.442695, %v4033_v57  ;;  %v8363_v19 = vpop.f32.mrb[79].mxu1  ;;  %v4935_v35 = vsel %vm7803_vm10, %v8287_v55, %v4896_v43  ;;  %vm8401_vm0 = vmand %vm4674_vm13, %vm4710_vm4 }
 0x368   : > { %v6346_v17 = vpop.eup %6345  ;;  %v4386_v6 = vmul.f32 %v6344_v11, %v4166_v32  ;;  %v4243_v8 = vmul.f32 %v8337_v24, %v8216_v30  ;;  %6359 = vpow2.f32 %v5324_v60  ;;  %4971 = vst [vmem:[%s7831_s20 + $0x60] sm:$0xff] %v4935_v35  ;;  %vm4712_vm15 = vcmp.gt.f32.partialorder %v8355_v3, 0.5  ;;  %v4175_v35 = vld [vmem:[%s9249_s1 + $0x1c0] sm:$0xff] }
 0x369   : > { %v6348_v48 = vpop.eup %6347  ;;  %v4567_v55 = vadd.f32 1.0, %v6346_v17  ;;  %6361 = vpow2.f32 %v4335_v1  ;;  %v8388_v52 = vadd.f32 %v8289_v39, %v7645_v15  ;;  %v4037_v9 = vadd.f32 %v8296_v26, %v7647_v58 }
 0x36a   : > { %v4858_v31 = vsel %vm7756_vm5, %v6348_v48, %v4819_v27  ;;  %v4820_v18 = vsel %vm4805_vm9, %v8155_v40, 0.0  ;;  %v4422_v39 = vadd.f32 %v4386_v6, %v4278_v25  ;;  %v8406_v47 = vadd.f32 %v4040_v22, %v7645_v15  ;;  %v6350_v26 = vpop.eup %6349  ;;  %v4172_v22 = vld [vmem:[%s9249_s1 + $0x1a8] sm:$0xff]  ;;  %v8481_v48 = vld [vmem:[%s9249_s1 + $0x1e0] sm:$0xff] }
 0x36b   : > { %v4897_v59 = vsel %vm7767_vm6, %v4420_v61, %v4858_v31  ;;  %v4781_v40 = vsel %vm8372_vm14, 1.0, %v6483_v21  ;;  %6363 = vrcp.f32 %v4567_v55  ;;  %v5325_v54 = vmul.f32 -1.442695, %v8388_v52 }
 0x36c   : > { %v4936_v46 = vsel %vm7803_vm10, %v4780_v63, %v4897_v59  ;;  %v4279_v13 = vadd.f32 %v4243_v8, %v4168_v10  ;;  %v4387_v56 = vmul.f32 %v6350_v26, %v4169_v20  ;;  %v4043_v12 = vadd.f32 %v4042_v42, %v7647_v58  ;;  %v4050_v61 = vpop.f32.mrb[80].mxu1  ;;  %v4174_v63 = vld [vmem:[%s9249_s1 + $0x1b8] sm:$0xff] }
 0x36d   : > { %v6352_v4 = vpop.eup %6351  ;;  %4972 = vst [vmem:[%s7831_s20 + $0x68] sm:$0xff] %v4936_v46  ;;  %v4782_v37 = vsel %vm8401_vm0, 1.0, %v6483_v21  ;;  %v4244_v0 = vmul.f32 %v8355_v3, %v8294_v49  ;;  %6365 = vpow2.f32 %v5325_v54  ;;  %v4337_v23 = vmul.f32 1.442695, %v4037_v9  ;;  %v8431_v57 = vpop.f32.mrb[81].mxu1 }
 0x36e   : > { %v6354_v62 = vpop.eup %6353  ;;  %v4821_v14 = vsel %vm4805_vm9, %v8201_v44, 0.0  ;;  %v4423_v27 = vadd.f32 %v4387_v56, %v4279_v13  ;;  %v4568_v34 = vadd.f32 1.0, %v6352_v4  ;;  %v5326_v45 = vmul.f32 -1.442695, %v8406_v47  ;;  %v8440_v50 = vpop.f32.mrb[82].mxu1 }
 0x36f   : > { %v4859_v32 = vsel %vm7756_vm5, %v6354_v62, %v4820_v18  ;;  %vm4675_vm1 = vcmp.gt.f32.partialorder %v8216_v30, 0.0  ;;  %v4245_v60 = vmul.f32 %v8419_v41, %v8307_v53  ;;  %6367 = vpow2.f32 %v4337_v23  ;;  %v8447_v44 = vpop.f32.mrb[83].mxu1  ;;  %v4178_v23 = vld [vmem:[%s9249_s1 + $0x1d8] sm:$0xff] }
 0x370   : > { %v6356_v42 = vpop.eup %6355  ;;  %v4898_v16 = vsel %vm7767_vm6, %v8340_v36, %v4859_v32  ;;  %6369 = vrcp.f32 %v4568_v34  ;;  %vm4676_vm2 = vcmp.gt.f32.partialorder %v8294_v49, 0.0  ;;  %v4339_v11 = vmul.f32 1.442695, %v4043_v12  ;;  %v8464_v36 = vld [vmem:[%s9249_s1 + $0x1c8] sm:$0xff]  ;;  %vm8473_vm3 = vmand %vm4675_vm1, %vm4711_vm11 }
 0x371   : > { %v6358_v43 = vpop.eup %6357  ;;  %v4937_v25 = vsel %vm7803_vm10, %v4781_v40, %v4898_v16  ;;  %v4280_v1 = vadd.f32 %v4244_v0, %v4171_v7  ;;  %v4388_v17 = vmul.f32 %v6356_v42, %v4172_v22  ;;  %6371 = vpow2.f32 %v5326_v45  ;;  %vm8497_vm7 = vmand %vm4676_vm2, %vm4712_vm15  ;;  %v4177_v0 = vld [vmem:[%s9249_s1 + $0x1d0] sm:$0xff]  ;;  %v4180_v45 = vld [vmem:[%s9249_s1 + $0x1e8] sm:$0xff] }
 0x372   : > { %v6360_v38 = vpop.eup %6359  ;;  %4973 = vst [vmem:[%s7831_s20 + $0x70] sm:$0xff] %v4937_v25  ;;  %v4860_v6 = vsel %vm7756_vm5, %v6358_v43, %v4821_v14  ;;  %vm4713_vm4 = vcmp.gt.f32.partialorder %v8419_v41, 0.5  ;;  %6373 = vpow2.f32 %v4339_v11  ;;  %v8485_v10 = vadd.f32 %v8357_v2, %v7645_v15  ;;  %v4181_v43 = vld [vmem:[%s9249_s1 + $0x1f0] sm:$0xff] }
 0x373   : > { %v4047_v24 = vadd.f32 %v8363_v19, %v7647_v58  ;;  %v6362_v55 = vpop.eup %6361  ;;  %v4899_v20 = vsel %vm7767_vm6, %v4422_v39, %v4860_v6  ;;  %v4424_v9 = vadd.f32 %v4388_v17, %v4280_v1  ;;  %v4281_v31 = vadd.f32 %v4245_v60, %v4174_v63 }
 0x374   : > { %v4569_v18 = vadd.f32 1.0, %v6360_v38  ;;  %v4938_v29 = vsel %vm7803_vm10, %v4782_v37, %v4899_v20  ;;  %v4389_v26 = vmul.f32 %v6362_v55, %v4175_v35  ;;  %vm4714_vm8 = vcmp.gt.f32.partialorder %v8464_v36, 0.5  ;;  %v8506_v59 = vpop.f32.mrb[84].mxu1 }
 0x375   : > { %v5327_v19 = vmul.f32 -1.442695, %v8485_v10  ;;  %v8504_v39 = vadd.f32 %v4050_v61, %v7645_v15  ;;  %v6364_v40 = vpop.eup %6363  ;;  %4974 = vst [vmem:[%s7831_s20 + $0x78] sm:$0xff] %v4938_v29  ;;  %v4783_v3 = vsel %vm8473_vm3, 1.0, %v6483_v21  ;;  %v4822_v54 = vsel %vm4805_vm9, %v8216_v30, 0.0  ;;  %v8516_v13 = vpop.f32.mrb[85].mxu1 }
 0x376   : > { %6375 = vrcp.f32 %v4569_v18  ;;  %vm4715_vm12 = vcmp.gt.f32.partialorder %v8481_v48, 0.5  ;;  %v4341_v46 = vmul.f32 1.442695, %v4047_v24  ;;  %v4861_v56 = vsel %vm7756_vm5, %v6364_v40, %v4822_v54  ;;  %v8524_v4 = vpop.f32.mrb[86].mxu1  ;;  %v8578_v24 = vld [vmem:[%s9249_s1 + $0x210] sm:$0xff] }
 0x377   : > { %v8520_v12 = vadd.f32 %v4389_v26, %v4281_v31  ;;  %v4246_v61 = vmul.f32 %v8464_v36, %v8388_v52  ;;  %6377 = vpow2.f32 %v5327_v19  ;;  %v6366_v37 = vpop.eup %6365  ;;  %v4900_v30 = vsel %vm7767_vm6, %v4423_v27, %v4861_v56  ;;  %v8539_v14 = vpop.f32.mrb[87].mxu1 }
 0x378   : > { %v4784_v7 = vsel %vm8497_vm7, 1.0, %v6483_v21  ;;  %v4247_v62 = vmul.f32 %v8481_v48, %v8406_v47  ;;  %6379 = vpow2.f32 %v4341_v46  ;;  %v4939_v27 = vsel %vm7803_vm10, %v4783_v3, %v4900_v30  ;;  %v4184_v46 = vld [vmem:[%s9249_s1 + $0x208] sm:$0xff] }
 0x379   : > { %v4823_v34 = vsel %vm4805_vm9, %v8294_v49, 0.0  ;;  %v4570_v22 = vadd.f32 1.0, %v6366_v37  ;;  %v5328_v32 = vmul.f32 -1.442695, %v8504_v39  ;;  %v6368_v60 = vpop.eup %6367  ;;  %4975 = vst [vmem:[%s7831_s20 + $0x80] sm:$0xff] %v4939_v27  ;;  %vm4677_vm13 = vcmp.gt.f32.partialorder %v8307_v53, 0.0 }
 0x37a   : > { %vm4678_vm11 = vcmp.gt.f32.partialorder %v8388_v52, 0.0  ;;  %v4053_v42 = vadd.f32 %v8431_v57, %v7647_v58  ;;  %v8557_v16 = vadd.f32 %v8440_v50, %v7645_v15  ;;  %v6370_v49 = vpop.eup %6369  ;;  %v4282_v63 = vadd.f32 %v4246_v61, %v4177_v0  ;;  %v8569_v50 = vld [vmem:[%s9249_s1 + $0x1f8] sm:$0xff]  ;;  %vm8589_vm14 = vmand %vm4677_vm13, %vm4713_vm4 }
 0x37b   : > { %6381 = vrcp.f32 %v4570_v22  ;;  %v4390_v11 = vmul.f32 %v6368_v60, %v4178_v23  ;;  %v4057_v25 = vadd.f32 %v8447_v44, %v7647_v58  ;;  %v6372_v1 = vpop.eup %6371  ;;  %v4862_v17 = vsel %vm7756_vm5, %v6370_v49, %v4823_v34  ;;  %vm8609_vm1 = vmand %vm4678_vm11, %vm4714_vm8 }
 0x37c   : > { %v4283_v57 = vadd.f32 %v4247_v62, %v4180_v45  ;;  %6383 = vpow2.f32 %v5328_v32  ;;  %v4343_v35 = vmul.f32 1.442695, %v4053_v42  ;;  %v6374_v38 = vpop.eup %6373  ;;  %v4901_v6 = vsel %vm7767_vm6, %v4424_v9, %v4862_v17  ;;  %v8581_v20 = vpop.f32.mrb[88].mxu1  ;;  %v4187_v17 = vld [vmem:[%s9249_s1 + $0x220] sm:$0xff] }
 0x37d   : > { %v8573_v8 = vadd.f32 %v4390_v11, %v4282_v63  ;;  %v4571_v44 = vadd.f32 1.0, %v6372_v1  ;;  %v5329_v55 = vmul.f32 -1.442695, %v8557_v16  ;;  %v4940_v31 = vsel %vm7803_vm10, %v4784_v7, %v4901_v6  ;;  %v8594_v29 = vpop.f32.mrb[89].mxu1  ;;  %v4186_v1 = vld [vmem:[%s9249_s1 + $0x218] sm:$0xff] }
 0x37e   : > { %vm4679_vm15 = vcmp.gt.f32.partialorder %v8406_v47, 0.0  ;;  %v4391_v18 = vmul.f32 %v6374_v38, %v4181_v43  ;;  %6385 = vpow2.f32 %v4343_v35  ;;  %4976 = vst [vmem:[%s7831_s20 + $0x88] sm:$0xff] %v4940_v31  ;;  %v4824_v2 = vsel %vm4805_vm9, %v8307_v53, 0.0  ;;  %v8603_v19 = vpop.f32.mrb[90].mxu1  ;;  %v4183_v53 = vld [vmem:[%s9249_s1 + $0x200] sm:$0xff] }
 0x37f   : > { %6387 = vrcp.f32 %v4571_v44  ;;  %v4248_v41 = vmul.f32 %v8569_v50, %v8485_v10  ;;  %vm4716_vm0 = vcmp.gt.f32.partialorder %v8569_v50, 0.5  ;;  %v4345_v26 = vmul.f32 1.442695, %v4057_v25  ;;  %v8628_v61 = vpop.f32.mrb[91].mxu1  ;;  %vm4751_vm3 = vmand %vm4679_vm15, %vm4715_vm12  ;;  %v8697_v44 = vld [vmem:[%s9249_s1 + $0x240] sm:$0xff] }
 0x380   : > { %v6376_v40 = vpop.eup %6375  ;;  %v8613_v54 = vadd.f32 %v4391_v18, %v4283_v57  ;;  %vm4717_vm2 = vcmp.gt.f32.partialorder %v8578_v24, 0.5  ;;  %6389 = vpow2.f32 %v5329_v55  ;;  %v8624_v36 = vadd.f32 %v8506_v59, %v7645_v15  ;;  %v8710_v18 = vld [vmem:[%s9249_s1 + $0x258] sm:$0xff] }
 0x381   : > { %v4063_v56 = vadd.f32 %v8516_v13, %v7647_v58  ;;  %v6378_v37 = vpop.eup %6377  ;;  %v4785_v30 = vsel %vm8589_vm14, 1.0, %v6483_v21  ;;  %v4863_v7 = vsel %vm7756_vm5, %v6376_v40, %v4824_v2  ;;  %6391 = vpow2.f32 %v4345_v26 }
 0x382   : > { %v8641_v59 = vadd.f32 %v8524_v4, %v7645_v15  ;;  %v6380_v13 = vpop.eup %6379  ;;  %v4902_v0 = vsel %vm7767_vm6, %v8520_v12, %v4863_v7  ;;  %v4825_v23 = vsel %vm4805_vm9, %v8388_v52, 0.0  ;;  %v4572_v62 = vadd.f32 1.0, %v6378_v37  ;;  %v8663_v52 = vld [vmem:[%s9249_s1 + $0x228] sm:$0xff] }
 0x383   : > { %v5330_v48 = vmul.f32 -1.442695, %v8624_v36  ;;  %v4941_v27 = vsel %vm7803_vm10, %v4785_v30, %v4902_v0  ;;  %v4786_v4 = vsel %vm8609_vm1, 1.0, %v6483_v21  ;;  %v4284_v34 = vadd.f32 %v4248_v41, %v4183_v53 }
 0x384   : > { %v4392_v22 = vmul.f32 %v6380_v13, %v4184_v46  ;;  %4977 = vst [vmem:[%s7831_s20 + $0x90] sm:$0xff] %v4941_v27  ;;  %v4787_v45 = vsel %vm4751_vm3, 1.0, %v6483_v21  ;;  %v4826_v12 = vsel %vm4805_vm9, %v8406_v47, 0.0  ;;  %6393 = vrcp.f32 %v4572_v62  ;;  %v8670_v11 = vpop.f32.mrb[92].mxu1  ;;  %v4190_v46 = vld [vmem:[%s9249_s1 + $0x238] sm:$0xff] }
 0x385   : > { %v4347_v32 = vmul.f32 1.442695, %v4063_v56  ;;  %v6382_v60 = vpop.eup %6381  ;;  %v4249_v49 = vmul.f32 %v8578_v24, %v8504_v39  ;;  %6395 = vpow2.f32 %v5330_v48  ;;  %v5331_v63 = vmul.f32 -1.442695, %v8641_v59  ;;  %v8686_v57 = vpop.f32.mrb[93].mxu1 }
 0x386   : > { %v8665_v42 = vadd.f32 %v4392_v22, %v4284_v34  ;;  %v6384_v43 = vpop.eup %6383  ;;  %v4864_v47 = vsel %vm7756_vm5, %v6382_v60, %v4825_v23  ;;  %vm4680_vm4 = vcmp.gt.f32.partialorder %v8485_v10, 0.0  ;;  %v8678_v25 = vsel %vm4805_vm9, %v8485_v10, 0.0  ;;  %v8699_v55 = vpop.f32.mrb[94].mxu1  ;;  %v4193_v60 = vld [vmem:[%s9249_s1 + $0x250] sm:$0xff] }
 0x387   : > { %6397 = vpow2.f32 %v4347_v32  ;;  %v4903_v35 = vsel %vm7767_vm6, %v8573_v8, %v4864_v47  ;;  %v4573_v38 = vadd.f32 1.0, %v6384_v43  ;;  %v4250_v6 = vmul.f32 %v8663_v52, %v8557_v16  ;;  %v4189_v8 = vld [vmem:[%s9249_s1 + $0x230] sm:$0xff]  ;;  %v8718_v26 = vpop.f32.mrb[95].mxu1  ;;  %vm8732_vm12 = vmand %vm4680_vm4, %vm4716_vm0 }
 0x388   : > { %vm4718_vm7 = vcmp.gt.f32.partialorder %v8663_v52, 0.5  ;;  %6399 = vpow2.f32 %v5331_v63  ;;  %v6386_v31 = vpop.eup %6385  ;;  %v4942_v9 = vsel %vm7803_vm10, %v4786_v4, %v4903_v35  ;;  %vm4681_vm8 = vcmp.gt.f32.partialorder %v8504_v39, 0.0  ;;  %v4192_v4 = vld [vmem:[%s9249_s1 + $0x248] sm:$0xff] }
 0x389   : > { %v4067_v2 = vadd.f32 %v8539_v14, %v7647_v58  ;;  %v8716_v41 = vadd.f32 %v8581_v20, %v7645_v15  ;;  %v6388_v40 = vpop.eup %6387  ;;  %4978 = vst [vmem:[%s7831_s20 + $0x98] sm:$0xff] %v4942_v9  ;;  %v4285_v3 = vadd.f32 %v4249_v49, %v4186_v1  ;;  %6401 = vrcp.f32 %v4573_v38  ;;  %vm8749_vm11 = vmand %vm4681_vm8, %vm4717_vm2  ;;  %v4196_v20 = vld [vmem:[%s9249_s1 + $0x268] sm:$0xff] }
 0x38a   : > { %v4393_v53 = vmul.f32 %v6386_v31, %v4187_v17  ;;  %v4073_v56 = vadd.f32 %v8594_v29, %v7647_v58  ;;  %v6390_v37 = vpop.eup %6389  ;;  %v4865_v14 = vsel %vm7756_vm5, %v6388_v40, %v4826_v12  ;;  %vm4719_vm13 = vcmp.gt.f32.partialorder %v8697_v44, 0.5 }
 0x38b   : > { %v4349_v30 = vmul.f32 1.442695, %v4067_v2  ;;  %v5332_v7 = vmul.f32 -1.442695, %v8716_v41  ;;  %v8740_v29 = vadd.f32 %v8603_v19, %v7645_v15  ;;  %v6392_v13 = vpop.eup %6391  ;;  %v4904_v50 = vsel %vm7767_vm6, %v8613_v54, %v4865_v14  ;;  %v8800_v2 = vld [vmem:[%s9249_s1 + $0x270] sm:$0xff] }
 0x38c   : > { %v4429_v0 = vadd.f32 %v4393_v53, %v4285_v3  ;;  %v4286_v23 = vadd.f32 %v4250_v6, %v4189_v8  ;;  %v4574_v62 = vadd.f32 1.0, %v6390_v37  ;;  %vm4720_vm14 = vcmp.gt.f32.partialorder %v8710_v18, 0.5  ;;  %v8768_v22 = vpop.f32.mrb[96].mxu1 }
 0x38d   : > { %v4943_v19 = vsel %vm7803_vm10, %v4787_v45, %v4904_v50  ;;  %v4394_v48 = vmul.f32 %v6392_v13, %v4190_v46  ;;  %v4251_v54 = vmul.f32 %v8697_v44, %v8624_v36  ;;  %6403 = vpow2.f32 %v4349_v30  ;;  %v8779_v49 = vpop.f32.mrb[97].mxu1  ;;  %v8858_v50 = vld [vmem:[%s9249_s1 + $0x288] sm:$0xff] }
 0x38e   : > { %4979 = vst [vmem:[%s7831_s20 + $0xa0] sm:$0xff] %v4943_v19  ;;  %v4788_v24 = vsel %vm8732_vm12, 1.0, %v6483_v21  ;;  %v4828_v27 = vsel %vm4805_vm9, %v8504_v39, 0.0  ;;  %6405 = vrcp.f32 %v4574_v62  ;;  %v4351_v34 = vmul.f32 1.442695, %v4073_v56  ;;  %v6394_v45 = vpop.eup %6393  ;;  %v8786_v47 = vpop.f32.mrb[98].mxu1 }
 0x38f   : > { %v4789_v12 = vsel %vm8749_vm11, 1.0, %v6483_v21  ;;  %v8773_v32 = vadd.f32 %v4394_v48, %v4286_v23  ;;  %6407 = vpow2.f32 %v5332_v7  ;;  %v5333_v39 = vmul.f32 -1.442695, %v8740_v29  ;;  %v6396_v63 = vpop.eup %6395  ;;  %v8791_v6 = vpop.f32.mrb[99].mxu1 }
 0x390   : > { %v4866_v43 = vsel %vm7756_vm5, %v6394_v45, %v8678_v25  ;;  %vm4682_vm15 = vcmp.gt.f32.partialorder %v8557_v16, 0.0  ;;  %vm4683_vm0 = vcmp.gt.f32.partialorder %v8624_v36, 0.0  ;;  %6409 = vpow2.f32 %v4351_v34 }
 0x391   : > { %v6398_v1 = vpop.eup %6397  ;;  %v4905_v17 = vsel %vm7767_vm6, %v8665_v42, %v4866_v43  ;;  %v4287_v35 = vadd.f32 %v4251_v54, %v4192_v4  ;;  %v4575_v38 = vadd.f32 1.0, %v6396_v63  ;;  %6411 = vpow2.f32 %v5333_v39  ;;  %vm8809_vm1 = vmand %vm4682_vm15, %vm4718_vm7 }
 0x392   : > { %v6400_v31 = vpop.eup %6399  ;;  %v4944_v25 = vsel %vm7803_vm10, %v4788_v24, %v4905_v17  ;;  %v4395_v9 = vmul.f32 %v6398_v1, %v4193_v60  ;;  %v4252_v8 = vmul.f32 %v8710_v18, %v8641_v59  ;;  %v4077_v42 = vadd.f32 %v8628_v61, %v7647_v58  ;;  %vm8848_vm4 = vmand %vm4683_vm0, %vm4719_vm13  ;;  %v4198_v18 = vld [vmem:[%s9249_s1 + $0x278] sm:$0xff] }
 0x393   : > { %4980 = vst [vmem:[%s7831_s20 + $0xa8] sm:$0xff] %v4944_v25  ;;  %6413 = vrcp.f32 %v4575_v38  ;;  %v4576_v3 = vadd.f32 1.0, %v6400_v31  ;;  %v8815_v53 = vadd.f32 %v8670_v11, %v7645_v15  ;;  %v4083_v46 = vadd.f32 %v8686_v57, %v7647_v58  ;;  %v6402_v56 = vpop.eup %6401  ;;  %v4195_v57 = vld [vmem:[%s9249_s1 + $0x260] sm:$0xff] }
 0x394   : > { %v8819_v61 = vadd.f32 %v4395_v9, %v4287_v35  ;;  %vm4684_vm2 = vcmp.gt.f32.partialorder %v8641_v59, 0.0  ;;  %v4353_v52 = vmul.f32 1.442695, %v4077_v42  ;;  %v8824_v37 = vadd.f32 %v8699_v55, %v7645_v15  ;;  %v8860_v10 = vpop.f32.mrb[100].mxu1 }
 0x395   : > { %v4867_v14 = vsel %vm7756_vm5, %v6402_v56, %v4828_v27  ;;  %v4829_v11 = vsel %vm4805_vm9, %v8557_v16, 0.0  ;;  %6415 = vrcp.f32 %v4576_v3  ;;  %vm4721_vm3 = vcmp.gt.f32.partialorder %v8800_v2, 0.5  ;;  %vm8868_vm7 = vmand %vm4684_vm2, %vm4720_vm14  ;;  %v8874_v19 = vpop.f32.mrb[101].mxu1  ;;  %v4199_v27 = vld [vmem:[%s9249_s1 + $0x280] sm:$0xff] }
 0x396   : > { %v5334_v55 = vmul.f32 -1.442695, %v8815_v53  ;;  %v4906_v30 = vsel %vm7767_vm6, %v4429_v0, %v4867_v14  ;;  %v4790_v16 = vsel %vm8809_vm1, 1.0, %v6483_v21  ;;  %v4830_v13 = vsel %vm4805_vm9, %v8624_v36, 0.0  ;;  %v8886_v45 = vpop.f32.mrb[102].mxu1 }
 0x397   : > { %6417 = vpow2.f32 %v4353_v52  ;;  %v6404_v0 = vpop.eup %6403  ;;  %v4945_v44 = vsel %vm7803_vm10, %v4789_v12, %v4906_v30  ;;  %v4253_v36 = vmul.f32 %v8800_v2, %v8716_v41  ;;  %v4355_v62 = vmul.f32 1.442695, %v4083_v46  ;;  %v8897_v43 = vpop.f32.mrb[103].mxu1 }
 0x398   : > { %6419 = vpow2.f32 %v5334_v55  ;;  %v6406_v48 = vpop.eup %6405  ;;  %4981 = vst [vmem:[%s7831_s20 + $0xb0] sm:$0xff] %v4945_v44  ;;  %v4288_v54 = vadd.f32 %v4252_v8, %v4195_v57  ;;  %v4396_v24 = vmul.f32 %v6404_v0, %v4196_v20  ;;  %v5335_v4 = vmul.f32 -1.442695, %v8824_v37 }
 0x399   : > { %v4087_v34 = vadd.f32 %v8718_v26, %v7647_v58  ;;  %v6408_v12 = vpop.eup %6407  ;;  %v4868_v60 = vsel %vm7756_vm5, %v6406_v48, %v4829_v11  ;;  %v4791_v39 = vsel %vm8848_vm4, 1.0, %v6483_v21  ;;  %v4831_v63 = vsel %vm4805_vm9, %v8641_v59, 0.0  ;;  %v4201_v11 = vld [vmem:[%s9249_s1 + $0x290] sm:$0xff] }
 0x39a   : > { %vm4722_vm8 = vcmp.gt.f32.partialorder %v8858_v50, 0.5  ;;  %6421 = vpow2.f32 %v4355_v62  ;;  %v6410_v26 = vpop.eup %6409  ;;  %v4907_v1 = vsel %vm7767_vm6, %v8773_v32, %v4868_v60  ;;  %v4792_v17 = vsel %vm8868_vm7, 1.0, %v6483_v21  ;;  %v8911_v32 = vld [vmem:[%s9249_s1 + $0x2a0] sm:$0xff] }
 0x39b   : > { %v4432_v35 = vadd.f32 %v4396_v24, %v4288_v54  ;;  %v4577_v38 = vadd.f32 1.0, %v6408_v12  ;;  %v6412_v31 = vpop.eup %6411  ;;  %v4946_v59 = vsel %vm7803_vm10, %v4790_v16, %v4907_v1  ;;  %v4289_v25 = vadd.f32 %v4253_v36, %v4198_v18  ;;  %v4204_v54 = vld [vmem:[%s9249_s1 + $0x2a8] sm:$0xff]  ;;  %v4205_v24 = vld [vmem:[%s9249_s1 + $0x2b0] sm:$0xff]  ;;  %v4214_v1 = vld [vmem:[%s9249_s1 + $0x2f8] sm:$0xff] }
 0x39c   : > { %v4397_v9 = vmul.f32 %v6410_v26, %v4199_v27  ;;  %6423 = vpow2.f32 %v5335_v4  ;;  %4982 = vst [vmem:[%s7831_s20 + $0xb8] sm:$0xff] %v4946_v59  ;;  %v4578_v8 = vadd.f32 1.0, %v6412_v31  ;;  %v4357_v42 = vmul.f32 1.442695, %v4087_v34  ;;  %v8980_v34 = vld [vmem:[%s9249_s1 + $0x2b8] sm:$0xff] }
 0x39d   : > { %6425 = vrcp.f32 %v4577_v38  ;;  %v8915_v40 = vadd.f32 %v8768_v22, %v7645_v15  ;;  %v6414_v3 = vpop.eup %6413  ;;  %vm4685_vm12 = vcmp.gt.f32.partialorder %v8716_v41, 0.0  ;;  %v4254_v56 = vmul.f32 %v8858_v50, %v8740_v29  ;;  %v4202_v22 = vld [vmem:[%s9249_s1 + $0x298] sm:$0xff] }
 0x39e   : > { %v8918_v46 = vadd.f32 %v4397_v9, %v4289_v25  ;;  %v4093_v52 = vadd.f32 %v8779_v49, %v7647_v58  ;;  %v4869_v14 = vsel %vm7756_vm5, %v6414_v3, %v4830_v13  ;;  %6427 = vrcp.f32 %v4578_v8  ;;  %v8937_v49 = vpop.f32.mrb[104].mxu1  ;;  %vm8955_vm11 = vmand %vm4685_vm12, %vm4721_vm3 }
 0x39f   : > { %v5336_v57 = vmul.f32 -1.442695, %v8915_v40  ;;  %v8935_v20 = vadd.f32 %v8786_v47, %v7645_v15  ;;  %v6416_v55 = vpop.eup %6415  ;;  %v4908_v30 = vsel %vm7767_vm6, %v8819_v61, %v4869_v14  ;;  %vm4686_vm13 = vcmp.gt.f32.partialorder %v8740_v29, 0.0  ;;  %v8945_v7 = vpop.f32.mrb[105].mxu1 }
 0x3a0   : > { %v4255_v16 = vmul.f32 %v8911_v32, %v8815_v53  ;;  %6429 = vpow2.f32 %v4357_v42  ;;  %v4947_v47 = vsel %vm7803_vm10, %v4791_v39, %v4908_v30  ;;  %v4870_v0 = vsel %vm7756_vm5, %v6416_v55, %v4831_v63  ;;  %v8961_v23 = vpop.f32.mrb[106].mxu1  ;;  %vm8994_vm15 = vmand %vm4686_vm13, %vm4722_vm8  ;;  %v4207_v42 = vld [vmem:[%s9249_s1 + $0x2c0] sm:$0xff] }
 0x3a1   : > { %v6418_v13 = vpop.eup %6417  ;;  %6431 = vpow2.f32 %v5336_v57  ;;  %v4097_v44 = vadd.f32 %v8791_v6, %v7647_v58  ;;  %4983 = vst [vmem:[%s7831_s20 + $0xc0] sm:$0xff] %v4947_v47  ;;  %v4909_v62 = vsel %vm7767_vm6, %v4432_v35, %v4870_v0  ;;  %v4290_v48 = vadd.f32 %v4254_v56, %v4201_v11  ;;  %v8972_v6 = vpop.f32.mrb[107].mxu1  ;;  %v9037_v57 = vld [vmem:[%s9249_s1 + $0x2e8] sm:$0xff] }
 0x3a2   : > { %v6420_v36 = vpop.eup %6419  ;;  %v4398_v2 = vmul.f32 %v6418_v13, %v4202_v22  ;;  %v4359_v18 = vmul.f32 1.442695, %v4093_v52  ;;  %v4948_v27 = vsel %vm7803_vm10, %v4792_v17, %v4909_v62  ;;  %vm4723_vm14 = vcmp.gt.f32.partialorder %v8911_v32, 0.5 }
 0x3a3   : > { %v4579_v4 = vadd.f32 1.0, %v6420_v36  ;;  %v5337_v12 = vmul.f32 -1.442695, %v8935_v20  ;;  %4984 = vst [vmem:[%s7831_s20 + $0xc8] sm:$0xff] %v4948_v27  ;;  %v4793_v39 = vsel %vm8955_vm11, 1.0, %v6483_v21  ;;  %v4832_v63 = vsel %vm4805_vm9, %v8716_v41, 0.0 }
 0x3a4   : > { %v6422_v60 = vpop.eup %6421  ;;  %v4434_v26 = vadd.f32 %v4398_v2, %v4290_v48  ;;  %6433 = vpow2.f32 %v4359_v18  ;;  %v4291_v17 = vadd.f32 %v4255_v16, %v4204_v54  ;;  %v4361_v38 = vmul.f32 1.442695, %v4097_v44  ;;  %v4210_v36 = vld [vmem:[%s9249_s1 + $0x2d8] sm:$0xff]  ;;  %v4211_v48 = vld [vmem:[%s9249_s1 + $0x2e0] sm:$0xff]  ;;  %v4213_v27 = vld [vmem:[%s9249_s1 + $0x2f0] sm:$0xff] }
 0x3a5   : > { %6435 = vrcp.f32 %v4579_v4  ;;  %v4399_v35 = vmul.f32 %v6422_v60, %v4205_v24  ;;  %v4256_v59 = vmul.f32 %v8980_v34, %v8824_v37  ;;  %v9002_v41 = vadd.f32 %v8860_v10, %v7645_v15 }
 0x3a6   : > { %v6424_v31 = vpop.eup %6423  ;;  %6437 = vpow2.f32 %v5337_v12  ;;  %v4103_v50 = vadd.f32 %v8874_v19, %v7647_v58  ;;  %v4833_v9 = vsel %vm4805_vm9, %v8740_v29, 0.0  ;;  %v4794_v10 = vsel %vm8994_vm15, 1.0, %v6483_v21  ;;  %v4208_v19 = vld [vmem:[%s9249_s1 + $0x2c8] sm:$0xff]  ;;  %v9023_v29 = vld [vmem:[%s9249_s1 + $0x2d0] sm:$0xff] }
 0x3a7   : > { %v6426_v25 = vpop.eup %6425  ;;  %v4435_v8 = vadd.f32 %v4399_v35, %v4291_v17  ;;  %v4580_v3 = vadd.f32 1.0, %v6424_v31  ;;  %6439 = vpow2.f32 %v4361_v38  ;;  %v5338_v52 = vmul.f32 -1.442695, %v9002_v41 }
 0x3a8   : > { %v4871_v56 = vsel %vm7756_vm5, %v6426_v25, %v4832_v63  ;;  %v9028_v14 = vadd.f32 %v8886_v45, %v7645_v15  ;;  %v6428_v11 = vpop.eup %6427  ;;  %vm4687_vm0 = vcmp.gt.f32.partialorder %v8815_v53, 0.0  ;;  %v4363_v55 = vmul.f32 1.442695, %v4103_v50 }
 0x3a9   : > { %v4910_v22 = vsel %vm7767_vm6, %v8918_v46, %v4871_v56  ;;  %6441 = vrcp.f32 %v4580_v3  ;;  %v4872_v45 = vsel %vm7756_vm5, %v6428_v11, %v4833_v9  ;;  %v4292_v13 = vadd.f32 %v4256_v59, %v4207_v42  ;;  %vm9064_vm1 = vmand %vm4687_vm0, %vm4723_vm14 }
 0x3aa   : > { %v6430_v30 = vpop.eup %6429  ;;  %v4949_v16 = vsel %vm7803_vm10, %v4793_v39, %v4910_v22  ;;  %6443 = vpow2.f32 %v5338_v52  ;;  %v4911_v47 = vsel %vm7767_vm6, %v4434_v26, %v4872_v45  ;;  %v4257_v61 = vmul.f32 %v9023_v29, %v8915_v40  ;;  %v4217_v52 = vld [vmem:[%s9249_s1 + $0x310] sm:$0xff] }
 0x3ab   : > { %v6432_v46 = vpop.eup %6431  ;;  %4985 = vst [vmem:[%s7831_s20 + $0xd0] sm:$0xff] %v4949_v16  ;;  %v4400_v0 = vmul.f32 %v6430_v30, %v4208_v19  ;;  %6445 = vpow2.f32 %v4363_v55  ;;  %v4950_v44 = vsel %vm7803_vm10, %v4794_v10, %v4911_v47  ;;  %v4258_v2 = vmul.f32 %v9037_v57, %v8935_v20 }
 0x3ac   : > { %v4581_v62 = vadd.f32 1.0, %v6432_v46  ;;  %v5339_v54 = vmul.f32 -1.442695, %v9028_v14  ;;  %4986 = vst [vmem:[%s7831_s20 + $0xd8] sm:$0xff] %v4950_v44  ;;  %vm4688_vm2 = vcmp.gt.f32.partialorder %v8824_v37, 0.0  ;;  %vm4724_vm3 = vcmp.gt.f32.partialorder %v8980_v34, 0.5 }
 0x3ad   : > { %v4436_v18 = vadd.f32 %v4400_v0, %v4292_v13  ;;  %v4107_v4 = vadd.f32 %v8897_v43, %v7647_v58  ;;  %v4834_v32 = vsel %vm4805_vm9, %v8815_v53, 0.0  ;;  %vm4725_vm4 = vcmp.gt.f32.partialorder %v9023_v29, 0.5  ;;  %v9089_v43 = vld [vmem:[%s9249_s1 + $0x300] sm:$0xff]  ;;  %vm4760_vm7 = vmand %vm4688_vm2, %vm4724_vm3 }
 0x3ae   : > { %v6434_v12 = vpop.eup %6433  ;;  %6447 = vrcp.f32 %v4581_v62  ;;  %v9081_v60 = vadd.f32 %v8937_v49, %v7645_v15  ;;  %v4293_v63 = vadd.f32 %v4257_v61, %v4210_v36  ;;  %v4795_v49 = vsel %vm9064_vm1, 1.0, %v6483_v21  ;;  %v4219_v29 = vld [vmem:[%s9249_s1 + $0x320] sm:$0xff] }
 0x3af   : > { %v6436_v39 = vpop.eup %6435  ;;  %v4401_v26 = vmul.f32 %v6434_v12, %v4211_v48  ;;  %6449 = vpow2.f32 %v5339_v54  ;;  %v4365_v53 = vmul.f32 1.442695, %v4107_v4  ;;  %v4294_v38 = vadd.f32 %v4258_v2, %v4213_v27 }
 0x3b0   : > { %v6438_v17 = vpop.eup %6437  ;;  %v4873_v35 = vsel %vm7756_vm5, %v6436_v39, %v4834_v32  ;;  %v5340_v31 = vmul.f32 -1.442695, %v9081_v60  ;;  %v4259_v34 = vmul.f32 %v9089_v43, %v9002_v41  ;;  %v4796_v10 = vsel %vm4760_vm7, 1.0, %v6483_v21  ;;  %v4221_v39 = vld [vmem:[%s9249_s1 + $0x330] sm:$0xff] }
 0x3b1   : > { %v6440_v59 = vpop.eup %6439  ;;  %v4912_v50 = vsel %vm7767_vm6, %v4435_v8, %v4873_v35  ;;  %v4437_v25 = vadd.f32 %v4401_v26, %v4293_v63  ;;  %v4582_v9 = vadd.f32 1.0, %v6438_v17  ;;  %6451 = vpow2.f32 %v4365_v53  ;;  %v4216_v8 = vld [vmem:[%s9249_s1 + $0x308] sm:$0xff] }
 0x3b2   : > { %v4951_v42 = vsel %vm7803_vm10, %v4795_v49, %v4912_v50  ;;  %v4402_v3 = vmul.f32 %v6440_v59, %v4214_v1  ;;  %6453 = vpow2.f32 %v5340_v31  ;;  %v4835_v19 = vsel %vm4805_vm9, %v8824_v37, 0.0  ;;  %v4224_v49 = vld [vmem:[%s9249_s1 + $0x348] sm:$0xff]  ;;  %v4222_v31 = vld [vmem:[%s9249_s1 + $0x338] sm:$0xff]  ;;  %v4223_v59 = vld [vmem:[%s9249_s1 + $0x340] sm:$0xff] }
 0x3b3   : > { %v6442_v56 = vpop.eup %6441  ;;  %4987 = vst [vmem:[%s7831_s20 + $0xe0] sm:$0xff] %v4951_v42  ;;  %6455 = vrcp.f32 %v4582_v9  ;;  %v4113_v11 = vadd.f32 %v8945_v7, %v7647_v58  ;;  %vm4689_vm8 = vcmp.gt.f32.partialorder %v8915_v40, 0.0  ;;  %v9125_v30 = vadd.f32 %v8961_v23, %v7645_v15  ;;  %v9132_v7 = vld [vmem:[%s9249_s1 + $0x318] sm:$0xff] }
 0x3b4   : > { %v6444_v22 = vpop.eup %6443  ;;  %v4874_v55 = vsel %vm7756_vm5, %v6442_v56, %v4835_v19  ;;  %v4438_v37 = vadd.f32 %v4402_v3, %v4294_v38  ;;  %v4117_v47 = vadd.f32 %v8972_v6, %v7647_v58  ;;  %v4295_v61 = vadd.f32 %v4259_v34, %v4216_v8  ;;  %vm4761_vm12 = vmand %vm4689_vm8, %vm4725_vm4  ;;  %v4225_v34 = vld [vmem:[%s9249_s1 + $0x350] sm:$0xff]  ;;  %v4226_v56 = vld [vmem:[%s9249_s1 + $0x358] sm:$0xff] }
 0x3b5   : > { %v6446_v16 = vpop.eup %6445  ;;  %v4913_v45 = vsel %vm7767_vm6, %v4436_v18, %v4874_v55  ;;  %v4583_v13 = vadd.f32 1.0, %v6444_v22  ;;  %v4367_v46 = vmul.f32 1.442695, %v4113_v11  ;;  %v5341_v23 = vmul.f32 -1.442695, %v9125_v30 }
 0x3b6   : > { %v4952_v0 = vsel %vm7803_vm10, %v4796_v10, %v4913_v45  ;;  %v4403_v15 = vmul.f32 %v6446_v16, %v4217_v52  ;;  %v4369_v44 = vmul.f32 1.442695, %v4117_v47  ;;  %v4836_v62 = vsel %vm4805_vm9, %v8915_v40, 0.0  ;;  %v4220_v40 = vld [vmem:[%s9249_s1 + $0x328] sm:$0xff] }
 0x3b7   : > { %4988 = vst [vmem:[%s7831_s20 + $0xe8] sm:$0xff] %v4952_v0  ;;  %6457 = vrcp.f32 %v4583_v13  ;;  %v4260_v58 = vmul.f32 %v9132_v7, %v9028_v14  ;;  %vm4690_vm13 = vcmp.gt.f32.partialorder %v8935_v20, 0.0  ;;  %vm4726_vm11 = vcmp.gt.f32.partialorder %v9037_v57, 0.5 }
 0x3b8   : > { %v6448_v36 = vpop.eup %6447  ;;  %v4439_v48 = vadd.f32 %v4403_v15, %v4295_v61  ;;  %6459 = vpow2.f32 %v4367_v46  ;;  %v4797_v54 = vsel %vm4761_vm12, 1.0, %v6483_v21  ;;  %vm4762_vm14 = vmand %vm4690_vm13, %vm4726_vm11  ;;  %v4837_v26 = vsel %vm4805_vm9, %v8935_v20, 0.0 }
 0x3b9   : > { %v6450_v6 = vpop.eup %6449  ;;  %v4875_v2 = vsel %vm7756_vm5, %v6448_v36, %v4836_v62  ;;  %6461 = vpow2.f32 %v5341_v23  ;;  %v4296_v12 = vadd.f32 %v4260_v58, %v4219_v29  ;;  %vm4691_vm15 = vcmp.gt.f32.partialorder %v9002_v41, 0.0 }
 0x3ba   : > { %v4914_v24 = vsel %vm7767_vm6, %v4437_v25, %v4875_v2  ;;  %v4584_v18 = vadd.f32 1.0, %v6450_v6  ;;  %6463 = vpow2.f32 %v4369_v44  ;;  %vm4727_vm0 = vcmp.gt.f32.partialorder %v9089_v43, 0.5 }
 0x3bb   : > { %v6452_v27 = vpop.eup %6451  ;;  %v4953_v57 = vsel %vm7803_vm10, %v4797_v54, %v4914_v24  ;;  %v4798_v35 = vsel %vm4762_vm14, 1.0, %v6483_v21  ;;  %v4261_v20 = vmul.f32 %v4221_v39, %v9081_v60  ;;  %vm4763_vm1 = vmand %vm4691_vm15, %vm4727_vm0  ;;  %v4838_v25 = vsel %vm4805_vm9, %v9002_v41, 0.0 }
 0x3bc   : > { %v6454_v4 = vpop.eup %6453  ;;  %4989 = vst [vmem:[%s7831_s20 + $0xf0] sm:$0xff] %v4953_v57  ;;  %6465 = vrcp.f32 %v4584_v18  ;;  %v4404_v32 = vmul.f32 %v6452_v27, %v4220_v40  ;;  %v4262_v9 = vmul.f32 %v4224_v49, %v9125_v30  ;;  %vm4692_vm2 = vcmp.gt.f32.partialorder %v9028_v14, 0.0 }
 0x3bd   : > { %v6456_v63 = vpop.eup %6455  ;;  %v4585_v1 = vadd.f32 1.0, %v6454_v4  ;;  %vm4728_vm3 = vcmp.gt.f32.partialorder %v9132_v7, 0.5  ;;  %v4799_v10 = vsel %vm4763_vm1, 1.0, %v6483_v21  ;;  %v4297_v8 = vadd.f32 %v4261_v20, %v4222_v31 }
 0x3be   : > { %v4876_v53 = vsel %vm7756_vm5, %v6456_v63, %v4837_v26  ;;  %v4440_v17 = vadd.f32 %v4404_v32, %v4296_v12  ;;  %vm4729_vm4 = vcmp.gt.f32.partialorder %v4221_v39, 0.5  ;;  %vm4764_vm7 = vmand %vm4692_vm2, %vm4728_vm3  ;;  %vm4693_vm8 = vcmp.gt.f32.partialorder %v9081_v60, 0.0 }
 0x3bf   : > { %v4915_v38 = vsel %vm7767_vm6, %v4438_v37, %v4876_v53  ;;  %6467 = vrcp.f32 %v4585_v1  ;;  %v4298_v16 = vadd.f32 %v4262_v9, %v4225_v34  ;;  %v4839_v7 = vsel %vm4805_vm9, %v9028_v14, 0.0  ;;  %vm4765_vm12 = vmand %vm4693_vm8, %vm4729_vm4 }
 0x3c0   : > { %v4954_v43 = vsel %vm7803_vm10, %v4798_v35, %v4915_v38  ;;  %v4800_v0 = vsel %vm4764_vm7, 1.0, %v6483_v21  ;;  %v4840_v14 = vsel %vm4805_vm9, %v9081_v60, 0.0  ;;  %v4801_v36 = vsel %vm4765_vm12, 1.0, %v6483_v21 }
 0x3c1   : > { %v6458_v50 = vpop.eup %6457  ;;  %4990 = vst [vmem:[%s7831_s20 + $0xf8] sm:$0xff] %v4954_v43  ;;  %vm4694_vm13 = vcmp.gt.f32.partialorder %v9125_v30, 0.0  ;;  %vm4730_vm11 = vcmp.gt.f32.partialorder %v4224_v49, 0.5  ;;  %v4841_v60 = vsel %vm4805_vm9, %v9125_v30, 0.0 }
 0x3c2   : > { %v6460_v42 = vpop.eup %6459  ;;  %v4877_v3 = vsel %vm7756_vm5, %v6458_v50, %v4838_v25  ;;  %vm4766_vm14 = vmand %vm4694_vm13, %vm4730_vm11 }
 0x3c3   : > { %v6462_v41 = vpop.eup %6461  ;;  %v4916_v19 = vsel %vm7767_vm6, %v4439_v48, %v4877_v3  ;;  %v4405_v52 = vmul.f32 %v6460_v42, %v4223_v59  ;;  %v4802_v2 = vsel %vm4766_vm14, 1.0, %v6483_v21 }
 0x3c4   : > { %v6464_v11 = vpop.eup %6463  ;;  %v4955_v22 = vsel %vm7803_vm10, %v4799_v10, %v4916_v19  ;;  %v4586_v55 = vadd.f32 1.0, %v6462_v41 }
 0x3c5   : > { %4991 = vst [vmem:[%s7831_s20 + $0x100] sm:$0xff] %v4955_v22  ;;  %v4441_v37 = vadd.f32 %v4405_v52, %v4297_v8  ;;  %v4406_v45 = vmul.f32 %v6464_v11, %v4226_v56 }
 0x3c6   : > { %v6466_v13 = vpop.eup %6465  ;;  %6469 = vrcp.f32 %v4586_v55 }
 0x3c7   : > { %v4878_v46 = vsel %vm7756_vm5, %v6466_v13, %v4839_v7  ;;  %v4442_v47 = vadd.f32 %v4406_v45, %v4298_v16 }
 0x3c8   : > { %v4917_v61 = vsel %vm7767_vm6, %v4440_v17, %v4878_v46 }
 0x3c9   : > { %v6468_v15 = vpop.eup %6467  ;;  %v4956_v23 = vsel %vm7803_vm10, %v4800_v0, %v4917_v61 }
 0x3ca   : > { %4992 = vst [vmem:[%s7831_s20 + $0x108] sm:$0xff] %v4956_v23  ;;  %v4879_v44 = vsel %vm7756_vm5, %v6468_v15, %v4840_v14 }
 0x3cb   : > { %v4918_v62 = vsel %vm7767_vm6, %v4441_v37, %v4879_v44 }
 0x3cc   : > { %v4957_v48 = vsel %vm7803_vm10, %v4801_v36, %v4918_v62 }
 0x3cd   : > { %4993 = vst [vmem:[%s7831_s20 + $0x110] sm:$0xff] %v4957_v48 }
 0x3d0   : > { %v6470_v58 = vpop.eup %6469 }
 0x3d1   : > { %v4880_v6 = vsel %vm7756_vm5, %v6470_v58, %v4841_v60 }
 0x3d2   : > { %v4919_v29 = vsel %vm7767_vm6, %v4442_v47, %v4880_v6 }
 0x3d3   : > { %v4958_v40 = vsel %vm7803_vm10, %v4802_v2, %v4919_v29 }
 0x3d4   : > { %4994 = vst [vmem:[%s7831_s20 + $0x118] sm:$0xff] %v4958_v40 }
 0x3d5 PF: > { %s16_s21 = sadd.s32 1, %s6480_s21  }
 0x3d6   : > { %p13_p4 = scmp.ge.s32.totalorder %s16_s21, 4  }
 0x3d8   :  { %15 = sbr.rel (!%p13_p4) target bundleno = 1 (0x1), region = 82 }

</bundles_post_ra>
